<compile_context>
chip_gen: v5e
topology: v5e:2x2
jax: 0.10.0
libtpu: 0.0.40
codegen_flags: <defaults>
</compile_context>

<pallas_src>
import functools

import jax
import jax.numpy as jnp
from jax.experimental import pallas as pl
from jax.experimental.pallas import tpu as pltpu

LEAKY_SLOPE = 0.2
BN_EPS = 0.8  # nn.BatchNorm1d(num_features, 0.8): the positional 0.8 lands on eps
HIDDEN = (128, 256, 512, 1024)


def _bn_lrelu(h, gamma, beta):
    """Training-mode BatchNorm1d (two-pass stats, biased var) + LeakyReLU(0.2)."""
    mean = jnp.mean(h, axis=0, keepdims=True)
    var = jnp.mean((h - mean) * (h - mean), axis=0, keepdims=True)
    y = (h - mean) * jax.lax.rsqrt(var + BN_EPS) * gamma + beta
    return jnp.where(y > 0, y, LEAKY_SLOPE * y)


def generator_kernel(noise_ref, w1_ref, w2_ref, w3_ref, w4_ref, w5_ref, p_ref,
                     out_ref):
    """Whole-batch MLP forward. p_ref packs [g1|be1|g2|be2|g3|be3|g4|be4|b5pad]."""
    h = noise_ref[...].astype(jnp.bfloat16)

    off = 0
    for w_ref in (w1_ref, w2_ref, w3_ref, w4_ref):
        n = w_ref.shape[1]
        h = jnp.dot(h, w_ref[...], preferred_element_type=jnp.float32)
        gamma = p_ref[:, pl.ds(off, n)]
        beta = p_ref[:, pl.ds(off + n, n)]
        off += 2 * n
        h = _bn_lrelu(h, gamma, beta).astype(jnp.bfloat16)

    out_pad = w5_ref.shape[1]
    b5 = p_ref[:, pl.ds(off, out_pad)]
    y = jnp.dot(h, w5_ref[...], preferred_element_type=jnp.float32) + b5
    out_ref[...] = jnp.tanh(y)


def init_params(key, noise_dim, out_dim):
    """Deterministic init mimicking PyTorch nn.Linear / nn.BatchNorm1d defaults.

    Weights are stored in bfloat16 (MXU-native, halves weight DMA).  The Linear
    biases of the four pre-BN layers are omitted (exact under training-mode BN).
    All small per-feature params are packed into one (1, 2*sum(HIDDEN)+out_dim)
    f32 buffer laid out as [g1|be1|g2|be2|g3|be3|g4|be4|b5].
    """
    dims = (noise_dim,) + HIDDEN + (out_dim,)
    weights = []
    small = []
    for i in range(5):
        fan_in, fan_out = dims[i], dims[i + 1]
        key, kw, kb = jax.random.split(key, 3)
        bound = float(fan_in) ** -0.5
        w = jax.random.uniform(kw, (fan_in, fan_out), jnp.float32, -bound, bound)
        weights.append(w.astype(jnp.bfloat16))
        if i < 4:
            small.append(jnp.ones((1, fan_out), jnp.float32))    # BN gamma default
            small.append(jnp.zeros((1, fan_out), jnp.float32))   # BN beta default
        else:
            small.append(
                jax.random.uniform(kb, (1, fan_out), jnp.float32, -bound, bound))
    packed = jnp.concatenate(small, axis=1)   # (1, 2*sum(HIDDEN) + out_dim)
    return tuple(weights) + (packed,)


def _unpack_small(packed, out_dim):
    gammas, betas = [], []
    off = 0
    for n in HIDDEN:
        gammas.append(packed[:, off:off + n]); off += n
        betas.append(packed[:, off:off + n]); off += n
    b5 = packed[:, off:off + out_dim]
    return gammas, betas, b5


def _physical_vmem_bytes():
    try:
        return int(pltpu.get_tpu_info().vmem_capacity_bytes)
    except Exception:
        return 64 << 20   # conservative (v7x) fallback


@functools.partial(jax.jit, static_argnames=("img_dim",))
def generator_forward(noise, params, img_dim):
    w1, w2, w3, w4, w5, packed = params
    batch, noise_dim = noise.shape
    out_dim = int(img_dim[0] * img_dim[1] * img_dim[2])

    # Pad the layer-1 contraction dim to a multiple of 128 lanes (exact: zeros).
    k_pad = -(-noise_dim // 128) * 128
    if noise_dim != k_pad:
        noise = jnp.pad(noise, ((0, 0), (0, k_pad - noise_dim)))
        w1 = jnp.pad(w1, ((0, k_pad - noise_dim), (0, 0)))

    # Lane-dense output: pad out_dim (and w5 / b5 columns) to a multiple of 128.
    out_pad = -(-out_dim // 128) * 128
    if out_dim != out_pad:
        w5 = jnp.pad(w5, ((0, 0), (0, out_pad - out_dim)))
        packed = jnp.pad(packed, ((0, 0), (0, out_pad - out_dim)))  # b5 is the tail

    def _nbytes(a):
        return int(a.size) * int(a.dtype.itemsize)

    inputs = (noise, w1, w2, w3, w4, w5, packed)
    in_bytes = sum(_nbytes(a) for a in inputs)
    out_bytes = batch * out_pad * 4
    act_bytes = batch * (k_pad + sum(HIDDEN) + out_pad) * 4
    vmem_limit = int(min(_physical_vmem_bytes(),
                         4 * (in_bytes + out_bytes + act_bytes) + (4 << 20)))

    dims = (k_pad,) + HIDDEN + (out_pad,)
    flops = 2 * batch * sum(a * b for a, b in zip(dims[:-1], dims[1:]))
    cost = pl.CostEstimate(
        flops=flops,
        transcendentals=batch * out_pad + sum(HIDDEN),
        bytes_accessed=in_bytes + out_bytes,
    )

    _VMEM = pl.BlockSpec(memory_space=pltpu.MemorySpace.VMEM)

    flat = pl.pallas_call(
        generator_kernel,
        out_shape=jax.ShapeDtypeStruct((batch, out_pad), jnp.float32),
        in_specs=[_VMEM] * 7,
        out_specs=_VMEM,
        compiler_params=pltpu.CompilerParams(vmem_limit_bytes=vmem_limit),
        cost_estimate=cost,
    )(noise, w1, w2, w3, w4, w5, packed)

    if out_dim != out_pad:
        flat = flat[:, :out_dim]
    # .contiguous().view(batch, *img_dim)
    return flat.reshape((batch,) + tuple(img_dim))


def _mirror_forward(noise, params, img_dim):
    """Pure-JAX mirror of the kernel numerics (bf16 matmul operands, 2-pass BN)."""
    w1, w2, w3, w4, w5, packed = params
    out_dim = int(img_dim[0] * img_dim[1] * img_dim[2])
    gammas, betas, b5 = _unpack_small(packed, out_dim)
    h = noise.astype(jnp.bfloat16)
    for w, g, b in zip((w1, w2, w3, w4), gammas, betas):
        h = jnp.dot(h, w, preferred_element_type=jnp.float32)
        h = _bn_lrelu(h, g, b).astype(jnp.bfloat16)
    y = jnp.dot(h, w5, preferred_element_type=jnp.float32) + b5
    return jnp.tanh(y).reshape((noise.shape[0],) + tuple(img_dim))


def _reference_f32(noise, params, img_dim):
    """Faithful f32 reference (f32 matmuls, two-pass BatchNorm)."""
    w1, w2, w3, w4, w5, packed = params
    out_dim = int(img_dim[0] * img_dim[1] * img_dim[2])
    gammas, betas, b5 = _unpack_small(packed, out_dim)
    h = noise
    for w, g, b in zip((w1, w2, w3, w4), gammas, betas):
        h = _bn_lrelu(h @ w.astype(jnp.float32), g, b)
    y = h @ w5.astype(jnp.float32) + b5
    return jnp.tanh(y).reshape((noise.shape[0],) + tuple(img_dim))


if __name__ == "__main__":
    noise_dim = 32
    img_dim = (1, 16, 16)   # prod = 256 (already lane-aligned; generic dims get padded)
    batch_size = 16         # multiple of 16 -> fully packed bf16 sublane tiles

    key = jax.random.PRNGKey(0)
    key, knoise, kparams = jax.random.split(key, 3)

    noise = jax.random.normal(knoise, (batch_size, noise_dim), jnp.float32)
    out_dim = int(img_dim[0] * img_dim[1] * img_dim[2])
    params = init_params(kparams, noise_dim, out_dim)

    out = jax.block_until_ready(generator_forward(noise, params, img_dim))
    assert out.shape == (batch_size,) + img_dim

    # Primary check: exact mirror of the kernel's math.
    mirror = _mirror_forward(noise, params, img_dim)
    err_m = float(jnp.max(jnp.abs(out - mirror)))
    assert err_m < 1e-2, f"mirror mismatch {err_m}"

    # Secondary check vs. a full-f32 two-pass-BN reference (bf16 rounding budget).
    ref = _reference_f32(noise, params, img_dim)
    err_r = float(jnp.max(jnp.abs(out - ref)))
    assert err_r < 5e-2, f"f32 reference mismatch {err_r}"

    print("KERNEL_OK")
</pallas_src>

<mosaic_0001>
module attributes {stable_mosaic.version = 11 : i64} {
  func.func @generator_kernel(%arg0: memref<16x128xf32, #tpu.memory_space<vmem>>, %arg1: memref<128x128xbf16, #tpu.memory_space<vmem>>, %arg2: memref<128x256xbf16, #tpu.memory_space<vmem>>, %arg3: memref<256x512xbf16, #tpu.memory_space<vmem>>, %arg4: memref<512x1024xbf16, #tpu.memory_space<vmem>>, %arg5: memref<1024x256xbf16, #tpu.memory_space<vmem>>, %arg6: memref<1x4096xf32, #tpu.memory_space<vmem>>, %arg7: memref<16x256xf32, #tpu.memory_space<vmem>>) attributes {dimension_semantics = [], scalar_prefetch = 0 : i64, scratch_operands = 0 : i64, tpu.core_type = #tpu.core_type<tc>} {
    %c0 = arith.constant 0 : index
    %c0_0 = arith.constant 0 : index
    %0 = vector.load %arg0[%c0, %c0_0] : memref<16x128xf32, #tpu.memory_space<vmem>>, vector<16x128xf32>
    %1 = arith.truncf %0 : vector<16x128xf32> to vector<16x128xbf16>
    %c0_1 = arith.constant 0 : index
    %c0_2 = arith.constant 0 : index
    %2 = vector.load %arg1[%c0_1, %c0_2] : memref<128x128xbf16, #tpu.memory_space<vmem>>, vector<128x128xbf16>
    %cst = arith.constant dense<0.000000e+00> : vector<16x128xf32>
    %3 = tpu.matmul %1, %2, %cst {dimension_numbers = #tpu.dot_dimension_numbers<[1], [0], [0], [1], [0, 0, 1, 1], [], []>} : vector<16x128xbf16>, vector<128x128xbf16>, vector<16x128xf32> -> vector<16x128xf32>
    %c0_3 = arith.constant 0 : index
    %c0_4 = arith.constant 0 : index
    %4 = vector.load %arg6[%c0_3, %c0_4] : memref<1x4096xf32, #tpu.memory_space<vmem>>, vector<1x128xf32>
    %c0_5 = arith.constant 0 : index
    %c128 = arith.constant 128 : index
    %5 = vector.load %arg6[%c0_5, %c128] : memref<1x4096xf32, #tpu.memory_space<vmem>>, vector<1x128xf32>
    %cst_6 = arith.constant dense<0.000000e+00> : vector<128xf32>
    %6 = vector.multi_reduction <add>, %3, %cst_6 [0] : vector<16x128xf32> to vector<128xf32>
    %7 = vector.shape_cast %6 : vector<128xf32> to vector<1x128xf32>
    %cst_7 = arith.constant 1.600000e+01 : f32
    %8 = vector.broadcast %cst_7 : f32 to vector<1x128xf32>
    %9 = arith.divf %7, %8 : vector<1x128xf32>
    %10 = vector.broadcast %9 : vector<1x128xf32> to vector<16x128xf32>
    %11 = arith.subf %3, %10 : vector<16x128xf32>
    %12 = vector.broadcast %9 : vector<1x128xf32> to vector<16x128xf32>
    %13 = arith.subf %3, %12 : vector<16x128xf32>
    %14 = arith.mulf %11, %13 : vector<16x128xf32>
    %cst_8 = arith.constant dense<0.000000e+00> : vector<128xf32>
    %15 = vector.multi_reduction <add>, %14, %cst_8 [0] : vector<16x128xf32> to vector<128xf32>
    %16 = vector.shape_cast %15 : vector<128xf32> to vector<1x128xf32>
    %cst_9 = arith.constant 1.600000e+01 : f32
    %17 = vector.broadcast %cst_9 : f32 to vector<1x128xf32>
    %18 = arith.divf %16, %17 : vector<1x128xf32>
    %19 = vector.broadcast %9 : vector<1x128xf32> to vector<16x128xf32>
    %20 = arith.subf %3, %19 : vector<16x128xf32>
    %cst_10 = arith.constant 8.000000e-01 : f32
    %21 = vector.broadcast %cst_10 : f32 to vector<1x128xf32>
    %22 = arith.addf %18, %21 : vector<1x128xf32>
    %23 = math.rsqrt %22 : vector<1x128xf32>
    %24 = vector.broadcast %23 : vector<1x128xf32> to vector<16x128xf32>
    %25 = arith.mulf %20, %24 : vector<16x128xf32>
    %26 = vector.broadcast %4 : vector<1x128xf32> to vector<16x128xf32>
    %27 = arith.mulf %25, %26 : vector<16x128xf32>
    %28 = vector.broadcast %5 : vector<1x128xf32> to vector<16x128xf32>
    %29 = arith.addf %27, %28 : vector<16x128xf32>
    %cst_11 = arith.constant 0.000000e+00 : f32
    %30 = vector.broadcast %cst_11 : f32 to vector<16x128xf32>
    %31 = arith.cmpf ogt, %29, %30 : vector<16x128xf32>
    %cst_12 = arith.constant 2.000000e-01 : f32
    %32 = vector.broadcast %cst_12 : f32 to vector<16x128xf32>
    %33 = arith.mulf %32, %29 : vector<16x128xf32>
    %34 = arith.select %31, %29, %33 : vector<16x128xi1>, vector<16x128xf32>
    %35 = arith.truncf %34 : vector<16x128xf32> to vector<16x128xbf16>
    %c0_13 = arith.constant 0 : index
    %c0_14 = arith.constant 0 : index
    %36 = vector.load %arg2[%c0_13, %c0_14] : memref<128x256xbf16, #tpu.memory_space<vmem>>, vector<128x256xbf16>
    %cst_15 = arith.constant dense<0.000000e+00> : vector<16x256xf32>
    %37 = tpu.matmul %35, %36, %cst_15 {dimension_numbers = #tpu.dot_dimension_numbers<[1], [0], [0], [1], [0, 0, 1, 1], [], []>} : vector<16x128xbf16>, vector<128x256xbf16>, vector<16x256xf32> -> vector<16x256xf32>
    %c0_16 = arith.constant 0 : index
    %c256 = arith.constant 256 : index
    %38 = vector.load %arg6[%c0_16, %c256] : memref<1x4096xf32, #tpu.memory_space<vmem>>, vector<1x256xf32>
    %c0_17 = arith.constant 0 : index
    %c512 = arith.constant 512 : index
    %39 = vector.load %arg6[%c0_17, %c512] : memref<1x4096xf32, #tpu.memory_space<vmem>>, vector<1x256xf32>
    %cst_18 = arith.constant dense<0.000000e+00> : vector<256xf32>
    %40 = vector.multi_reduction <add>, %37, %cst_18 [0] : vector<16x256xf32> to vector<256xf32>
    %41 = vector.shape_cast %40 : vector<256xf32> to vector<1x256xf32>
    %cst_19 = arith.constant 1.600000e+01 : f32
    %42 = vector.broadcast %cst_19 : f32 to vector<1x256xf32>
    %43 = arith.divf %41, %42 : vector<1x256xf32>
    %44 = vector.broadcast %43 : vector<1x256xf32> to vector<16x256xf32>
    %45 = arith.subf %37, %44 : vector<16x256xf32>
    %46 = vector.broadcast %43 : vector<1x256xf32> to vector<16x256xf32>
    %47 = arith.subf %37, %46 : vector<16x256xf32>
    %48 = arith.mulf %45, %47 : vector<16x256xf32>
    %cst_20 = arith.constant dense<0.000000e+00> : vector<256xf32>
    %49 = vector.multi_reduction <add>, %48, %cst_20 [0] : vector<16x256xf32> to vector<256xf32>
    %50 = vector.shape_cast %49 : vector<256xf32> to vector<1x256xf32>
    %cst_21 = arith.constant 1.600000e+01 : f32
    %51 = vector.broadcast %cst_21 : f32 to vector<1x256xf32>
    %52 = arith.divf %50, %51 : vector<1x256xf32>
    %53 = vector.broadcast %43 : vector<1x256xf32> to vector<16x256xf32>
    %54 = arith.subf %37, %53 : vector<16x256xf32>
    %cst_22 = arith.constant 8.000000e-01 : f32
    %55 = vector.broadcast %cst_22 : f32 to vector<1x256xf32>
    %56 = arith.addf %52, %55 : vector<1x256xf32>
    %57 = math.rsqrt %56 : vector<1x256xf32>
    %58 = vector.broadcast %57 : vector<1x256xf32> to vector<16x256xf32>
    %59 = arith.mulf %54, %58 : vector<16x256xf32>
    %60 = vector.broadcast %38 : vector<1x256xf32> to vector<16x256xf32>
    %61 = arith.mulf %59, %60 : vector<16x256xf32>
    %62 = vector.broadcast %39 : vector<1x256xf32> to vector<16x256xf32>
    %63 = arith.addf %61, %62 : vector<16x256xf32>
    %cst_23 = arith.constant 0.000000e+00 : f32
    %64 = vector.broadcast %cst_23 : f32 to vector<16x256xf32>
    %65 = arith.cmpf ogt, %63, %64 : vector<16x256xf32>
    %cst_24 = arith.constant 2.000000e-01 : f32
    %66 = vector.broadcast %cst_24 : f32 to vector<16x256xf32>
    %67 = arith.mulf %66, %63 : vector<16x256xf32>
    %68 = arith.select %65, %63, %67 : vector<16x256xi1>, vector<16x256xf32>
    %69 = arith.truncf %68 : vector<16x256xf32> to vector<16x256xbf16>
    %c0_25 = arith.constant 0 : index
    %c0_26 = arith.constant 0 : index
    %70 = vector.load %arg3[%c0_25, %c0_26] : memref<256x512xbf16, #tpu.memory_space<vmem>>, vector<256x512xbf16>
    %cst_27 = arith.constant dense<0.000000e+00> : vector<16x512xf32>
    %71 = tpu.matmul %69, %70, %cst_27 {dimension_numbers = #tpu.dot_dimension_numbers<[1], [0], [0], [1], [0, 0, 1, 1], [], []>} : vector<16x256xbf16>, vector<256x512xbf16>, vector<16x512xf32> -> vector<16x512xf32>
    %c0_28 = arith.constant 0 : index
    %c768 = arith.constant 768 : index
    %72 = vector.load %arg6[%c0_28, %c768] : memref<1x4096xf32, #tpu.memory_space<vmem>>, vector<1x512xf32>
    %c0_29 = arith.constant 0 : index
    %c1280 = arith.constant 1280 : index
    %73 = vector.load %arg6[%c0_29, %c1280] : memref<1x4096xf32, #tpu.memory_space<vmem>>, vector<1x512xf32>
    %cst_30 = arith.constant dense<0.000000e+00> : vector<512xf32>
    %74 = vector.multi_reduction <add>, %71, %cst_30 [0] : vector<16x512xf32> to vector<512xf32>
    %75 = vector.shape_cast %74 : vector<512xf32> to vector<1x512xf32>
    %cst_31 = arith.constant 1.600000e+01 : f32
    %76 = vector.broadcast %cst_31 : f32 to vector<1x512xf32>
    %77 = arith.divf %75, %76 : vector<1x512xf32>
    %78 = vector.broadcast %77 : vector<1x512xf32> to vector<16x512xf32>
    %79 = arith.subf %71, %78 : vector<16x512xf32>
    %80 = vector.broadcast %77 : vector<1x512xf32> to vector<16x512xf32>
    %81 = arith.subf %71, %80 : vector<16x512xf32>
    %82 = arith.mulf %79, %81 : vector<16x512xf32>
    %cst_32 = arith.constant dense<0.000000e+00> : vector<512xf32>
    %83 = vector.multi_reduction <add>, %82, %cst_32 [0] : vector<16x512xf32> to vector<512xf32>
    %84 = vector.shape_cast %83 : vector<512xf32> to vector<1x512xf32>
    %cst_33 = arith.constant 1.600000e+01 : f32
    %85 = vector.broadcast %cst_33 : f32 to vector<1x512xf32>
    %86 = arith.divf %84, %85 : vector<1x512xf32>
    %87 = vector.broadcast %77 : vector<1x512xf32> to vector<16x512xf32>
    %88 = arith.subf %71, %87 : vector<16x512xf32>
    %cst_34 = arith.constant 8.000000e-01 : f32
    %89 = vector.broadcast %cst_34 : f32 to vector<1x512xf32>
    %90 = arith.addf %86, %89 : vector<1x512xf32>
    %91 = math.rsqrt %90 : vector<1x512xf32>
    %92 = vector.broadcast %91 : vector<1x512xf32> to vector<16x512xf32>
    %93 = arith.mulf %88, %92 : vector<16x512xf32>
    %94 = vector.broadcast %72 : vector<1x512xf32> to vector<16x512xf32>
    %95 = arith.mulf %93, %94 : vector<16x512xf32>
    %96 = vector.broadcast %73 : vector<1x512xf32> to vector<16x512xf32>
    %97 = arith.addf %95, %96 : vector<16x512xf32>
    %cst_35 = arith.constant 0.000000e+00 : f32
    %98 = vector.broadcast %cst_35 : f32 to vector<16x512xf32>
    %99 = arith.cmpf ogt, %97, %98 : vector<16x512xf32>
    %cst_36 = arith.constant 2.000000e-01 : f32
    %100 = vector.broadcast %cst_36 : f32 to vector<16x512xf32>
    %101 = arith.mulf %100, %97 : vector<16x512xf32>
    %102 = arith.select %99, %97, %101 : vector<16x512xi1>, vector<16x512xf32>
    %103 = arith.truncf %102 : vector<16x512xf32> to vector<16x512xbf16>
    %c0_37 = arith.constant 0 : index
    %c0_38 = arith.constant 0 : index
    %104 = vector.load %arg4[%c0_37, %c0_38] : memref<512x1024xbf16, #tpu.memory_space<vmem>>, vector<512x1024xbf16>
    %cst_39 = arith.constant dense<0.000000e+00> : vector<16x1024xf32>
    %105 = tpu.matmul %103, %104, %cst_39 {dimension_numbers = #tpu.dot_dimension_numbers<[1], [0], [0], [1], [0, 0, 1, 1], [], []>} : vector<16x512xbf16>, vector<512x1024xbf16>, vector<16x1024xf32> -> vector<16x1024xf32>
    %c0_40 = arith.constant 0 : index
    %c1792 = arith.constant 1792 : index
    %106 = vector.load %arg6[%c0_40, %c1792] : memref<1x4096xf32, #tpu.memory_space<vmem>>, vector<1x1024xf32>
    %c0_41 = arith.constant 0 : index
    %c2816 = arith.constant 2816 : index
    %107 = vector.load %arg6[%c0_41, %c2816] : memref<1x4096xf32, #tpu.memory_space<vmem>>, vector<1x1024xf32>
    %cst_42 = arith.constant dense<0.000000e+00> : vector<1024xf32>
    %108 = vector.multi_reduction <add>, %105, %cst_42 [0] : vector<16x1024xf32> to vector<1024xf32>
    %109 = vector.shape_cast %108 : vector<1024xf32> to vector<1x1024xf32>
    %cst_43 = arith.constant 1.600000e+01 : f32
    %110 = vector.broadcast %cst_43 : f32 to vector<1x1024xf32>
    %111 = arith.divf %109, %110 : vector<1x1024xf32>
    %112 = vector.broadcast %111 : vector<1x1024xf32> to vector<16x1024xf32>
    %113 = arith.subf %105, %112 : vector<16x1024xf32>
    %114 = vector.broadcast %111 : vector<1x1024xf32> to vector<16x1024xf32>
    %115 = arith.subf %105, %114 : vector<16x1024xf32>
    %116 = arith.mulf %113, %115 : vector<16x1024xf32>
    %cst_44 = arith.constant dense<0.000000e+00> : vector<1024xf32>
    %117 = vector.multi_reduction <add>, %116, %cst_44 [0] : vector<16x1024xf32> to vector<1024xf32>
    %118 = vector.shape_cast %117 : vector<1024xf32> to vector<1x1024xf32>
    %cst_45 = arith.constant 1.600000e+01 : f32
    %119 = vector.broadcast %cst_45 : f32 to vector<1x1024xf32>
    %120 = arith.divf %118, %119 : vector<1x1024xf32>
    %121 = vector.broadcast %111 : vector<1x1024xf32> to vector<16x1024xf32>
    %122 = arith.subf %105, %121 : vector<16x1024xf32>
    %cst_46 = arith.constant 8.000000e-01 : f32
    %123 = vector.broadcast %cst_46 : f32 to vector<1x1024xf32>
    %124 = arith.addf %120, %123 : vector<1x1024xf32>
    %125 = math.rsqrt %124 : vector<1x1024xf32>
    %126 = vector.broadcast %125 : vector<1x1024xf32> to vector<16x1024xf32>
    %127 = arith.mulf %122, %126 : vector<16x1024xf32>
    %128 = vector.broadcast %106 : vector<1x1024xf32> to vector<16x1024xf32>
    %129 = arith.mulf %127, %128 : vector<16x1024xf32>
    %130 = vector.broadcast %107 : vector<1x1024xf32> to vector<16x1024xf32>
    %131 = arith.addf %129, %130 : vector<16x1024xf32>
    %cst_47 = arith.constant 0.000000e+00 : f32
    %132 = vector.broadcast %cst_47 : f32 to vector<16x1024xf32>
    %133 = arith.cmpf ogt, %131, %132 : vector<16x1024xf32>
    %cst_48 = arith.constant 2.000000e-01 : f32
    %134 = vector.broadcast %cst_48 : f32 to vector<16x1024xf32>
    %135 = arith.mulf %134, %131 : vector<16x1024xf32>
    %136 = arith.select %133, %131, %135 : vector<16x1024xi1>, vector<16x1024xf32>
    %137 = arith.truncf %136 : vector<16x1024xf32> to vector<16x1024xbf16>
    %c0_49 = arith.constant 0 : index
    %c3840 = arith.constant 3840 : index
    %138 = vector.load %arg6[%c0_49, %c3840] : memref<1x4096xf32, #tpu.memory_space<vmem>>, vector<1x256xf32>
    %c0_50 = arith.constant 0 : index
    %c0_51 = arith.constant 0 : index
    %139 = vector.load %arg5[%c0_50, %c0_51] : memref<1024x256xbf16, #tpu.memory_space<vmem>>, vector<1024x256xbf16>
    %cst_52 = arith.constant dense<0.000000e+00> : vector<16x256xf32>
    %140 = tpu.matmul %137, %139, %cst_52 {dimension_numbers = #tpu.dot_dimension_numbers<[1], [0], [0], [1], [0, 0, 1, 1], [], []>} : vector<16x1024xbf16>, vector<1024x256xbf16>, vector<16x256xf32> -> vector<16x256xf32>
    %141 = vector.broadcast %138 : vector<1x256xf32> to vector<16x256xf32>
    %142 = arith.addf %140, %141 : vector<16x256xf32>
    %143 = math.tanh %142 : vector<16x256xf32>
    %c0_53 = arith.constant 0 : index
    %c0_54 = arith.constant 0 : index
    %144 = vector.load %arg7[%c0_53, %c0_54] : memref<16x256xf32, #tpu.memory_space<vmem>>, vector<16x256xf32>
    tpu.vector_store %arg7[%c0_53, %c0_54], %143 {strides = array<i32>} : memref<16x256xf32, #tpu.memory_space<vmem>>, vector<16x256xf32>,
    return
  }
}

</mosaic_0001>

<bundles_post_ra>
// kernel: generator_forward.1
= control target key start
LH: loop header
LB: loop body
LE: loop exit
PB: predicated region body
PF: predicated region fallthrough
CT: control target
= control target key end

     0   :  { %12 = vsyncpa [#allocation3], 0  ;;  %s7679_s0 = inlined_call_operand.vmem [shape: f32[16,128], index: 0, kind: input, shape index: {}]   ;;  %s7680_s1 = inlined_call_operand.vmem [shape: bf16[128,128], index: 1, kind: input, shape index: {}]   ;;  %s7681_s2 = inlined_call_operand.hbm [shape: bf16[128,256], index: 2, kind: input, shape index: {}]   ;;  %s7682_s3 = inlined_call_operand.hbm [shape: bf16[256,512], index: 3, kind: input, shape index: {}]   ;;  %s7683_s4 = inlined_call_operand.hbm [shape: bf16[512,1024], index: 4, kind: input, shape index: {}]   ;;  %s7684_s5 = inlined_call_operand.hbm [shape: bf16[1024,256], index: 5, kind: input, shape index: {}]   ;;  %s7685_s6 = inlined_call_operand.vmem [shape: f32[1,4096], index: 6, kind: input, shape index: {}]   ;;  %s7686_s7 = inlined_call_operand.vmem [shape: f32[16,256], index: 7, kind: output, shape index: {}]  }
   0x1   :  { %13 = vsyncpa [#allocation5], 0  ;;  %s36_s26 = sshll.u32 %s7682_s3, 4  ;;  %s37_s26 = int_to_ptr.hbm [resolvable:$true] %s36_s26 }
   0x2   :  { %14 = vsyncpa [#allocation8], 0  ;;  %s7047_s27 = smov [#allocation4]   ;;  %s23_s8 = sshll.u32 %s7681_s2, 4  ;;  %s24_s8 = int_to_ptr.hbm [resolvable:$true] %s23_s8 }
   0x3   :  { %s38_s28 = sshll.u32 %s7047_s27, 4  ;;  %s7048_s9 = smov 256   ;;  %s39_s28 = int_to_ptr.vmem [resolvable:$true] %s38_s28 }
   0x4   :  { %s7049_s10 = smov 16   ;;  %s7050_s11 = smov [#allocation2]  }
   0x5   :  { %44 = dma.hbm_to_vmem [thread:$0]  %s37_s26, 8192, %s39_s28, [#allocation5], %s7048_s9, %s7048_s9, %s7049_s10  }
   0x6   :  { %s25_s12 = sshll.u32 %s7050_s11, 4  ;;  %s7051_s13 = smov 128   ;;  %s26_s12 = int_to_ptr.vmem [resolvable:$true] %s25_s12 }
   0x7   :  { %s7052_s14 = smov 8   ;;  %s49_s16 = sshll.u32 %s7683_s4, 4  ;;  %s50_s16 = int_to_ptr.hbm [resolvable:$true] %s49_s16 }
   0x8   :  { %31 = dma.hbm_to_vmem [thread:$0]  %s24_s8, 2048, %s26_s12, [#allocation3], %s7051_s13, %s7051_s13, %s7052_s14  }
   0x9   :  { %s7053_s17 = smov [#allocation6]   ;;  %s62_s20 = sshll.u32 %s7684_s5, 4  ;;  %s63_s20 = int_to_ptr.hbm [resolvable:$true] %s62_s20 }
   0xa   :  { %s51_s18 = sshll.u32 %s7053_s17, 4  ;;  %s7054_s21 = smov 512   ;;  %s52_s18 = int_to_ptr.vmem [resolvable:$true] %s51_s18 }
   0xb   :  { %s7055_s22 = smov 32   ;;  %s7056_s23 = smov [#allocation7]  }
   0xc   :  { %57 = dma.hbm_to_vmem [thread:$0]  %s50_s16, 32768, %s52_s18, [#allocation5], %s7054_s21, %s7054_s21, %s7055_s22  }
   0xd   :  { %s64_s24 = sshll.u32 %s7056_s23, 4  ;;  %s65_s24 = int_to_ptr.vmem [resolvable:$true] %s64_s24 }
   0xe   :  { %70 = dma.hbm_to_vmem [thread:$0]  %s63_s20, 16384, %s65_s24, [#allocation8], %s7051_s13, %s7051_s13, %s7052_s14  }
   0xf   :  { %7041 = dma.done.wait [#allocation3], 2048  }
  0x10   :  { %7042 = vsyncadd [#allocation3], 4294965248 }
  0x11   :  { %7043 = dma.done.wait [#allocation5], 40960  }
  0x12   :  { %7044 = vsyncadd [#allocation5], 4294926336 }
  0x13   :  { %7045 = dma.done.wait [#allocation8], 16384  }
  0x14   :  { %7046 = vsyncadd [#allocation8], 4294950912  ;;  %v6425_v0 = vld [vmem:[%s7680_s1 + $0x38] sm:$0xff]  ;;  %v6424_v1 = vld [vmem:[%s7680_s1 + $0x30] sm:$0xff]  ;;  %v7057_v11 = vmov 16.0  }
  0x15   :  { %156 = vmatpush.bf16.msra.mxu0 %v6425_v0  ;;  %v6423_v2 = vld [vmem:[%s7680_s1 + $0x28] sm:$0xff]  ;;  %v6422_v3 = vld [vmem:[%s7680_s1 + $0x20] sm:$0xff]  ;;  %v6421_v4 = vld [vmem:[%s7680_s1 + $0x18] sm:$0xff]  ;;  %6903 = vrcp.f32 %v7057_v11 }
  0x16   :  { %v6420_v5 = vld [vmem:[%s7680_s1 + $0x10] sm:$0xff]  ;;  %v6419_v6 = vld [vmem:[%s7680_s1 + $0x8] sm:$0xff]  ;;  %v6418_v7 = vld [vmem:[%s7680_s1] sm:$0xff] }
  0x17   :  { %v89_v8 = vld [vmem:[%s7679_s0] sm:$0xff]  ;;  %v90_v9 = vld [vmem:[%s7679_s0 + $0x8] sm:$0xff]  ;;  %v4620_v18 = vld [vmem:[#allocation2 + $0x70] sm:$0xf] }
  0x18   :  { %v91_v10 = vpack.c.bf16 %v90_v9, %v89_v8  ;;  %v6441_v19 = vld [vmem:[#allocation2 + $0x74] sm:$0xf0]  ;;  %v6440_v20 = vld [vmem:[#allocation2 + $0x74] sm:$0xf]  ;;  %v4622_v23 = vld [vmem:[#allocation2 + $0x78] sm:$0xf0] }
  0x19   :  { %157 = vmatpush.bf16.msra.mxu0 %v6424_v1  ;;  %v4621_v22 = vor.u32 %v6441_v19, %v4620_v18  ;;  %v4625_v25 = vor.u32 %v6440_v20, %v4622_v23  ;;  %v4612_v27 = vld [vmem:[#allocation2 + $0x60] sm:$0xf]  ;;  %v6439_v28 = vld [vmem:[#allocation2 + $0x64] sm:$0xf0]  ;;  %v6438_v29 = vld [vmem:[#allocation2 + $0x64] sm:$0xf] }
  0x1a   :  { %v4613_v31 = vor.u32 %v6439_v28, %v4612_v27  ;;  %v4614_v32 = vld [vmem:[#allocation2 + $0x68] sm:$0xf0]  ;;  %v4604_v36 = vld [vmem:[#allocation2 + $0x50] sm:$0xf]  ;;  %v6437_v37 = vld [vmem:[#allocation2 + $0x54] sm:$0xf0] }
  0x1b   :  { %v6904_v13 = vpop.eup %6903  ;;  %325 = vmatpush.bf16.msra.mxu1 %v4621_v22  ;;  %339 = vmatpush.bf16.msra.mxu2 %v4625_v25  ;;  %v4617_v34 = vor.u32 %v6438_v29, %v4614_v32  ;;  %v6436_v38 = vld [vmem:[#allocation2 + $0x54] sm:$0xf]  ;;  %v4605_v40 = vor.u32 %v6437_v37, %v4604_v36  ;;  %v4606_v41 = vld [vmem:[#allocation2 + $0x58] sm:$0xf0]  ;;  %v4596_v45 = vld [vmem:[#allocation2 + $0x40] sm:$0xf] }
  0x1c   :  { %v180_v14 = vmul.f32 16.0, %v6904_v13  ;;  %vm184_vm0 = vweird.f32 %v6904_v13  ;;  %v4609_v43 = vor.u32 %v6436_v38, %v4606_v41  ;;  %v6435_v46 = vld [vmem:[#allocation2 + $0x44] sm:$0xf0]  ;;  %v6434_v47 = vld [vmem:[#allocation2 + $0x44] sm:$0xf] }
  0x1d   :  { %158 = vmatpush.bf16.msra.mxu0 %v6423_v2  ;;  %v4597_v49 = vor.u32 %v6435_v46, %v4596_v45  ;;  %v4598_v50 = vld [vmem:[#allocation2 + $0x48] sm:$0xf0]  ;;  %v4588_v54 = vld [vmem:[#allocation2 + $0x30] sm:$0xf]  ;;  %v6433_v55 = vld [vmem:[#allocation2 + $0x34] sm:$0xf0] }
  0x1e   :  { %v181_v16 = vsub.f32 1.0, %v180_v14  ;;  %v4601_v51 = vor.u32 %v6434_v47, %v4598_v50  ;;  %v6432_v56 = vld [vmem:[#allocation2 + $0x34] sm:$0xf]  ;;  %v4589_v59 = vor.u32 %v6433_v55, %v4588_v54  ;;  %v4590_v60 = vld [vmem:[#allocation2 + $0x38] sm:$0xf0] }
  0x1f   :  { %326 = vmatpush.bf16.msra.mxu1 %v4613_v31  ;;  %340 = vmatpush.bf16.msra.mxu2 %v4617_v34  ;;  %v4593_v61 = vor.u32 %v6432_v56, %v4590_v60  ;;  %v4580_v63 = vld [vmem:[#allocation2 + $0x20] sm:$0xf]  ;;  %v6431_v0 = vld [vmem:[#allocation2 + $0x24] sm:$0xf0]  ;;  %v6430_v1 = vld [vmem:[#allocation2 + $0x24] sm:$0xf] }
  0x20   :  { %v182_v24 = vmul.f32 %v6904_v13, %v181_v16  ;;  %v6429_v8 = vld [vmem:[#allocation2 + $0x14] sm:$0xf0]  ;;  %v6428_v9 = vld [vmem:[#allocation2 + $0x14] sm:$0xf]  ;;  %v6426_v16 = vld [vmem:[#allocation2 + $0x4] sm:$0xf] }
  0x21   :  { %159 = vmatpush.bf16.msra.mxu0 %v6422_v3  ;;  %v4581_v3 = vor.u32 %v6431_v0, %v4580_v63  ;;  %v6901_v31 = vld [vmem:[%s7685_s6] ss:$0 sm:$0xff]  ;;  %v6472_v47 = vld [vmem:[#allocation4 + $0xec] sm:$0xf0]  ;;  %v4742_v50 = vld [vmem:[#allocation4 + $0xf0] sm:$0xf0] }
  0x22   :  { %v183_v33 = vadd.f32 %v6904_v13, %v182_v24  ;;  %v4740_v46 = vld [vmem:[#allocation4 + $0xe0] sm:$0xf]  ;;  %v6468_v54 = vld [vmem:[#allocation4 + $0xcc] sm:$0xf0]  ;;  %v6466_v55 = vld [vmem:[#allocation4 + $0xc4] sm:$0xf] }
  0x23   :  { %327 = vmatpush.bf16.msra.mxu1 %v4605_v40  ;;  %341 = vmatpush.bf16.msra.mxu2 %v4609_v43  ;;  %v6504_v60 = vld [vmem:[#allocation4 + $0x1ec] sm:$0xf0]  ;;  %v4870_v63 = vld [vmem:[#allocation4 + $0x1f0] sm:$0xf0] }
  0x24   :  { %v7140_v42 = vsel %vm184_vm0, %v6904_v13, %v183_v33  ;;  %v4564_v13 = vld [vmem:[#allocation2] sm:$0xf] }
  0x25   :  { %160 = vmatpush.bf16.msra.mxu0 %v6421_v4  ;;  %v4582_v4 = vld [vmem:[#allocation2 + $0x28] sm:$0xf0] }
  0x27   :  { %328 = vmatpush.bf16.msra.mxu1 %v4597_v49  ;;  %342 = vmatpush.bf16.msra.mxu2 %v4601_v51  ;;  %v4741_v49 = vor.u32 %v6472_v47, %v4740_v46 }
  0x29   :  { %161 = vmatpush.bf16.msra.mxu0 %v6420_v5  ;;  %v4585_v5 = vor.u32 %v6430_v1, %v4582_v4  ;;  %837 = vmatpush.bf16.msra.mxu3 %v4741_v49  ;;  %v4708_v1 = vld [vmem:[#allocation4 + $0xa0] sm:$0xf]  ;;  %v6452_v49 = vld [vmem:[#allocation4 + $0x4c] sm:$0xf0] }
  0x2b   :  { %329 = vmatpush.bf16.msra.mxu1 %v4589_v59  ;;  %343 = vmatpush.bf16.msra.mxu2 %v4593_v61  ;;  %v4868_v59 = vld [vmem:[#allocation4 + $0x1e0] sm:$0xf]  ;;  %v6502_v61 = vld [vmem:[#allocation4 + $0x1e4] sm:$0xf] }
  0x2c   :  { %v4873_v0 = vor.u32 %v6502_v61, %v4870_v63  ;;  %v4806_v61 = vld [vmem:[#allocation4 + $0x170] sm:$0xf0] }
  0x2d   :  { %162 = vmatpush.bf16.msra.mxu0 %v6419_v6 }
  0x2f   :  { %330 = vmatpush.bf16.msra.mxu1 %v4581_v3  ;;  %344 = vmatpush.bf16.msra.mxu2 %v4585_v5  ;;  %v6462_v3 = vld [vmem:[#allocation4 + $0xa4] sm:$0xf] }
  0x31   :  { %163 = vmatpush.bf16.msra.mxu0 %v6418_v7  ;;  %v4572_v7 = vld [vmem:[#allocation2 + $0x10] sm:$0xf] }
  0x32   :  { %v4573_v11 = vor.u32 %v6429_v8, %v4572_v7  ;;  %v4852_v8 = vld [vmem:[#allocation4 + $0x1c0] sm:$0xf] }
  0x34   :  { %164 = vmatmul.bf16.vlgmr.msra.gmra.mxu0 %v91_v10  ;;  %331 = vmatpush.bf16.msra.mxu1 %v4573_v11 }
  0xb1   :  { %v165_v12 = vpop.f32.mrf.mxu0 }
  0xb9   :  { %v167_v15 = vpop.f32.mrf.mxu0 }
  0xba   :  { %v172_v17 = vadd.f32 %v167_v15, %v165_v12 }
  0xbc   :  { %v173_v21 = vrot.slane %v172_v17, 4 }
  0xbe   :  { %v174_v26 = vadd.f32 %v173_v21, %v172_v17  ;;  %v4566_v17 = vld [vmem:[#allocation2 + $0x8] sm:$0xf0] }
  0xbf   :  { %v4569_v20 = vor.u32 %v6426_v16, %v4566_v17  ;;  %v4692_v16 = vld [vmem:[#allocation4 + $0x80] sm:$0xf]  ;;  %v6460_v17 = vld [vmem:[#allocation4 + $0x8c] sm:$0xf0] }
  0xc0   :  { %v175_v30 = vrot.slane %v174_v26, 2 }
  0xc2   :  { %v176_v35 = vadd.f32 %v175_v30, %v174_v26 }
  0xc4   :  { %v177_v39 = vrot.slane %v176_v35, 1 }
  0xc6   :  { %v178_v44 = vadd.f32 %v177_v39, %v176_v35  ;;  %v6902_v35 = vld [vmem:[%s7685_s6 + $0x1] ss:$0 sm:$0xff] }
  0xc8   :  { %v186_v48 = vmul.f32 %v7140_v42, %v178_v44 }
  0xca   :  { %v187_v52 = vsub.f32 %v165_v12, %v186_v48  ;;  %v188_v53 = vsub.f32 %v167_v15, %v186_v48  ;;  %v4574_v12 = vld [vmem:[#allocation2 + $0x18] sm:$0xf0]  ;;  %v6427_v15 = vld [vmem:[#allocation2 + $0x4] sm:$0xf0]  ;;  %v6470_v48 = vld [vmem:[#allocation4 + $0xe4] sm:$0xf] }
  0xcb   :  { %v4577_v14 = vor.u32 %v6428_v9, %v4574_v12  ;;  %v4565_v19 = vor.u32 %v6427_v15, %v4564_v13  ;;  %v4745_v51 = vor.u32 %v6470_v48, %v4742_v50  ;;  %v6500_v9 = vld [vmem:[#allocation4 + $0x1cc] sm:$0xf0]  ;;  %v4854_v13 = vld [vmem:[#allocation4 + $0x1d0] sm:$0xf0]  ;;  %v4660_v48 = vld [vmem:[#allocation4 + $0x40] sm:$0xf] }
  0xcc   :  { %v189_v57 = vmul.f32 %v187_v52, %v187_v52  ;;  %v190_v58 = vmul.f32 %v188_v53, %v188_v53  ;;  %v4853_v12 = vor.u32 %v6500_v9, %v4852_v8  ;;  %v4661_v50 = vor.u32 %v6452_v49, %v4660_v48 }
  0xcd   :  { %345 = vmatpush.bf16.msra.mxu2 %v4577_v14  ;;  %332 = vmatpush.bf16.msra.mxu1 %v4565_v19  ;;  %v4693_v19 = vor.u32 %v6460_v17, %v4692_v16 }
  0xce   :  { %v191_v62 = vadd.f32 %v190_v58, %v189_v57  ;;  %v4726_v57 = vld [vmem:[#allocation4 + $0xd0] sm:$0xf0] }
  0xcf   :  { %v4729_v58 = vor.u32 %v6466_v55, %v4726_v57  ;;  %v4804_v57 = vld [vmem:[#allocation4 + $0x160] sm:$0xf] }
  0xd0   :  { %v192_v2 = vrot.slane %v191_v62, 4 }
  0xd1   :  { %346 = vmatpush.bf16.msra.mxu2 %v4569_v20  ;;  %865 = vmatpush.bf16.msrb.mxu1 %v4745_v51  ;;  %v4694_v20 = vld [vmem:[#allocation4 + $0x90] sm:$0xf0]  ;;  %v6450_v51 = vld [vmem:[#allocation4 + $0x44] sm:$0xf] }
  0xd2   :  { %v193_v6 = vadd.f32 %v192_v2, %v191_v62  ;;  %v4869_v62 = vor.u32 %v6504_v60, %v4868_v59  ;;  %v6464_v2 = vld [vmem:[#allocation4 + $0xac] sm:$0xf0]  ;;  %v6486_v60 = vld [vmem:[#allocation4 + $0x164] sm:$0xf] }
  0xd3   :  { %v4709_v5 = vor.u32 %v6464_v2, %v4708_v1  ;;  %v4644_v1 = vld [vmem:[#allocation4 + $0x20] sm:$0xf]  ;;  %v6448_v2 = vld [vmem:[#allocation4 + $0x2c] sm:$0xf0] }
  0xd4   :  { %v194_v10 = vrot.slane %v193_v6, 2  ;;  %851 = vmatpush.bf16.msrb.mxu0 %v4869_v62 }
  0xd5   :  { %866 = vmatpush.bf16.msrb.mxu1 %v4729_v58  ;;  %879 = vmatpush.bf16.msrb.mxu2 %v4873_v0  ;;  %v6488_v58 = vld [vmem:[#allocation4 + $0x16c] sm:$0xf0]  ;;  %v4809_v0 = vor.u32 %v6486_v60, %v4806_v61  ;;  %v6505_v60 = vld [vmem:[#allocation4 + $0x1f4] sm:$0xf0] }
  0xd6   :  { %v195_v18 = vadd.f32 %v194_v10, %v193_v6  ;;  %v4710_v6 = vld [vmem:[#allocation4 + $0xb0] sm:$0xf0]  ;;  %v6498_v10 = vld [vmem:[#allocation4 + $0x1c4] sm:$0xf]  ;;  %v4805_v59 = vor.u32 %v6488_v58, %v4804_v57 }
  0xd7   :  { %v4713_v7 = vor.u32 %v6462_v3, %v4710_v6  ;;  %v4857_v15 = vor.u32 %v6498_v10, %v4854_v13  ;;  %v4645_v3 = vor.u32 %v6448_v2, %v4644_v1  ;;  %v4646_v6 = vld [vmem:[#allocation4 + $0x30] sm:$0xf0]  ;;  %v4788_v10 = vld [vmem:[#allocation4 + $0x140] sm:$0xf]  ;;  %v6482_v13 = vld [vmem:[#allocation4 + $0x144] sm:$0xf] }
  0xd8   :  { %v196_v21 = vrot.slane %v195_v18, 1  ;;  %852 = vmatpush.bf16.msrb.mxu0 %v4853_v12  ;;  %v6484_v12 = vld [vmem:[#allocation4 + $0x14c] sm:$0xf0]  ;;  %v4716_v1 = vld [vmem:[#allocation4 + $0xa8] sm:$0xf] }
  0xd9   :  { %867 = vmatpush.bf16.msrb.mxu1 %v4713_v7  ;;  %880 = vmatpush.bf16.msrb.mxu2 %v4857_v15  ;;  %v4790_v15 = vld [vmem:[#allocation4 + $0x150] sm:$0xf0] }
  0xda   :  { %v197_v22 = vadd.f32 %v196_v21, %v195_v18  ;;  %v6458_v18 = vld [vmem:[#allocation4 + $0x84] sm:$0xf] }
  0xdc   :  { %v198_v23 = vmul.f32 %v197_v22, %v7140_v42  ;;  %v4697_v22 = vor.u32 %v6458_v18, %v4694_v20  ;;  %v4628_v20 = vld [vmem:[#allocation4] sm:$0xf] }
  0xde   :  { %v199_v24 = vadd.f32 0.8, %v198_v23  ;;  %v4836_v23 = vld [vmem:[#allocation4 + $0x1a0] sm:$0xf]  ;;  %868 = vmatpush.bf16.msrb.mxu1 %v4697_v22 }
  0xe0   :  { %6905 = vrsqrt.f32 %v199_v24  ;;  %vm206_vm2 = vweird.f32 %v199_v24 }
  0xe6   :  { %v6906_v25 = vpop.eup %6905 }
  0xe7   :  { %v201_v26 = vmul.f32 %v6906_v25, %v199_v24  ;;  %vm207_vm1 = vweird.f32 %v6906_v25  ;;  %v6496_v24 = vld [vmem:[#allocation4 + $0x1ac] sm:$0xf0] }
  0xe8   :  { %vm208_vm3 = vmor %vm206_vm2, %vm207_vm1 }
  0xe9   :  { %v202_v27 = vmul.f32 %v6906_v25, %v201_v26  ;;  %v6494_v26 = vld [vmem:[#allocation4 + $0x1a4] sm:$0xf] }
  0xeb   :  { %v203_v28 = vmul.f32 0.5, %v202_v27  ;;  %v4838_v27 = vld [vmem:[#allocation4 + $0x1b0] sm:$0xf0] }
  0xed   :  { %v204_v29 = vsub.f32 1.5, %v203_v28 }
  0xef   :  { %v205_v30 = vmul.f32 %v6906_v25, %v204_v29  ;;  %v4841_v29 = vor.u32 %v6494_v26, %v4838_v27 }
  0xf1   :  { %v209_v32 = vsel %vm208_vm3, %v6906_v25, %v205_v30  ;;  %v4837_v25 = vor.u32 %v6496_v24, %v4836_v23  ;;  %v4676_v30 = vld [vmem:[#allocation4 + $0x60] sm:$0xf]  ;;  %881 = vmatpush.bf16.msrb.mxu2 %v4841_v29  ;;  %v6442_v23 = vld [vmem:[#allocation4 + $0x4] sm:$0xf]  ;;  %v4630_v24 = vld [vmem:[#allocation4 + $0x10] sm:$0xf0] }
  0xf2   :  { %v210_v33 = vmul.f32 %v209_v32, %v187_v52  ;;  %v211_v34 = vmul.f32 %v209_v32, %v188_v53  ;;  %v4724_v53 = vld [vmem:[#allocation4 + $0xc0] sm:$0xf]  ;;  %v6454_v32 = vld [vmem:[#allocation4 + $0x64] sm:$0xf]  ;;  %v6471_v29 = vld [vmem:[#allocation4 + $0xec] sm:$0xf] }
  0xf3   :  { %v4725_v56 = vor.u32 %v6468_v54, %v4724_v53  ;;  %853 = vmatpush.bf16.msrb.mxu0 %v4837_v25  ;;  %v4662_v53 = vld [vmem:[#allocation4 + $0x50] sm:$0xf0]  ;;  %v4748_v25 = vld [vmem:[#allocation4 + $0xe8] sm:$0xf] }
  0xf4   :  { %v216_v36 = vmul.f32 %v6901_v31, %v211_v34  ;;  %v215_v37 = vmul.f32 %v6901_v31, %v210_v33  ;;  %v6456_v31 = vld [vmem:[#allocation4 + $0x6c] sm:$0xf0] }
  0xf5   :  { %838 = vmatpush.bf16.msra.mxu3 %v4725_v56  ;;  %v4677_v34 = vor.u32 %v6456_v31, %v4676_v30  ;;  %v4665_v56 = vor.u32 %v6450_v51, %v4662_v53  ;;  %v4750_v30 = vld [vmem:[#allocation4 + $0xf8] sm:$0xf0]  ;;  %v4756_v51 = vld [vmem:[#allocation4 + $0x100] sm:$0xf] }
  0xf6   :  { %v220_v38 = vadd.f32 %v6902_v35, %v215_v37  ;;  %v221_v39 = vadd.f32 %v6902_v35, %v216_v36  ;;  %v4678_v35 = vld [vmem:[#allocation4 + $0x70] sm:$0xf0] }
  0xf8   :  { %vm222_vm4 = vcmp.gt.f32.partialorder %v220_v38, 0.0  ;;  %vm223_vm5 = vcmp.gt.f32.partialorder %v221_v39, 0.0  ;;  %v224_v40 = vmul.f32 0.2, %v220_v38  ;;  %v225_v41 = vmul.f32 0.2, %v221_v39 }
  0xf9   :  { %839 = vmatpush.bf16.msra.mxu3 %v4709_v5  ;;  %v6446_v5 = vld [vmem:[#allocation4 + $0x24] sm:$0xf] }
  0xfa   :  { %v226_v43 = vsel %vm222_vm4, %v220_v38, %v224_v40  ;;  %v227_v44 = vsel %vm223_vm5, %v221_v39, %v225_v41  ;;  %v4681_v38 = vor.u32 %v6454_v32, %v4678_v35  ;;  %v4820_v39 = vld [vmem:[#allocation4 + $0x180] sm:$0xf]  ;;  %v6492_v40 = vld [vmem:[#allocation4 + $0x18c] sm:$0xf0]  ;;  %v4649_v9 = vor.u32 %v6446_v5, %v4646_v6  ;;  %v6465_v6 = vld [vmem:[#allocation4 + $0xb4] sm:$0xf0] }
  0xfb   :  { %v228_v45 = vpack.c.bf16 %v227_v44, %v226_v43  ;;  %v4821_v41 = vor.u32 %v6492_v40, %v4820_v39  ;;  %v6490_v43 = vld [vmem:[#allocation4 + $0x184] sm:$0xf]  ;;  %v4822_v44 = vld [vmem:[#allocation4 + $0x190] sm:$0xf0]  ;;  %v4753_v32 = vor.u32 %v6471_v29, %v4750_v30  ;;  %v6480_v35 = vld [vmem:[#allocation4 + $0x12c] sm:$0xf0] }
  0xfc   :  { %869 = vmatpush.bf16.msrb.mxu1 %v4681_v38  ;;  %v4825_v47 = vor.u32 %v6490_v43, %v4822_v44  ;;  %v4774_v40 = vld [vmem:[#allocation4 + $0x130] sm:$0xf0]  ;;  %v4732_v43 = vld [vmem:[#allocation4 + $0xc8] sm:$0xf]  ;;  %v6469_v44 = vld [vmem:[#allocation4 + $0xd4] sm:$0xf0] }
  0xfd   :  { %333 = vmatmul.bf16.vlgmr.msra.gmra.mxu1 %v228_v45  ;;  %347 = vmatmul.bf16.vlgmr.msra.gmra.mxu2 %v228_v45  ;;  %v4733_v49 = vor.u32 %v6469_v44, %v4732_v43  ;;  %v6497_v29 = vld [vmem:[#allocation4 + $0x1b4] sm:$0xf0]  ;;  %v6495_v30 = vld [vmem:[#allocation4 + $0x1ac] sm:$0xf]  ;;  %v4686_v44 = vld [vmem:[#allocation4 + $0x78] sm:$0xf0] }
  0xfe   :  { %840 = vmatpush.bf16.msra.mxu3 %v4693_v19  ;;  %854 = vmatpush.bf16.msrb.mxu0 %v4821_v41  ;;  %v4793_v19 = vor.u32 %v6482_v13, %v4790_v15 }
  0xff   :  { %882 = vmatpush.bf16.msrb.mxu2 %v4825_v47 }
 0x100   :  { %870 = vmatpush.bf16.msrb.mxu1 %v4665_v56  ;;  %v4758_v56 = vld [vmem:[#allocation4 + $0x110] sm:$0xf0] }
 0x102   :  { %841 = vmatpush.bf16.msra.mxu3 %v4677_v34  ;;  %855 = vmatpush.bf16.msrb.mxu0 %v4805_v59  ;;  %v4772_v34 = vld [vmem:[#allocation4 + $0x120] sm:$0xf]  ;;  %v4876_v59 = vld [vmem:[#allocation4 + $0x1e8] sm:$0xf] }
 0x103   :  { %883 = vmatpush.bf16.msrb.mxu2 %v4809_v0  ;;  %v4773_v39 = vor.u32 %v6480_v35, %v4772_v34  ;;  %v4878_v0 = vld [vmem:[#allocation4 + $0x1f8] sm:$0xf0] }
 0x104   :  { %871 = vmatpush.bf16.msrb.mxu1 %v4649_v9  ;;  %v4718_v9 = vld [vmem:[#allocation4 + $0xb8] sm:$0xf0] }
 0x105   :  { %v4846_v35 = vld [vmem:[#allocation4 + $0x1b8] sm:$0xf0] }
 0x106   :  { %842 = vmatpush.bf16.msra.mxu3 %v4661_v50  ;;  %v4734_v50 = vld [vmem:[#allocation4 + $0xd8] sm:$0xf0] }
 0x107   :  { %884 = vmatpush.bf16.msrb.mxu2 %v4793_v19  ;;  %v6499_v19 = vld [vmem:[#allocation4 + $0x1cc] sm:$0xf] }
 0x10a   :  { %843 = vmatpush.bf16.msra.mxu3 %v4645_v3 }
 0x17a   :  { %v7150_v52 = vpop.f32.mrf.mxu1 }
 0x180   :  { %v7152_v4 = vpop.f32.mrf.mxu2 }
 0x182   :  { %v7154_v11 = vpop.f32.mrf.mxu1 }
 0x183   :  { %v355_v14 = vadd.f32 %v7154_v11, %v7150_v52 }
 0x185   :  { %v356_v21 = vrot.slane %v355_v14, 4 }
 0x187   :  { %v357_v28 = vadd.f32 %v356_v21, %v355_v14  ;;  %v4789_v14 = vor.u32 %v6484_v12, %v4788_v10  ;;  %v6444_v21 = vld [vmem:[#allocation4 + $0xc] sm:$0xf0]  ;;  %v4860_v10 = vld [vmem:[#allocation4 + $0x1c8] sm:$0xf]  ;;  %v6501_v12 = vld [vmem:[#allocation4 + $0x1d4] sm:$0xf0] }
 0x188   :  { %v7158_v33 = vpop.f32.mrf.mxu2  ;;  %v4629_v22 = vor.u32 %v6444_v21, %v4628_v20  ;;  %v4862_v20 = vld [vmem:[#allocation4 + $0x1d8] sm:$0xf0] }
 0x189   :  { %v358_v36 = vrot.slane %v357_v28, 2  ;;  %v362_v37 = vadd.f32 %v7158_v33, %v7152_v4  ;;  %856 = vmatpush.bf16.msrb.mxu0 %v4789_v14  ;;  %v4865_v21 = vor.u32 %v6499_v19, %v4862_v20 }
 0x18a   :  { %844 = vmatpush.bf16.msra.mxu3 %v4629_v22  ;;  %v4700_v22 = vld [vmem:[#allocation4 + $0x88] sm:$0xf] }
 0x18b   :  { %v359_v45 = vadd.f32 %v358_v36, %v357_v28  ;;  %v363_v46 = vrot.slane %v362_v37, 4  ;;  %v6473_v28 = vld [vmem:[#allocation4 + $0xf4] sm:$0xf0]  ;;  %v6478_v36 = vld [vmem:[#allocation4 + $0x124] sm:$0xf] }
 0x18c   :  { %v4749_v31 = vor.u32 %v6473_v28, %v4748_v25  ;;  %v4777_v41 = vor.u32 %v6478_v36, %v4774_v40  ;;  %v4844_v28 = vld [vmem:[#allocation4 + $0x1a8] sm:$0xf]  ;;  %v4849_v36 = vor.u32 %v6495_v30, %v4846_v35  ;;  %v6457_v40 = vld [vmem:[#allocation4 + $0x74] sm:$0xf0]  ;;  %v6479_v30 = vld [vmem:[#allocation4 + $0x12c] sm:$0xf] }
 0x18d   :  { %v360_v54 = vrot.slane %v359_v45, 1  ;;  %v364_v55 = vadd.f32 %v363_v46, %v362_v37  ;;  %857 = vmatpush.bf16.msrb.mxu0 %v4773_v39  ;;  %v4845_v34 = vor.u32 %v6497_v29, %v4844_v28  ;;  %v4684_v39 = vld [vmem:[#allocation4 + $0x68] sm:$0xf]  ;;  %v6481_v29 = vld [vmem:[#allocation4 + $0x134] sm:$0xf0] }
 0x18e   :  { %893 = vmatpush.bf16.msrb.mxu3 %v4749_v31  ;;  %885 = vmatpush.bf16.msrb.mxu2 %v4777_v41  ;;  %v6455_v41 = vld [vmem:[#allocation4 + $0x6c] sm:$0xf]  ;;  %v4685_v43 = vor.u32 %v6457_v40, %v4684_v39 }
 0x18f   :  { %v361_v62 = vadd.f32 %v360_v54, %v359_v45  ;;  %v365_v63 = vrot.slane %v364_v55, 2  ;;  %v6467_v45 = vld [vmem:[#allocation4 + $0xcc] sm:$0xf]  ;;  %v6476_v54 = vld [vmem:[#allocation4 + $0x10c] sm:$0xf0] }
 0x190   :  { %v4737_v53 = vor.u32 %v6467_v45, %v4734_v50  ;;  %v4828_v50 = vld [vmem:[#allocation4 + $0x188] sm:$0xf] }
 0x191   :  { %v369_v7 = vmul.f32 %v361_v62, %v7140_v42  ;;  %v366_v8 = vadd.f32 %v365_v63, %v364_v55  ;;  %v6474_v55 = vld [vmem:[#allocation4 + $0x104] sm:$0xf]  ;;  %v4877_v62 = vor.u32 %v6505_v60, %v4876_v59  ;;  %v6503_v63 = vld [vmem:[#allocation4 + $0x1ec] sm:$0xf] }
 0x192   :  { %894 = vmatpush.bf16.msrb.mxu3 %v4733_v49  ;;  %v4761_v61 = vor.u32 %v6474_v55, %v4758_v56  ;;  %v4881_v5 = vor.u32 %v6503_v63, %v4878_v0  ;;  %v4689_v49 = vor.u32 %v6455_v41, %v4686_v44  ;;  %v4812_v63 = vld [vmem:[#allocation4 + $0x168] sm:$0xf]  ;;  %v6489_v0 = vld [vmem:[#allocation4 + $0x174] sm:$0xf0]  ;;  %v354_v44 = vld [vmem:[%s7685_s6 + $0x4] sm:$0x3] }
 0x193   :  { %v7164_v16 = vsub.f32 %v7150_v52, %v369_v7  ;;  %v7167_v17 = vsub.f32 %v7154_v11, %v369_v7  ;;  %v367_v18 = vrot.slane %v366_v8, 1  ;;  %v4633_v11 = vor.u32 %v6442_v23, %v4630_v24  ;;  %v6463_v7 = vld [vmem:[#allocation4 + $0xac] sm:$0xf]  ;;  %v6461_v23 = vld [vmem:[#allocation4 + $0x94] sm:$0xf0] }
 0x194   :  { %886 = vmatpush.bf16.msrb.mxu2 %v4761_v61  ;;  %v4721_v15 = vor.u32 %v6463_v7, %v4718_v9  ;;  %v6459_v24 = vld [vmem:[#allocation4 + $0x8c] sm:$0xf]  ;;  %v4764_v41 = vld [vmem:[#allocation4 + $0x108] sm:$0xf] }
 0x195   :  { %v375_v26 = vmul.f32 %v7164_v16, %v7164_v16  ;;  %v377_v52 = vmul.f32 %v7167_v17, %v7167_v17  ;;  %v368_v27 = vadd.f32 %v367_v18, %v366_v8  ;;  %872 = vmatpush.bf16.msrb.mxu1 %v4633_v11  ;;  %v4717_v8 = vor.u32 %v6465_v6, %v4716_v1  ;;  %v6487_v1 = vld [vmem:[#allocation4 + $0x16c] sm:$0xf]  ;;  %v6449_v6 = vld [vmem:[#allocation4 + $0x34] sm:$0xf0] }
 0x196   :  { %v4861_v18 = vor.u32 %v6501_v12, %v4860_v10  ;;  %v6447_v10 = vld [vmem:[#allocation4 + $0x2c] sm:$0xf]  ;;  %v4654_v12 = vld [vmem:[#allocation4 + $0x38] sm:$0xf0] }
 0x197   :  { %v379_v37 = vadd.f32 %v377_v52, %v375_v26  ;;  %v370_v38 = vmul.f32 %v368_v27, %v7140_v42  ;;  %895 = vmatpush.bf16.msrb.mxu3 %v4717_v8  ;;  %v4701_v52 = vor.u32 %v6461_v23, %v4700_v22  ;;  %v4702_v27 = vld [vmem:[#allocation4 + $0x98] sm:$0xf0]  ;;  %v4636_v22 = vld [vmem:[#allocation4 + $0x8] sm:$0xf]  ;;  %v6445_v23 = vld [vmem:[#allocation4 + $0x14] sm:$0xf0] }
 0x198   :  { %935 = vmatpush.bf16.msra.mxu2 %v4881_v5  ;;  %v4705_v11 = vor.u32 %v6459_v24, %v4702_v27  ;;  %v4652_v5 = vld [vmem:[#allocation4 + $0x28] sm:$0xf]  ;;  %v4638_v27 = vld [vmem:[#allocation4 + $0x18] sm:$0xf0] }
 0x199   :  { %921 = vmatpush.bf16.msra.mxu1 %v4753_v32  ;;  %v380_v46 = vrot.slane %v379_v37, 4  ;;  %v7175_v47 = vsub.f32 %v7152_v4, %v370_v38  ;;  %v7178_v48 = vsub.f32 %v7158_v33, %v370_v38  ;;  %v4757_v33 = vor.u32 %v6476_v54, %v4756_v51  ;;  %v6493_v51 = vld [vmem:[#allocation4 + $0x194] sm:$0xf0]  ;;  %v4830_v54 = vld [vmem:[#allocation4 + $0x198] sm:$0xf0] }
 0x19a   :  { %v4829_v56 = vor.u32 %v6493_v51, %v4828_v50  ;;  %v4653_v9 = vor.u32 %v6449_v6, %v4652_v5  ;;  %v6475_v51 = vld [vmem:[#allocation4 + $0x10c] sm:$0xf] }
 0x19b   :  { %v381_v57 = vadd.f32 %v380_v46, %v379_v37  ;;  %v376_v58 = vmul.f32 %v7175_v47, %v7175_v47  ;;  %v378_v4 = vmul.f32 %v7178_v48, %v7178_v48  ;;  %858 = vmatpush.bf16.msrb.mxu0 %v4757_v33  ;;  %896 = vmatpush.bf16.msrb.mxu3 %v4701_v52  ;;  %v4670_v33 = vld [vmem:[#allocation4 + $0x58] sm:$0xf0]  ;;  %v6443_v52 = vld [vmem:[#allocation4 + $0xc] sm:$0xf] }
 0x19c   :  { %936 = vmatpush.bf16.msra.mxu2 %v4865_v21  ;;  %v4798_v21 = vld [vmem:[#allocation4 + $0x158] sm:$0xf0]  ;;  %v4641_v28 = vor.u32 %v6443_v52, %v4638_v27  ;;  %v5044_v27 = vld [vmem:[#allocation6 + $0x140] sm:$0xf] }
 0x19d   :  { %922 = vmatpush.bf16.msra.mxu1 %v4737_v53  ;;  %v382_v2 = vrot.slane %v381_v57, 2  ;;  %v386_v3 = vadd.f32 %v378_v4, %v376_v58  ;;  %v6491_v53 = vld [vmem:[#allocation4 + $0x18c] sm:$0xf]  ;;  %v6453_v58 = vld [vmem:[#allocation4 + $0x54] sm:$0xf0] }
 0x19e   :  { %v6451_v4 = vld [vmem:[#allocation4 + $0x4c] sm:$0xf]  ;;  %v4833_v59 = vor.u32 %v6491_v53, %v4830_v54  ;;  %v4766_v53 = vld [vmem:[#allocation4 + $0x118] sm:$0xf0] }
 0x19f   :  { %v383_v13 = vadd.f32 %v382_v2, %v381_v57  ;;  %v387_v14 = vrot.slane %v386_v3, 4  ;;  %907 = vmatpush.bf16.msra.mxu0 %v4877_v62  ;;  %897 = vmatpush.bf16.msrb.mxu3 %v4685_v43  ;;  %v4668_v57 = vld [vmem:[#allocation4 + $0x48] sm:$0xf]  ;;  %v4673_v62 = vor.u32 %v6451_v4, %v4670_v33  ;;  %v4813_v2 = vor.u32 %v6489_v0, %v4812_v63  ;;  %v6477_v43 = vld [vmem:[#allocation4 + $0x114] sm:$0xf0] }
 0x1a0   :  { %937 = vmatpush.bf16.msra.mxu2 %v4849_v36  ;;  %v4669_v60 = vor.u32 %v6453_v58, %v4668_v57  ;;  %v4765_v50 = vor.u32 %v6477_v43, %v4764_v41  ;;  %v4980_v43 = vld [vmem:[#allocation6 + $0xc0] sm:$0xf] }
 0x1a1   :  { %v384_v25 = vrot.slane %v383_v13, 1  ;;  %v388_v26 = vadd.f32 %v387_v14, %v386_v3  ;;  %923 = vmatpush.bf16.msra.mxu1 %v4721_v15  ;;  %v4814_v3 = vld [vmem:[#allocation4 + $0x178] sm:$0xf0]  ;;  %v4796_v14 = vld [vmem:[#allocation4 + $0x148] sm:$0xf] }
 0x1a2   :  { %v4817_v8 = vor.u32 %v6487_v1, %v4814_v3  ;;  %v6485_v15 = vld [vmem:[#allocation4 + $0x154] sm:$0xf0] }
 0x1a3   :  { %v385_v31 = vadd.f32 %v384_v25, %v383_v13  ;;  %v389_v32 = vrot.slane %v388_v26, 2  ;;  %908 = vmatpush.bf16.msra.mxu0 %v4861_v18  ;;  %898 = vmatpush.bf16.msrb.mxu3 %v4669_v60  ;;  %v4657_v13 = vor.u32 %v6447_v10, %v4654_v12  ;;  %v6483_v18 = vld [vmem:[#allocation4 + $0x14c] sm:$0xf]  ;;  %v4797_v20 = vor.u32 %v6485_v15, %v4796_v14 }
 0x1a4   :  { %938 = vmatpush.bf16.msra.mxu2 %v4833_v59  ;;  %v4801_v25 = vor.u32 %v6483_v18, %v4798_v21  ;;  %v431_v59 = vperm.slane %v354_v44, 0 }
 0x1a5   :  { %v393_v37 = vmul.f32 %v385_v31, %v7140_v42  ;;  %v390_v38 = vadd.f32 %v389_v32, %v388_v26  ;;  %924 = vmatpush.bf16.msra.mxu1 %v4705_v11  ;;  %v4637_v26 = vor.u32 %v6445_v23, %v4636_v22  ;;  %v4780_v11 = vld [vmem:[#allocation4 + $0x128] sm:$0xf]  ;;  %v4782_v32 = vld [vmem:[#allocation4 + $0x138] sm:$0xf0]  ;;  %v5076_v22 = vld [vmem:[#allocation6 + $0x180] sm:$0xf] }
 0x1a6   :  { %v4785_v36 = vor.u32 %v6479_v30, %v4782_v32  ;;  %v6558_v23 = vld [vmem:[#allocation6 + $0x19c] sm:$0xf0] }
 0x1a7   :  { %v7185_v45 = vadd.f32 0.8, %v393_v37  ;;  %v391_v46 = vrot.slane %v390_v38, 1  ;;  %909 = vmatpush.bf16.msra.mxu0 %v4845_v34  ;;  %899 = vmatpush.bf16.msrb.mxu3 %v4653_v9  ;;  %v4781_v34 = vor.u32 %v6481_v29, %v4780_v11  ;;  %v6550_v11 = vld [vmem:[#allocation6 + $0x15c] sm:$0xf0] }
 0x1a8   :  { %939 = vmatpush.bf16.msra.mxu2 %v4817_v8  ;;  %v5332_v29 = vld [vmem:[#allocation6 + $0x380] sm:$0xf] }
 0x1a9   :  { %6907 = vrsqrt.f32 %v7185_v45  ;;  %v392_v55 = vadd.f32 %v391_v46, %v390_v38  ;;  %925 = vmatpush.bf16.msra.mxu1 %v4689_v49  ;;  %v353_v38 = vld [vmem:[%s7685_s6 + $0x2] sm:$0x3]  ;;  %vm403_vm7 = vweird.f32 %v7185_v45 }
 0x1aa   :  { %v422_v54 = vperm.slane %v353_v38, 0  ;;  %v423_v0 = vperm.slane %v353_v38, 1  ;;  %v6622_v30 = vld [vmem:[#allocation6 + $0x39c] sm:$0xf0] }
 0x1ab   :  { %v394_v61 = vmul.f32 %v392_v55, %v7140_v42  ;;  %910 = vmatpush.bf16.msra.mxu0 %v4829_v56  ;;  %900 = vmatpush.bf16.msrb.mxu3 %v4637_v26  ;;  %v4769_v55 = vor.u32 %v6475_v51, %v4766_v53  ;;  %v6630_v26 = vld [vmem:[#allocation6 + $0x3dc] sm:$0xf0] }
 0x1ac   :  { %940 = vmatpush.bf16.msra.mxu2 %v4801_v25  ;;  %v5364_v25 = vld [vmem:[#allocation6 + $0x3c0] sm:$0xf] }
 0x1ad   :  { %v7189_v7 = vadd.f32 0.8, %v394_v61  ;;  %926 = vmatpush.bf16.msra.mxu1 %v4673_v62  ;;  %v5365_v52 = vor.u32 %v6630_v26, %v5364_v25  ;;  %v5012_v32 = vld [vmem:[#allocation6 + $0x100] sm:$0xf] }
 0x1ae   :  { %v5268_v53 = vld [vmem:[#allocation6 + $0x300] sm:$0xf] }
 0x1af   :  { %v6908_v19 = vpop.eup %6907  ;;  %6909 = vrsqrt.f32 %v7189_v7  ;;  %911 = vmatpush.bf16.msra.mxu0 %v4813_v2  ;;  %vm413_vm10 = vweird.f32 %v7189_v7  ;;  %v432_v2 = vperm.slane %v354_v44, 1  ;;  %v6534_v44 = vld [vmem:[#allocation6 + $0xdc] sm:$0xf0] }
 0x1b0   :  { %v398_v24 = vmul.f32 %v6908_v19, %v7185_v45  ;;  %vm404_vm6 = vweird.f32 %v6908_v19  ;;  %941 = vmatpush.bf16.msra.mxu2 %v4785_v36  ;;  %v6510_v25 = vld [vmem:[#allocation6 + $0x1c] sm:$0xf0] }
 0x1b1   :  { %927 = vmatpush.bf16.msra.mxu1 %v4657_v13  ;;  %vm405_vm8 = vmor %vm403_vm7, %vm404_vm6  ;;  %v5524_v26 = vld [vmem:[#allocation6 + $0x500] sm:$0xf] }
 0x1b2   :  { %v399_v31 = vmul.f32 %v6908_v19, %v398_v24  ;;  %v5077_v24 = vor.u32 %v6558_v23, %v5076_v22 }
 0x1b3   :  { %912 = vmatpush.bf16.msra.mxu0 %v4797_v20  ;;  %v6566_v20 = vld [vmem:[#allocation6 + $0x1dc] sm:$0xf0] }
 0x1b4   :  { %v400_v35 = vmul.f32 0.5, %v399_v31  ;;  %942 = vmatpush.bf16.msra.mxu2 %v4769_v55  ;;  %v5333_v31 = vor.u32 %v6622_v30, %v5332_v29  ;;  %v6562_v29 = vld [vmem:[#allocation6 + $0x1c4] sm:$0xf] }
 0x1b5   :  { %v6910_v37 = vpop.eup %6909  ;;  %928 = vmatpush.bf16.msra.mxu1 %v4641_v28  ;;  %v5045_v28 = vor.u32 %v6550_v11, %v5044_v27  ;;  %v5110_v30 = vld [vmem:[#allocation6 + $0x1e0] sm:$0xf0] }
 0x1b6   :  { %v401_v39 = vsub.f32 1.5, %v400_v35  ;;  %v408_v40 = vmul.f32 %v6910_v37, %v7189_v7  ;;  %vm414_vm9 = vweird.f32 %v6910_v37 }
 0x1b7   :  { %913 = vmatpush.bf16.msra.mxu0 %v4781_v34  ;;  %vm415_vm11 = vmor %vm413_vm10, %vm414_vm9  ;;  %v6542_v34 = vld [vmem:[#allocation6 + $0x11c] sm:$0xf0] }
 0x1b8   :  { %v402_v46 = vmul.f32 %v6908_v19, %v401_v39  ;;  %v409_v49 = vmul.f32 %v6910_v37, %v408_v40  ;;  %v5300_v39 = vld [vmem:[#allocation6 + $0x340] sm:$0xf] }
 0x1b9   :  { %v6614_v40 = vld [vmem:[#allocation6 + $0x35c] sm:$0xf0] }
 0x1ba   :  { %v406_v56 = vsel %vm405_vm8, %v6908_v19, %v402_v46  ;;  %v410_v57 = vmul.f32 0.5, %v409_v49  ;;  %v5108_v19 = vld [vmem:[#allocation6 + $0x1c0] sm:$0xf]  ;;  %v5301_v41 = vor.u32 %v6614_v40, %v5300_v39  ;;  %v4981_v49 = vor.u32 %v6534_v44, %v4980_v43 }
 0x1bb   :  { %v417_v58 = vmul.f32 %v406_v56, %v7164_v16  ;;  %v419_v4 = vmul.f32 %v406_v56, %v7167_v17  ;;  %914 = vmatpush.bf16.msra.mxu0 %v4765_v50  ;;  %v5109_v21 = vor.u32 %v6566_v20, %v5108_v19  ;;  %v5620_v46 = vld [vmem:[#allocation6 + $0x5c0] sm:$0xf] }
 0x1bc   :  { %v411_v60 = vsub.f32 1.5, %v410_v57  ;;  %v6694_v50 = vld [vmem:[#allocation6 + $0x5dc] sm:$0xf0] }
 0x1bd   :  { %v426_v45 = vmul.f32 %v422_v54, %v417_v58  ;;  %v428_v33 = vmul.f32 %v422_v54, %v419_v4  ;;  %v5621_v51 = vor.u32 %v6694_v50, %v5620_v46  ;;  %v6606_v54 = vld [vmem:[#allocation6 + $0x31c] sm:$0xf0] }
 0x1be   :  { %v412_v61 = vmul.f32 %v6910_v37, %v411_v60  ;;  %v5269_v56 = vor.u32 %v6606_v54, %v5268_v53  ;;  %v4948_v57 = vld [vmem:[#allocation6 + $0x80] sm:$0xf]  ;;  %v6554_v54 = vld [vmem:[#allocation6 + $0x184] sm:$0xf] }
 0x1bf   :  { %v435_v62 = vadd.f32 %v431_v59, %v426_v45  ;;  %v437_v63 = vadd.f32 %v431_v59, %v428_v33  ;;  %v6526_v58 = vld [vmem:[#allocation6 + $0x9c] sm:$0xf0] }
 0x1c0   :  { %v416_v1 = vsel %vm415_vm11, %v6910_v37, %v412_v61  ;;  %v5013_v37 = vor.u32 %v6542_v34, %v5012_v32  ;;  %v5588_v4 = vld [vmem:[#allocation6 + $0x580] sm:$0xf]  ;;  %v4949_v60 = vor.u32 %v6526_v58, %v4948_v57 }
 0x1c1   :  { %v418_v16 = vmul.f32 %v416_v1, %v7175_v47  ;;  %v420_v17 = vmul.f32 %v416_v1, %v7178_v48  ;;  %vm439_vm12 = vcmp.gt.f32.partialorder %v435_v62, 0.0  ;;  %vm441_vm13 = vcmp.gt.f32.partialorder %v437_v63, 0.0  ;;  %v6686_v45 = vld [vmem:[#allocation6 + $0x59c] sm:$0xf0] }
 0x1c2   :  { %v443_v3 = vmul.f32 0.2, %v435_v62  ;;  %v445_v5 = vmul.f32 0.2, %v437_v63  ;;  %v5589_v61 = vor.u32 %v6686_v45, %v5588_v4  ;;  %v6750_v20 = vld [vmem:[#allocation6 + $0x79c] sm:$0xf0] }
 0x1c3   :  { %v427_v6 = vmul.f32 %v423_v0, %v418_v16  ;;  %v429_v8 = vmul.f32 %v423_v0, %v420_v17  ;;  %v5876_v0 = vld [vmem:[#allocation6 + $0x7c0] sm:$0xf] }
 0x1c4   :  { %v447_v9 = vsel %vm439_vm12, %v435_v62, %v443_v3  ;;  %v449_v10 = vsel %vm441_vm13, %v437_v63, %v445_v5  ;;  %v5236_v62 = vld [vmem:[#allocation6 + $0x2c0] sm:$0xf] }
 0x1c5   :  { %v436_v12 = vadd.f32 %v432_v2, %v427_v6  ;;  %v438_v7 = vadd.f32 %v432_v2, %v429_v8  ;;  %v451_v13 = vpack.c.bf16 %v449_v10, %v447_v9  ;;  %v6598_v63 = vld [vmem:[#allocation6 + $0x2dc] sm:$0xf0] }
 0x1c6   :  { %v5237_v17 = vor.u32 %v6598_v63, %v5236_v62  ;;  %v6758_v3 = vld [vmem:[#allocation6 + $0x7dc] sm:$0xf0]  ;;  %v6626_v62 = vld [vmem:[#allocation6 + $0x3c4] sm:$0xf] }
 0x1c7   :  { %845 = vmatmul.bf16.vlgmr.msra.gmra.mxu3 %v451_v13  ;;  %873 = vmatmul.bf16.vlgmr.msrb.gmra.mxu1 %v451_v13  ;;  %vm440_vm14 = vcmp.gt.f32.partialorder %v436_v12, 0.0  ;;  %vm442_vm15 = vcmp.gt.f32.partialorder %v438_v7, 0.0  ;;  %v444_v14 = vmul.f32 0.2, %v436_v12  ;;  %v446_v15 = vmul.f32 0.2, %v438_v7 }
 0x1c8   :  { %2681 = vmatpush.bf16.msra.mxu3 %v5109_v21  ;;  %2709 = vmatpush.bf16.msrb.mxu1 %v5621_v51  ;;  %v5877_v5 = vor.u32 %v6758_v3, %v5876_v0  ;;  %v4916_v6 = vld [vmem:[#allocation6 + $0x40] sm:$0xf] }
 0x1c9   :  { %v448_v47 = vsel %vm440_vm14, %v436_v12, %v444_v14  ;;  %v450_v18 = vsel %vm442_vm15, %v438_v7, %v446_v15  ;;  %v6518_v8 = vld [vmem:[#allocation6 + $0x5c] sm:$0xf0] }
 0x1ca   :  { %v452_v48 = vpack.c.bf16 %v450_v18, %v448_v47  ;;  %v5556_v9 = vld [vmem:[#allocation6 + $0x540] sm:$0xf]  ;;  %v4917_v12 = vor.u32 %v6518_v8, %v4916_v6 }
 0x1cb   :  { %v6678_v7 = vld [vmem:[#allocation6 + $0x55c] sm:$0xf0] }
 0x1cc   :  { %859 = vmatmul.bf16.vlgmr.msrb.gmra.mxu0 %v452_v48  ;;  %887 = vmatmul.bf16.vlgmr.msrb.gmra.mxu2 %v452_v48  ;;  %v5204_v14 = vld [vmem:[#allocation6 + $0x280] sm:$0xf] }
 0x1cd   :  { %2682 = vmatpush.bf16.msra.mxu3 %v5077_v24  ;;  %2695 = vmatpush.bf16.msrb.mxu0 %v5365_v52  ;;  %v6590_v15 = vld [vmem:[#allocation6 + $0x29c] sm:$0xf0] }
 0x1ce   :  { %2710 = vmatpush.bf16.msrb.mxu1 %v5589_v61  ;;  %2723 = vmatpush.bf16.msrb.mxu2 %v5877_v5  ;;  %v5844_v47 = vld [vmem:[#allocation6 + $0x780] sm:$0xf]  ;;  %v5205_v19 = vor.u32 %v6590_v15, %v5204_v14 }
 0x1cf   :  { %v5845_v23 = vor.u32 %v6750_v20, %v5844_v47  ;;  %v4884_v24 = vld [vmem:[#allocation6] sm:$0xf] }
 0x1d0   :  { %v4885_v11 = vor.u32 %v6510_v25, %v4884_v24  ;;  %v5492_v46 = vld [vmem:[#allocation6 + $0x4c0] sm:$0xf]  ;;  %v5334_v24 = vld [vmem:[#allocation6 + $0x3a0] sm:$0xf0] }
 0x1d1   :  { %2683 = vmatpush.bf16.msra.mxu3 %v5045_v28  ;;  %2696 = vmatpush.bf16.msrb.mxu0 %v5333_v31  ;;  %v6670_v28 = vld [vmem:[#allocation6 + $0x51c] sm:$0xf0] }
 0x1d2   :  { %2724 = vmatpush.bf16.msrb.mxu2 %v5845_v23  ;;  %v5525_v34 = vor.u32 %v6670_v28, %v5524_v26  ;;  %v5140_v58 = vld [vmem:[#allocation6 + $0x200] sm:$0xf]  ;;  %v6618_v23 = vld [vmem:[#allocation6 + $0x384] sm:$0xf] }
 0x1d3   :  { %v6574_v4 = vld [vmem:[#allocation6 + $0x21c] sm:$0xf0]  ;;  %v5337_v26 = vor.u32 %v6618_v23, %v5334_v24  ;;  %v5590_v23 = vld [vmem:[#allocation6 + $0x5a0] sm:$0xf0] }
 0x1d4   :  { %v6734_v61 = vld [vmem:[#allocation6 + $0x71c] sm:$0xf0] }
 0x1d5   :  { %2684 = vmatpush.bf16.msra.mxu3 %v5013_v37  ;;  %2697 = vmatpush.bf16.msrb.mxu0 %v5301_v41  ;;  %v6582_v37 = vld [vmem:[#allocation6 + $0x25c] sm:$0xf0] }
 0x1d6   :  { %v6742_v41 = vld [vmem:[#allocation6 + $0x75c] sm:$0xf0] }
 0x1d7   :  { %901 = vmatmul.bf16.vlgmr.msrb.gmra.mxu3 %v451_v13  ;;  %929 = vmatmul.bf16.vlgmr.msra.gmra.mxu1 %v451_v13  ;;  %v5557_v13 = vor.u32 %v6678_v7, %v5556_v9  ;;  %v6654_v8 = vld [vmem:[#allocation6 + $0x49c] sm:$0xf0]  ;;  %v6546_v9 = vld [vmem:[#allocation6 + $0x144] sm:$0xf] }
 0x1d8   :  { %v5748_v15 = vld [vmem:[#allocation6 + $0x6c0] sm:$0xf] }
 0x1d9   :  { %2685 = vmatpush.bf16.msra.mxu3 %v4981_v49  ;;  %2698 = vmatpush.bf16.msrb.mxu0 %v5269_v56  ;;  %v6662_v49 = vld [vmem:[#allocation6 + $0x4dc] sm:$0xf0] }
 0x1da   :  { %2711 = vmatpush.bf16.msrb.mxu1 %v5557_v13  ;;  %v5493_v53 = vor.u32 %v6662_v49, %v5492_v46  ;;  %v6726_v47 = vld [vmem:[#allocation6 + $0x6dc] sm:$0xf0]  ;;  %v5302_v46 = vld [vmem:[#allocation6 + $0x360] sm:$0xf0] }
 0x1db   :  { %v5749_v20 = vor.u32 %v6726_v47, %v5748_v15  ;;  %v5652_v24 = vld [vmem:[#allocation6 + $0x600] sm:$0xf] }
 0x1dc   :  { %915 = vmatmul.bf16.vlgmr.msra.gmra.mxu0 %v452_v48  ;;  %943 = vmatmul.bf16.vlgmr.msra.gmra.mxu2 %v452_v48 }
 0x1dd   :  { %2686 = vmatpush.bf16.msra.mxu3 %v4949_v60  ;;  %2699 = vmatpush.bf16.msrb.mxu0 %v5237_v17  ;;  %v5460_v17 = vld [vmem:[#allocation6 + $0x480] sm:$0xf] }
 0x1de   :  { %2712 = vmatpush.bf16.msrb.mxu1 %v5525_v34  ;;  %v5461_v13 = vor.u32 %v6654_v8, %v5460_v17  ;;  %v5270_v8 = vld [vmem:[#allocation6 + $0x320] sm:$0xf0] }
 0x1e1   :  { %2687 = vmatpush.bf16.msra.mxu3 %v4917_v12  ;;  %2700 = vmatpush.bf16.msrb.mxu0 %v5205_v19 }
 0x1e2   :  { %2713 = vmatpush.bf16.msrb.mxu1 %v5493_v53  ;;  %v5396_v53 = vld [vmem:[#allocation6 + $0x400] sm:$0xf] }
 0x1e5   :  { %2688 = vmatpush.bf16.msra.mxu3 %v4885_v11  ;;  %v6646_v11 = vld [vmem:[#allocation6 + $0x45c] sm:$0xf0] }
 0x1e6   :  { %2714 = vmatpush.bf16.msrb.mxu1 %v5461_v13  ;;  %v6522_v13 = vld [vmem:[#allocation6 + $0x84] sm:$0xf] }
 0x244   :  { %v874_v35 = vpop.f32.mrf.mxu1 }
 0x249   :  { %v860_v36 = vpop.f32.mrf.mxu0 }
 0x24a   :  { %v846_v38 = vpop.f32.mrf.mxu3 }
 0x24b   :  { %v7206_v1 = vadd.f32 %v860_v36, %v846_v38  ;;  %v5172_v36 = vld [vmem:[#allocation6 + $0x240] sm:$0xf] }
 0x24c   :  { %v876_v2 = vpop.f32.mrf.mxu1  ;;  %v5812_v38 = vld [vmem:[#allocation6 + $0x740] sm:$0xf]  ;;  %v5173_v40 = vor.u32 %v6582_v37, %v5172_v36 }
 0x24d   :  { %v5813_v44 = vor.u32 %v6742_v41, %v5812_v38  ;;  %v5716_v37 = vld [vmem:[#allocation6 + $0x680] sm:$0xf] }
 0x24e   :  { %2701 = vmatpush.bf16.msrb.mxu0 %v5173_v40  ;;  %v6718_v38 = vld [vmem:[#allocation6 + $0x69c] sm:$0xf0] }
 0x24f   :  { %v888_v55 = vpop.f32.mrf.mxu2  ;;  %2725 = vmatpush.bf16.msrb.mxu2 %v5813_v44  ;;  %v6610_v44 = vld [vmem:[#allocation6 + $0x344] sm:$0xf] }
 0x250   :  { %v7212_v21 = vadd.f32 %v888_v55, %v874_v35  ;;  %v5113_v35 = vor.u32 %v6562_v29, %v5110_v30  ;;  %v5078_v55 = vld [vmem:[#allocation6 + $0x1a0] sm:$0xf0] }
 0x251   :  { %v862_v59 = vpop.f32.mrf.mxu0  ;;  %v5081_v57 = vor.u32 %v6554_v54, %v5078_v55  ;;  %v6638_v54 = vld [vmem:[#allocation6 + $0x41c] sm:$0xf0] }
 0x252   :  { %v848_v33 = vpop.f32.mrf.mxu3  ;;  %2737 = vmatpush.bf16.msrb.mxu3 %v5113_v35 }
 0x253   :  { %v7208_v16 = vadd.f32 %v862_v59, %v848_v33  ;;  %v5780_v59 = vld [vmem:[#allocation6 + $0x700] sm:$0xf]  ;;  %v5141_v33 = vor.u32 %v6574_v4, %v5140_v58  ;;  %v6530_v58 = vld [vmem:[#allocation6 + $0xc4] sm:$0xf] }
 0x254   :  { %v930_v51 = vpop.f32.mrf.mxu1  ;;  %v5781_v0 = vor.u32 %v6734_v61, %v5780_v59  ;;  %v4982_v4 = vld [vmem:[#allocation6 + $0xe0] sm:$0xf0] }
 0x255   :  { %v951_v10 = vadd.f32 %v7208_v16, %v7206_v1  ;;  %2702 = vmatpush.bf16.msrb.mxu0 %v5141_v33  ;;  %v6690_v59 = vld [vmem:[#allocation6 + $0x5c4] sm:$0xf]  ;;  %v4985_v61 = vor.u32 %v6530_v58, %v4982_v4 }
 0x256   :  { %2738 = vmatpush.bf16.msrb.mxu3 %v5081_v57  ;;  %2726 = vmatpush.bf16.msrb.mxu2 %v5781_v0  ;;  %v5397_v57 = vor.u32 %v6638_v54, %v5396_v53  ;;  %v6710_v0 = vld [vmem:[#allocation6 + $0x65c] sm:$0xf0] }
 0x257   :  { %v952_v18 = vrot.slane %v951_v10, 4  ;;  %v890_v48 = vpop.f32.mrf.mxu2 }
 0x258   :  { %v7214_v22 = vadd.f32 %v890_v48, %v876_v2  ;;  %v5366_v2 = vld [vmem:[#allocation6 + $0x3e0] sm:$0xf0] }
 0x259   :  { %v953_v52 = vadd.f32 %v952_v18, %v951_v10  ;;  %v916_v27 = vpop.f32.mrf.mxu0  ;;  %v5369_v6 = vor.u32 %v6626_v62, %v5366_v2  ;;  %v5046_v10 = vld [vmem:[#allocation6 + $0x160] sm:$0xf0] }
 0x25a   :  { %v958_v31 = vadd.f32 %v7214_v22, %v7212_v21  ;;  %v902_v32 = vpop.f32.mrf.mxu3  ;;  %v5049_v14 = vor.u32 %v6546_v9, %v5046_v10  ;;  %2727 = vmatpush.bf16.msrb.mxu2 %v5749_v20  ;;  %v5622_v62 = vld [vmem:[#allocation6 + $0x5e0] sm:$0xf0] }
 0x25b   :  { %v954_v39 = vrot.slane %v953_v52, 2  ;;  %v7219_v48 = vadd.f32 %v916_v27, %v902_v32  ;;  %2751 = vmatpush.bf16.msra.mxu0 %v5369_v6  ;;  %v5014_v32 = vld [vmem:[#allocation6 + $0x120] sm:$0xf0] }
 0x25c   :  { %v959_v43 = vrot.slane %v958_v31, 4  ;;  %2739 = vmatpush.bf16.msrb.mxu3 %v5049_v14  ;;  %v6602_v6 = vld [vmem:[#allocation6 + $0x304] sm:$0xf] }
 0x25d   :  { %v955_v50 = vadd.f32 %v954_v39, %v953_v52  ;;  %v5428_v52 = vld [vmem:[#allocation6 + $0x440] sm:$0xf]  ;;  %v932_v39 = vpop.f32.mrf.mxu1  ;;  %v5273_v10 = vor.u32 %v6602_v6, %v5270_v8  ;;  %v4950_v14 = vld [vmem:[#allocation6 + $0xa0] sm:$0xf0] }
 0x25e   :  { %v960_v56 = vadd.f32 %v959_v43, %v958_v31  ;;  %v5429_v30 = vor.u32 %v6646_v11, %v5428_v52  ;;  %v6538_v31 = vld [vmem:[#allocation6 + $0x104] sm:$0xf]  ;;  %v5717_v43 = vor.u32 %v6718_v38, %v5716_v37  ;;  %v6702_v11 = vld [vmem:[#allocation6 + $0x61c] sm:$0xf0] }
 0x25f   :  { %v956_v60 = vrot.slane %v955_v50, 1  ;;  %v944_v45 = vpop.f32.mrf.mxu2  ;;  %v5017_v36 = vor.u32 %v6538_v31, %v5014_v32  ;;  %2752 = vmatpush.bf16.msra.mxu0 %v5337_v26  ;;  %v6682_v20 = vld [vmem:[#allocation6 + $0x584] sm:$0xf]  ;;  %v5653_v31 = vor.u32 %v6702_v11, %v5652_v24 }
 0x260   :  { %v961_v63 = vrot.slane %v960_v56, 2  ;;  %v7231_v35 = vadd.f32 %v944_v45, %v930_v51  ;;  %2715 = vmatpush.bf16.msrb.mxu1 %v5429_v30  ;;  %v5305_v51 = vor.u32 %v6610_v44, %v5302_v46  ;;  %2728 = vmatpush.bf16.msrb.mxu2 %v5717_v43  ;;  %v5593_v52 = vor.u32 %v6682_v20, %v5590_v23  ;;  %v6594_v32 = vld [vmem:[#allocation6 + $0x2c4] sm:$0xf] }
 0x261   :  { %v957_v3 = vadd.f32 %v956_v60, %v955_v50  ;;  %v918_v5 = vpop.f32.mrf.mxu0  ;;  %2740 = vmatpush.bf16.msrb.mxu3 %v5017_v36  ;;  %v4918_v44 = vld [vmem:[#allocation6 + $0x60] sm:$0xf0] }
 0x262   :  { %v962_v12 = vadd.f32 %v961_v63, %v960_v56  ;;  %v904_v7 = vpop.f32.mrf.mxu3  ;;  %v5684_v63 = vld [vmem:[#allocation6 + $0x640] sm:$0xf]  ;;  %v6674_v46 = vld [vmem:[#allocation6 + $0x544] sm:$0xf] }
 0x263   :  { %v979_v18 = vmul.f32 %v957_v3, %v7140_v42  ;;  %v7221_v19 = vadd.f32 %v918_v5, %v904_v7  ;;  %2753 = vmatpush.bf16.msra.mxu0 %v5305_v51  ;;  %v5625_v3 = vor.u32 %v6690_v59, %v5622_v62  ;;  %v5685_v5 = vor.u32 %v6710_v0, %v5684_v63 }
 0x264   :  { %v963_v25 = vrot.slane %v962_v12, 1  ;;  %2716 = vmatpush.bf16.msrb.mxu1 %v5397_v57 }
 0x265   :  { %v7224_v28 = vsub.f32 %v7206_v1, %v979_v18  ;;  %v7227_v29 = vsub.f32 %v7208_v16, %v979_v18  ;;  %v965_v27 = vadd.f32 %v7221_v19, %v7219_v48  ;;  %2741 = vmatpush.bf16.msrb.mxu3 %v4985_v61  ;;  %2729 = vmatpush.bf16.msrb.mxu2 %v5685_v5  ;;  %v5846_v61 = vld [vmem:[#allocation6 + $0x7a0] sm:$0xf0] }
 0x266   :  { %v964_v34 = vadd.f32 %v963_v25, %v962_v12  ;;  %v4953_v18 = vor.u32 %v6522_v13, %v4950_v14 }
 0x267   :  { %v991_v1 = vmul.f32 %v7224_v28, %v7224_v28  ;;  %v995_v16 = vmul.f32 %v7227_v29, %v7227_v29  ;;  %v966_v40 = vrot.slane %v965_v27, 4  ;;  %v946_v41 = vpop.f32.mrf.mxu2  ;;  %2754 = vmatpush.bf16.msra.mxu0 %v5273_v10 }
 0x268   :  { %v980_v49 = vmul.f32 %v964_v34, %v7140_v42  ;;  %v7238_v50 = vadd.f32 %v946_v41, %v932_v39  ;;  %2765 = vmatpush.bf16.msra.mxu1 %v5625_v3  ;;  %v5238_v34 = vld [vmem:[#allocation6 + $0x2e0] sm:$0xf0] }
 0x269   :  { %v999_v55 = vadd.f32 %v995_v16, %v991_v1  ;;  %v967_v56 = vadd.f32 %v966_v40, %v965_v27  ;;  %2742 = vmatpush.bf16.msrb.mxu3 %v4953_v18  ;;  %v5241_v38 = vor.u32 %v6594_v32, %v5238_v34  ;;  %v6754_v1 = vld [vmem:[#allocation6 + $0x7c4] sm:$0xf]  ;;  %2730 = vmatpush.bf16.msrb.mxu2 %v5653_v31 }
 0x26a   :  { %v7241_v60 = vsub.f32 %v7212_v21, %v980_v49  ;;  %v7244_v45 = vsub.f32 %v7214_v22, %v980_v49  ;;  %v972_v33 = vadd.f32 %v7238_v50, %v7231_v35  ;;  %v5878_v16 = vld [vmem:[#allocation6 + $0x7e0] sm:$0xf0] }
 0x26b   :  { %v1000_v2 = vrot.slane %v999_v55, 4  ;;  %v968_v17 = vrot.slane %v967_v56, 2  ;;  %v6514_v39 = vld [vmem:[#allocation6 + $0x44] sm:$0xf]  ;;  %v5881_v43 = vor.u32 %v6754_v1, %v5878_v16  ;;  %2755 = vmatpush.bf16.msra.mxu0 %v5241_v38 }
 0x26c   :  { %v992_v21 = vmul.f32 %v7241_v60, %v7241_v60  ;;  %v996_v22 = vmul.f32 %v7244_v45, %v7244_v45  ;;  %v973_v9 = vrot.slane %v972_v33, 4  ;;  %2766 = vmatpush.bf16.msra.mxu1 %v5593_v52  ;;  %v5558_v49 = vld [vmem:[#allocation6 + $0x560] sm:$0xf0]  ;;  %v4921_v54 = vor.u32 %v6514_v39, %v4918_v44 }
 0x26d   :  { %v1001_v12 = vadd.f32 %v1000_v2, %v999_v55  ;;  %v969_v7 = vadd.f32 %v968_v17, %v967_v56  ;;  %v6586_v55 = vld [vmem:[#allocation6 + $0x284] sm:$0xf]  ;;  %2779 = vmatpush.bf16.msra.mxu2 %v5881_v43  ;;  %v5561_v4 = vor.u32 %v6674_v46, %v5558_v49 }
 0x26e   :  { %v1006_v15 = vadd.f32 %v996_v22, %v992_v21  ;;  %v974_v47 = vadd.f32 %v973_v9, %v972_v33  ;;  %v5206_v56 = vld [vmem:[#allocation6 + $0x2a0] sm:$0xf0]  ;;  %2743 = vmatpush.bf16.msrb.mxu3 %v4921_v54 }
 0x26f   :  { %v1002_v25 = vrot.slane %v1001_v12, 2  ;;  %v970_v26 = vrot.slane %v969_v7, 1  ;;  %v5209_v59 = vor.u32 %v6586_v55, %v5206_v56  ;;  %v6746_v33 = vld [vmem:[#allocation6 + $0x784] sm:$0xf] }
 0x270   :  { %v1007_v27 = vrot.slane %v1006_v15, 4  ;;  %v975_v30 = vrot.slane %v974_v47, 2  ;;  %v6506_v2 = vld [vmem:[#allocation6 + $0x4] sm:$0xf]  ;;  %2767 = vmatpush.bf16.msra.mxu1 %v5561_v4  ;;  %v5849_v6 = vor.u32 %v6746_v33, %v5846_v61 }
 0x271   :  { %v1003_v36 = vadd.f32 %v1002_v25, %v1001_v12  ;;  %v971_v37 = vadd.f32 %v970_v26, %v969_v7  ;;  %v4886_v17 = vld [vmem:[#allocation6 + $0x20] sm:$0xf0]  ;;  %2756 = vmatpush.bf16.msra.mxu0 %v5209_v59 }
 0x272   :  { %v1008_v40 = vadd.f32 %v1007_v27, %v1006_v15  ;;  %v976_v41 = vadd.f32 %v975_v30, %v974_v47  ;;  %v4889_v8 = vor.u32 %v6506_v2, %v4886_v17  ;;  %v6666_v21 = vld [vmem:[#allocation6 + $0x504] sm:$0xf]  ;;  %2780 = vmatpush.bf16.msra.mxu2 %v5849_v6 }
 0x273   :  { %v1004_v51 = vrot.slane %v1003_v36, 1  ;;  %v981_v53 = vmul.f32 %v971_v37, %v7140_v42  ;;  %v5526_v22 = vld [vmem:[#allocation6 + $0x520] sm:$0xf0] }
 0x274   :  { %v1009_v57 = vrot.slane %v1008_v40, 2  ;;  %v977_v58 = vrot.slane %v976_v41, 1  ;;  %v6578_v12 = vld [vmem:[#allocation6 + $0x244] sm:$0xf]  ;;  %2744 = vmatpush.bf16.msrb.mxu3 %v4889_v8 }
 0x275   :  { %v1005_v62 = vadd.f32 %v1004_v51, %v1003_v36  ;;  %v7254_v63 = vsub.f32 %v7219_v48, %v981_v53  ;;  %v7257_v0 = vsub.f32 %v7221_v19, %v981_v53  ;;  %v5529_v19 = vor.u32 %v6666_v21, %v5526_v22  ;;  %v5174_v7 = vld [vmem:[#allocation6 + $0x260] sm:$0xf0] }
 0x276   :  { %v1010_v3 = vadd.f32 %v1009_v57, %v1008_v40  ;;  %v978_v5 = vadd.f32 %v977_v58, %v976_v41  ;;  %v5177_v15 = vor.u32 %v6578_v12, %v5174_v7  ;;  %v6738_v47 = vld [vmem:[#allocation6 + $0x744] sm:$0xf] }
 0x277   :  { %v1027_v9 = vmul.f32 %v1005_v62, %v7140_v42  ;;  %v993_v10 = vmul.f32 %v7254_v63, %v7254_v63  ;;  %v997_v48 = vmul.f32 %v7257_v0, %v7257_v0  ;;  %v5814_v18 = vld [vmem:[#allocation6 + $0x760] sm:$0xf0]  ;;  %2768 = vmatpush.bf16.msra.mxu1 %v5529_v19 }
 0x278   :  { %v1011_v13 = vrot.slane %v1010_v3, 1  ;;  %v982_v14 = vmul.f32 %v978_v5, %v7140_v42  ;;  %v5817_v24 = vor.u32 %v6738_v47, %v5814_v18  ;;  %v6658_v25 = vld [vmem:[#allocation6 + $0x4c4] sm:$0xf]  ;;  %2757 = vmatpush.bf16.msra.mxu0 %v5177_v15 }
 0x279   :  { %v7265_v20 = vadd.f32 0.8, %v1027_v9  ;;  %v1013_v23 = vadd.f32 %v997_v48, %v993_v10  ;;  %v5494_v26 = vld [vmem:[#allocation6 + $0x4e0] sm:$0xf0] }
 0x27a   :  { %v1012_v52 = vadd.f32 %v1011_v13, %v1010_v3  ;;  %v7268_v11 = vsub.f32 %v7231_v35, %v982_v14  ;;  %v7271_v27 = vsub.f32 %v7238_v50, %v982_v14  ;;  %v5497_v30 = vor.u32 %v6658_v25, %v5494_v26  ;;  %v6570_v32 = vld [vmem:[#allocation6 + $0x204] sm:$0xf]  ;;  %2781 = vmatpush.bf16.msra.mxu2 %v5817_v24 }
 0x27b   :  { %6911 = vrsqrt.f32 %v7265_v20  ;;  %v1014_v31 = vrot.slane %v1013_v23, 4  ;;  %v5142_v34 = vld [vmem:[#allocation6 + $0x220] sm:$0xf0]  ;;  %vm1041_vm1 = vweird.f32 %v7265_v20 }
 0x27c   :  { %v1028_v36 = vmul.f32 %v1012_v52, %v7140_v42  ;;  %v994_v37 = vmul.f32 %v7268_v11, %v7268_v11  ;;  %v998_v35 = vmul.f32 %v7271_v27, %v7271_v27  ;;  %v5145_v38 = vor.u32 %v6570_v32, %v5142_v34  ;;  %v6730_v50 = vld [vmem:[#allocation6 + $0x704] sm:$0xf]  ;;  %2769 = vmatpush.bf16.msra.mxu1 %v5497_v30 }
 0x27d   :  { %v5782_v1 = vld [vmem:[#allocation6 + $0x720] sm:$0xf0]  ;;  %v1015_v16 = vadd.f32 %v1014_v31, %v1013_v23  ;;  %v7293_v23 = vld [vmem:[%s7685_s6 + $0xa] sm:$0xf] }
 0x27e   :  { %v5785_v39 = vor.u32 %v6730_v50, %v5782_v1  ;;  %v6650_v40 = vld [vmem:[#allocation6 + $0x484] sm:$0xf]  ;;  %v7279_v43 = vadd.f32 0.8, %v1028_v36  ;;  %v1020_v44 = vadd.f32 %v998_v35, %v994_v37  ;;  %2758 = vmatpush.bf16.msra.mxu0 %v5145_v38  ;;  %v1101_v36 = vperm.slane %v7293_v23, 0 }
 0x27f   :  { %v5462_v41 = vld [vmem:[#allocation6 + $0x4a0] sm:$0xf0]  ;;  %v1016_v46 = vrot.slane %v1015_v16, 2 }
 0x280   :  { %v5465_v49 = vor.u32 %v6650_v40, %v5462_v41  ;;  %v6722_v51 = vld [vmem:[#allocation6 + $0x6c4] sm:$0xf]  ;;  %6913 = vrsqrt.f32 %v7279_v43  ;;  %v1021_v53 = vrot.slane %v1020_v44, 4  ;;  %2782 = vmatpush.bf16.msra.mxu2 %v5785_v39  ;;  %vm1051_vm4 = vweird.f32 %v7279_v43 }
 0x281   :  { %v5750_v54 = vld [vmem:[#allocation6 + $0x6e0] sm:$0xf0]  ;;  %v6912_v55 = vpop.eup %6911  ;;  %v1017_v56 = vadd.f32 %v1016_v46, %v1015_v16 }
 0x282   :  { %v5753_v57 = vor.u32 %v6722_v51, %v5750_v54  ;;  %v6642_v58 = vld [vmem:[#allocation6 + $0x444] sm:$0xf]  ;;  %v1036_v59 = vmul.f32 %v6912_v55, %v7265_v20  ;;  %v1022_v33 = vadd.f32 %v1021_v53, %v1020_v44  ;;  %2770 = vmatpush.bf16.msra.mxu1 %v5465_v49  ;;  %vm1042_vm0 = vweird.f32 %v6912_v55 }
 0x283   :  { %v5430_v4 = vld [vmem:[#allocation6 + $0x460] sm:$0xf0]  ;;  %v1018_v61 = vrot.slane %v1017_v56, 1  ;;  %vm1043_vm2 = vmor %vm1041_vm1, %vm1042_vm0 }
 0x284   :  { %v5433_v62 = vor.u32 %v6642_v58, %v5430_v4  ;;  %v6714_v2 = vld [vmem:[#allocation6 + $0x684] sm:$0xf]  ;;  %v1037_v3 = vmul.f32 %v6912_v55, %v1036_v59  ;;  %v1023_v5 = vrot.slane %v1022_v33, 2  ;;  %2783 = vmatpush.bf16.msra.mxu2 %v5753_v57  ;;  %v5116_v57 = vld [vmem:[#allocation6 + $0x1c8] sm:$0xf] }
 0x285   :  { %v5718_v17 = vld [vmem:[#allocation6 + $0x6a0] sm:$0xf0]  ;;  %v1019_v8 = vadd.f32 %v1018_v61, %v1017_v56 }
 0x286   :  { %v5721_v6 = vor.u32 %v6714_v2, %v5718_v17  ;;  %v6634_v21 = vld [vmem:[#allocation6 + $0x404] sm:$0xf]  ;;  %v6914_v9 = vpop.eup %6913  ;;  %v1038_v10 = vmul.f32 0.5, %v1037_v3  ;;  %v1024_v48 = vadd.f32 %v1023_v5, %v1022_v33  ;;  %2771 = vmatpush.bf16.msra.mxu1 %v5433_v62 }
 0x287   :  { %v5398_v22 = vld [vmem:[#allocation6 + $0x420] sm:$0xf0]  ;;  %v1046_v7 = vmul.f32 %v6914_v9, %v7279_v43  ;;  %v1029_v13 = vmul.f32 %v1019_v8, %v7140_v42  ;;  %vm1052_vm3 = vweird.f32 %v6914_v9  ;;  %v6567_v43 = vld [vmem:[#allocation6 + $0x1e4] sm:$0xf0] }
 0x288   :  { %v5401_v19 = vor.u32 %v6634_v21, %v5398_v22  ;;  %v7286_v12 = vld [vmem:[%s7685_s6 + $0x6] sm:$0xf]  ;;  %v1039_v14 = vsub.f32 1.5, %v1038_v10  ;;  %v1025_v15 = vrot.slane %v1024_v48, 1  ;;  %2784 = vmatpush.bf16.msra.mxu2 %v5721_v6  ;;  %vm1053_vm5 = vmor %vm1051_vm4, %vm1052_vm3  ;;  %v5117_v17 = vor.u32 %v6567_v43, %v5116_v57 }
 0x289   :  { %v6706_v47 = vld [vmem:[#allocation6 + $0x644] sm:$0xf]  ;;  %v1047_v24 = vmul.f32 %v6914_v9, %v1046_v7  ;;  %v7295_v25 = vadd.f32 0.8, %v1029_v13  ;;  %v1084_v31 = vperm.slane %v7286_v12, 0  ;;  %v1085_v46 = vperm.slane %v7286_v12, 1 }
 0x28a   :  { %v5686_v18 = vld [vmem:[#allocation6 + $0x660] sm:$0xf0]  ;;  %v1040_v52 = vmul.f32 %v6912_v55, %v1039_v14  ;;  %v1026_v30 = vadd.f32 %v1025_v15, %v1024_v48  ;;  %2772 = vmatpush.bf16.msra.mxu1 %v5401_v19  ;;  %v5084_v8 = vld [vmem:[#allocation6 + $0x188] sm:$0xf] }
 0x28b   :  { %v5689_v26 = vor.u32 %v6706_v47, %v5686_v18  ;;  %v1048_v32 = vmul.f32 0.5, %v1047_v24  ;;  %6915 = vrsqrt.f32 %v7295_v25  ;;  %v6698_v35 = vld [vmem:[#allocation6 + $0x604] sm:$0xf]  ;;  %v6559_v21 = vld [vmem:[#allocation6 + $0x1a4] sm:$0xf0]  ;;  %vm1061_vm11 = vweird.f32 %v7295_v25 }
 0x28c   :  { %v1044_v34 = vsel %vm1043_vm2, %v6912_v55, %v1040_v52  ;;  %v1030_v37 = vmul.f32 %v1026_v30, %v7140_v42  ;;  %v5654_v1 = vld [vmem:[#allocation6 + $0x620] sm:$0xf0]  ;;  %v1102_v55 = vperm.slane %v7293_v23, 1  ;;  %v6631_v10 = vld [vmem:[#allocation6 + $0x3e4] sm:$0xf0]  ;;  %v5085_v14 = vor.u32 %v6559_v21, %v5084_v8 }
 0x28d   :  { %2785 = vmatpush.bf16.msra.mxu2 %v5689_v26  ;;  %v1075_v38 = vmul.f32 %v1044_v34, %v7224_v28  ;;  %v1079_v50 = vmul.f32 %v1044_v34, %v7227_v29  ;;  %v1049_v20 = vsub.f32 1.5, %v1048_v32  ;;  %v5657_v39 = vor.u32 %v6698_v35, %v5654_v1  ;;  %v5052_v24 = vld [vmem:[#allocation6 + $0x148] sm:$0xf] }
 0x28e   :  { %v7304_v16 = vadd.f32 0.8, %v1030_v37  ;;  %v6551_v26 = vld [vmem:[#allocation6 + $0x164] sm:$0xf0] }
 0x28f   :  { %v1092_v40 = vmul.f32 %v1084_v31, %v1075_v38  ;;  %v1096_v41 = vmul.f32 %v1084_v31, %v1079_v50  ;;  %v1050_v44 = vmul.f32 %v6914_v9, %v1049_v20  ;;  %v5340_v32 = vld [vmem:[#allocation6 + $0x388] sm:$0xf]  ;;  %v5053_v38 = vor.u32 %v6551_v26, %v5052_v24 }
 0x290   :  { %6917 = vrsqrt.f32 %v7304_v16  ;;  %v6623_v34 = vld [vmem:[#allocation6 + $0x3a4] sm:$0xf0]  ;;  %vm1071_vm14 = vweird.f32 %v7304_v16 }
 0x291   :  { %2786 = vmatpush.bf16.msra.mxu2 %v5657_v39  ;;  %v6916_v28 = vpop.eup %6915  ;;  %v1109_v49 = vadd.f32 %v1101_v36, %v1092_v40  ;;  %v1113_v29 = vadd.f32 %v1101_v36, %v1096_v41  ;;  %v1054_v51 = vsel %vm1053_vm5, %v6914_v9, %v1050_v44  ;;  %v5372_v9 = vld [vmem:[#allocation6 + $0x3c8] sm:$0xf]  ;;  %v1086_v36 = vperm.slane %v7286_v12, 2 }
 0x292   :  { %v1076_v53 = vmul.f32 %v1054_v51, %v7241_v60  ;;  %v1080_v54 = vmul.f32 %v1054_v51, %v7244_v45  ;;  %v1056_v56 = vmul.f32 %v6916_v28, %v7295_v25  ;;  %vm1062_vm10 = vweird.f32 %v6916_v28  ;;  %v5020_v50 = vld [vmem:[#allocation6 + $0x108] sm:$0xf] }
 0x293   :  { %vm1117_vm6 = vcmp.gt.f32.partialorder %v1109_v49, 0.0  ;;  %vm1121_vm7 = vcmp.gt.f32.partialorder %v1113_v29, 0.0  ;;  %v1125_v58 = vmul.f32 0.2, %v1109_v49  ;;  %v1129_v4 = vmul.f32 0.2, %v1113_v29  ;;  %vm1063_vm12 = vmor %vm1061_vm11, %vm1062_vm10 }
 0x294   :  { %v1093_v59 = vmul.f32 %v1085_v46, %v1076_v53  ;;  %v1097_v33 = vmul.f32 %v1085_v46, %v1080_v54  ;;  %v1057_v61 = vmul.f32 %v6916_v28, %v1056_v56  ;;  %v5373_v18 = vor.u32 %v6631_v10, %v5372_v9  ;;  %v6543_v20 = vld [vmem:[#allocation6 + $0x124] sm:$0xf0] }
 0x295   :  { %v1133_v62 = vsel %vm1117_vm6, %v1109_v49, %v1125_v58  ;;  %v1137_v2 = vsel %vm1121_vm7, %v1113_v29, %v1129_v4  ;;  %v1103_v39 = vperm.slane %v7293_v23, 2  ;;  %v5341_v40 = vor.u32 %v6623_v34, %v5340_v32  ;;  %v5308_v41 = vld [vmem:[#allocation6 + $0x348] sm:$0xf] }
 0x296   :  { %v6918_v3 = vpop.eup %6917  ;;  %v7313_v60 = vpack.c.bf16 %v1137_v2, %v1133_v62  ;;  %v1110_v45 = vadd.f32 %v1102_v55, %v1093_v59  ;;  %v1114_v5 = vadd.f32 %v1102_v55, %v1097_v33  ;;  %v1058_v6 = vmul.f32 0.5, %v1057_v61  ;;  %v6615_v44 = vld [vmem:[#allocation6 + $0x364] sm:$0xf0] }
 0x297   :  { %v1066_v22 = vmul.f32 %v6918_v3, %v7304_v16  ;;  %vm1072_vm13 = vweird.f32 %v6918_v3  ;;  %v5021_v29 = vor.u32 %v6543_v20, %v5020_v50  ;;  %v1087_v53 = vperm.slane %v7286_v12, 3  ;;  %v4988_v16 = vld [vmem:[#allocation6 + $0xc8] sm:$0xf] }
 0x298   :  { %vm1118_vm8 = vcmp.gt.f32.partialorder %v1110_v45, 0.0  ;;  %vm1122_vm9 = vcmp.gt.f32.partialorder %v1114_v5, 0.0  ;;  %v1126_v48 = vmul.f32 0.2, %v1110_v45  ;;  %v1130_v19 = vmul.f32 0.2, %v1114_v5  ;;  %2689 = vmatmul.bf16.vlgmr.msra.gmra.mxu3 %v7313_v60  ;;  %vm1073_vm15 = vmor %vm1071_vm14, %vm1072_vm13 }
 0x299   :  { %v1059_v7 = vsub.f32 1.5, %v1058_v6  ;;  %v1067_v13 = vmul.f32 %v6918_v3, %v1066_v22  ;;  %2793 = vmatpush.bf16.msra.mxu3 %v5117_v17  ;;  %v6535_v43 = vld [vmem:[#allocation6 + $0xe4] sm:$0xf0] }
 0x29a   :  { %v1134_v15 = vsel %vm1118_vm8, %v1110_v45, %v1126_v48  ;;  %v1138_v47 = vsel %vm1122_vm9, %v1114_v5, %v1130_v19  ;;  %v5628_v58 = vld [vmem:[#allocation6 + $0x5c8] sm:$0xf]  ;;  %v4989_v2 = vor.u32 %v6535_v43, %v4988_v16 }
 0x29b   :  { %v7317_v52 = vpack.c.bf16 %v1138_v47, %v1134_v15  ;;  %v1060_v30 = vmul.f32 %v6916_v28, %v1059_v7  ;;  %v1068_v31 = vmul.f32 0.5, %v1067_v13  ;;  %v6695_v4 = vld [vmem:[#allocation6 + $0x5e4] sm:$0xf0] }
 0x29c   :  { %v5276_v59 = vld [vmem:[#allocation6 + $0x308] sm:$0xf] }
 0x29d   :  { %v1064_v37 = vsel %vm1063_vm12, %v6916_v28, %v1060_v30  ;;  %v1069_v35 = vsub.f32 1.5, %v1068_v31  ;;  %2794 = vmatpush.bf16.msra.mxu3 %v5085_v14  ;;  %2703 = vmatmul.bf16.vlgmr.msrb.gmra.mxu0 %v7317_v52  ;;  %v6607_v33 = vld [vmem:[#allocation6 + $0x324] sm:$0xf0] }
 0x29e   :  { %v1077_v1 = vmul.f32 %v1064_v37, %v7254_v63  ;;  %v1081_v25 = vmul.f32 %v1064_v37, %v7257_v0  ;;  %2807 = vmatpush.bf16.msrb.mxu0 %v5373_v18  ;;  %v1104_v63 = vperm.slane %v7293_v23, 3  ;;  %v5309_v0 = vor.u32 %v6615_v44, %v5308_v41  ;;  %v4956_v17 = vld [vmem:[#allocation6 + $0x88] sm:$0xf] }
 0x29f   :  { %v1070_v46 = vmul.f32 %v6918_v3, %v1069_v35  ;;  %v5277_v5 = vor.u32 %v6607_v33, %v5276_v59  ;;  %v5596_v22 = vld [vmem:[#allocation6 + $0x588] sm:$0xf]  ;;  %v5086_v59 = vld [vmem:[#allocation6 + $0x1a8] sm:$0xf0] }
 0x2a0   :  { %v1094_v28 = vmul.f32 %v1086_v36, %v1077_v1  ;;  %v1098_v49 = vmul.f32 %v1086_v36, %v1081_v25  ;;  %v6687_v9 = vld [vmem:[#allocation6 + $0x5a4] sm:$0xf0] }
 0x2a1   :  { %v1074_v51 = vsel %vm1073_vm15, %v6918_v3, %v1070_v46  ;;  %2795 = vmatpush.bf16.msra.mxu3 %v5053_v38  ;;  %v6527_v3 = vld [vmem:[#allocation6 + $0xa4] sm:$0xf0]  ;;  %v5597_v47 = vor.u32 %v6687_v9, %v5596_v22 }
 0x2a2   :  { %v1111_v54 = vadd.f32 %v1103_v39, %v1094_v28  ;;  %v1115_v55 = vadd.f32 %v1103_v39, %v1098_v49  ;;  %v1078_v56 = vmul.f32 %v1074_v51, %v7268_v11  ;;  %v1082_v57 = vmul.f32 %v1074_v51, %v7271_v27  ;;  %2808 = vmatpush.bf16.msrb.mxu0 %v5341_v40  ;;  %v5244_v10 = vld [vmem:[#allocation6 + $0x2c8] sm:$0xf]  ;;  %v6563_v49 = vld [vmem:[#allocation6 + $0x1cc] sm:$0xf] }
 0x2a3   :  { %v5629_v27 = vor.u32 %v6695_v4, %v5628_v58  ;;  %v4957_v48 = vor.u32 %v6527_v3, %v4956_v17  ;;  %v6599_v19 = vld [vmem:[#allocation6 + $0x2e4] sm:$0xf0]  ;;  %v6555_v4 = vld [vmem:[#allocation6 + $0x18c] sm:$0xf] }
 0x2a4   :  { %vm1119_vm0 = vcmp.gt.f32.partialorder %v1111_v54, 0.0  ;;  %vm1123_vm1 = vcmp.gt.f32.partialorder %v1115_v55, 0.0  ;;  %v1127_v12 = vmul.f32 0.2, %v1111_v54  ;;  %v1131_v61 = vmul.f32 0.2, %v1115_v55 }
 0x2a5   :  { %v1095_v23 = vmul.f32 %v1087_v53, %v1078_v56  ;;  %v1099_v62 = vmul.f32 %v1087_v53, %v1082_v57  ;;  %2796 = vmatpush.bf16.msra.mxu3 %v5021_v29  ;;  %v5884_v7 = vld [vmem:[#allocation6 + $0x7c8] sm:$0xf]  ;;  %v5245_v31 = vor.u32 %v6599_v19, %v5244_v10  ;;  %v5118_v29 = vld [vmem:[#allocation6 + $0x1e8] sm:$0xf0]  ;;  %v5089_v3 = vor.u32 %v6555_v4, %v5086_v59 }
 0x2a6   :  { %v1135_v11 = vsel %vm1119_vm0, %v1111_v54, %v1127_v12  ;;  %v1139_v45 = vsel %vm1123_vm1, %v1115_v55, %v1131_v61  ;;  %2809 = vmatpush.bf16.msrb.mxu0 %v5309_v0  ;;  %v6759_v13 = vld [vmem:[#allocation6 + $0x7e4] sm:$0xf0]  ;;  %v5121_v56 = vor.u32 %v6563_v49, %v5118_v29  ;;  %v5342_v19 = vld [vmem:[#allocation6 + $0x3a8] sm:$0xf0] }
 0x2a7   :  { %v7332_v6 = vpack.c.bf16 %v1139_v45, %v1135_v11  ;;  %v1112_v8 = vadd.f32 %v1104_v63, %v1095_v23  ;;  %v1116_v21 = vadd.f32 %v1104_v63, %v1099_v62  ;;  %v4924_v18 = vld [vmem:[#allocation6 + $0x48] sm:$0xf]  ;;  %v5885_v32 = vor.u32 %v6759_v13, %v5884_v7  ;;  %v6627_v62 = vld [vmem:[#allocation6 + $0x3cc] sm:$0xf] }
 0x2a8   :  { %2745 = vmatmul.bf16.vlgmr.msrb.gmra.mxu3 %v7313_v60  ;;  %v6519_v24 = vld [vmem:[#allocation6 + $0x64] sm:$0xf0]  ;;  %v5278_v49 = vld [vmem:[#allocation6 + $0x328] sm:$0xf0] }
 0x2a9   :  { %vm1120_vm2 = vcmp.gt.f32.partialorder %v1112_v8, 0.0  ;;  %vm1124_vm3 = vcmp.gt.f32.partialorder %v1116_v21, 0.0  ;;  %v1128_v14 = vmul.f32 0.2, %v1112_v8  ;;  %v1132_v15 = vmul.f32 0.2, %v1116_v21  ;;  %2717 = vmatmul.bf16.vlgmr.msrb.gmra.mxu1 %v7332_v6  ;;  %2797 = vmatpush.bf16.msra.mxu3 %v4989_v2 }
 0x2aa   :  { %2821 = vmatpush.bf16.msrb.mxu1 %v5629_v27  ;;  %2810 = vmatpush.bf16.msrb.mxu0 %v5277_v5  ;;  %v5564_v34 = vld [vmem:[#allocation6 + $0x548] sm:$0xf]  ;;  %v4925_v1 = vor.u32 %v6519_v24, %v4924_v18  ;;  %v5374_v2 = vld [vmem:[#allocation6 + $0x3e8] sm:$0xf0] }
 0x2ab   :  { %v1136_v26 = vsel %vm1120_vm2, %v1112_v8, %v1128_v14  ;;  %v1140_v30 = vsel %vm1124_vm3, %v1116_v21, %v1132_v15  ;;  %v6679_v36 = vld [vmem:[#allocation6 + $0x564] sm:$0xf0]  ;;  %v6547_v8 = vld [vmem:[#allocation6 + $0x14c] sm:$0xf]  ;;  %v5377_v22 = vor.u32 %v6627_v62, %v5374_v2 }
 0x2ac   :  { %v5212_v37 = vld [vmem:[#allocation6 + $0x288] sm:$0xf]  ;;  %v7336_v35 = vpack.c.bf16 %v1140_v30, %v1136_v26  ;;  %v5565_v39 = vor.u32 %v6679_v36, %v5564_v34  ;;  %v5054_v21 = vld [vmem:[#allocation6 + $0x168] sm:$0xf0] }
 0x2ad   :  { %v6591_v38 = vld [vmem:[#allocation6 + $0x2a4] sm:$0xf0]  ;;  %2798 = vmatpush.bf16.msra.mxu3 %v4957_v48  ;;  %2759 = vmatmul.bf16.vlgmr.msra.gmra.mxu0 %v7317_v52  ;;  %v6619_v48 = vld [vmem:[#allocation6 + $0x38c] sm:$0xf]  ;;  %v5057_v13 = vor.u32 %v6547_v8, %v5054_v21 }
 0x2ae   :  { %v5852_v50 = vld [vmem:[#allocation6 + $0x788] sm:$0xf]  ;;  %2822 = vmatpush.bf16.msrb.mxu1 %v5597_v47  ;;  %2731 = vmatmul.bf16.vlgmr.msrb.gmra.mxu2 %v7336_v35  ;;  %v5213_v46 = vor.u32 %v6591_v38, %v5212_v37  ;;  %v6539_v47 = vld [vmem:[#allocation6 + $0x10c] sm:$0xf]  ;;  %v5345_v26 = vor.u32 %v6619_v48, %v5342_v19 }
 0x2af   :  { %v6751_v20 = vld [vmem:[#allocation6 + $0x7a4] sm:$0xf0]  ;;  %2811 = vmatpush.bf16.msrb.mxu0 %v5245_v31  ;;  %2835 = vmatpush.bf16.msrb.mxu2 %v5885_v32  ;;  %v5022_v18 = vld [vmem:[#allocation6 + $0x128] sm:$0xf0] }
 0x2b0   :  { %v4892_v25 = vld [vmem:[#allocation6 + $0x8] sm:$0xf]  ;;  %v5853_v28 = vor.u32 %v6751_v20, %v5852_v50  ;;  %v6611_v32 = vld [vmem:[#allocation6 + $0x34c] sm:$0xf]  ;;  %v5025_v37 = vor.u32 %v6539_v47, %v5022_v18 }
 0x2b1   :  { %v6511_v40 = vld [vmem:[#allocation6 + $0x24] sm:$0xf0]  ;;  %2799 = vmatpush.bf16.msra.mxu3 %v4925_v1  ;;  %v5310_v34 = vld [vmem:[#allocation6 + $0x368] sm:$0xf0] }
 0x2b2   :  { %v5532_v41 = vld [vmem:[#allocation6 + $0x508] sm:$0xf]  ;;  %v4893_v54 = vor.u32 %v6511_v40, %v4892_v25  ;;  %2823 = vmatpush.bf16.msrb.mxu1 %v5565_v39  ;;  %v6531_v20 = vld [vmem:[#allocation6 + $0xcc] sm:$0xf]  ;;  %v5313_v39 = vor.u32 %v6611_v32, %v5310_v34 }
 0x2b3   :  { %v6671_v44 = vld [vmem:[#allocation6 + $0x524] sm:$0xf0]  ;;  %2812 = vmatpush.bf16.msrb.mxu0 %v5213_v46  ;;  %2836 = vmatpush.bf16.msrb.mxu2 %v5853_v28  ;;  %v4990_v1 = vld [vmem:[#allocation6 + $0xe8] sm:$0xf0] }
 0x2b4   :  { %v5180_v51 = vld [vmem:[#allocation6 + $0x248] sm:$0xf]  ;;  %v5533_v55 = vor.u32 %v6671_v44, %v5532_v41  ;;  %v6691_v40 = vld [vmem:[#allocation6 + $0x5cc] sm:$0xf] }
 0x2b5   :  { %v6583_v53 = vld [vmem:[#allocation6 + $0x264] sm:$0xf0]  ;;  %2800 = vmatpush.bf16.msra.mxu3 %v4893_v54  ;;  %v5630_v41 = vld [vmem:[#allocation6 + $0x5e8] sm:$0xf0] }
 0x2b6   :  { %v5820_v63 = vld [vmem:[#allocation6 + $0x748] sm:$0xf]  ;;  %v5181_v43 = vor.u32 %v6583_v53, %v5180_v51  ;;  %2824 = vmatpush.bf16.msrb.mxu1 %v5533_v55  ;;  %v6603_v28 = vld [vmem:[#allocation6 + $0x30c] sm:$0xf]  ;;  %v4993_v51 = vor.u32 %v6531_v20, %v4990_v1  ;;  %v5633_v53 = vor.u32 %v6691_v40, %v5630_v41  ;;  %v6560_v20 = vld [vmem:[#allocation6 + $0x1ac] sm:$0xf0] }
 0x2b7   :  { %v6743_v0 = vld [vmem:[#allocation6 + $0x764] sm:$0xf0]  ;;  %v5281_v55 = vor.u32 %v6603_v28, %v5278_v49  ;;  %v5246_v4 = vld [vmem:[#allocation6 + $0x2e8] sm:$0xf0] }
 0x2b8   :  { %v5500_v57 = vld [vmem:[#allocation6 + $0x4c8] sm:$0xf]  ;;  %v5821_v58 = vor.u32 %v6743_v0, %v5820_v63  ;;  %2813 = vmatpush.bf16.msrb.mxu0 %v5181_v43  ;;  %2801 = vmatmul.bf16.vlgmr.msra.gmra.mxu3 %v7313_v60  ;;  %v6523_v63 = vld [vmem:[#allocation6 + $0x8c] sm:$0xf] }
 0x2b9   :  { %v6663_v16 = vld [vmem:[#allocation6 + $0x4e4] sm:$0xf0]  ;;  %2849 = vmatpush.bf16.msrb.mxu3 %v5121_v56  ;;  %2773 = vmatmul.bf16.vlgmr.msra.gmra.mxu1 %v7332_v6  ;;  %v4958_v0 = vld [vmem:[#allocation6 + $0xa8] sm:$0xf0] }
 0x2ba   :  { %v5148_v33 = vld [vmem:[#allocation6 + $0x208] sm:$0xf]  ;;  %v5501_v17 = vor.u32 %v6663_v16, %v5500_v57  ;;  %2837 = vmatpush.bf16.msrb.mxu2 %v5821_v58  ;;  %v6683_v56 = vld [vmem:[#allocation6 + $0x58c] sm:$0xf]  ;;  %v4961_v59 = vor.u32 %v6523_v63, %v4958_v0 }
 0x2bb   :  { %v6575_v12 = vld [vmem:[#allocation6 + $0x224] sm:$0xf0]  ;;  %v5598_v57 = vld [vmem:[#allocation6 + $0x5a8] sm:$0xf0] }
 0x2bc   :  { %v5788_v61 = vld [vmem:[#allocation6 + $0x708] sm:$0xf]  ;;  %v5149_v45 = vor.u32 %v6575_v12, %v5148_v33  ;;  %2825 = vmatpush.bf16.msrb.mxu1 %v5501_v17  ;;  %v6595_v58 = vld [vmem:[#allocation6 + $0x2cc] sm:$0xf] }
 0x2bd   :  { %v6735_v23 = vld [vmem:[#allocation6 + $0x724] sm:$0xf0]  ;;  %2850 = vmatpush.bf16.msrb.mxu3 %v5089_v3  ;;  %v6755_v33 = vld [vmem:[#allocation6 + $0x7cc] sm:$0xf]  ;;  %v5249_v17 = vor.u32 %v6595_v58, %v5246_v4 }
 0x2be   :  { %v5468_v11 = vld [vmem:[#allocation6 + $0x488] sm:$0xf]  ;;  %v5789_v27 = vor.u32 %v6735_v23, %v5788_v61  ;;  %2814 = vmatpush.bf16.msrb.mxu0 %v5149_v45  ;;  %2787 = vmatmul.bf16.vlgmr.msra.gmra.mxu2 %v7336_v35  ;;  %v5886_v12 = vld [vmem:[#allocation6 + $0x7e8] sm:$0xf0]  ;;  %v5601_v61 = vor.u32 %v6683_v56, %v5598_v57 }
 0x2bf   :  { %v6655_v5 = vld [vmem:[#allocation6 + $0x4a4] sm:$0xf0]  ;;  %v6515_v23 = vld [vmem:[#allocation6 + $0x4c] sm:$0xf]  ;;  %v5889_v45 = vor.u32 %v6755_v33, %v5886_v12 }
 0x2c0   :  { %v5756_v9 = vld [vmem:[#allocation6 + $0x6c8] sm:$0xf]  ;;  %v5469_v7 = vor.u32 %v6655_v5, %v5468_v11  ;;  %2838 = vmatpush.bf16.msrb.mxu2 %v5789_v27  ;;  %v4926_v62 = vld [vmem:[#allocation6 + $0x68] sm:$0xf0] }
 0x2c1   :  { %v6727_v10 = vld [vmem:[#allocation6 + $0x6e4] sm:$0xf0]  ;;  %2851 = vmatpush.bf16.msrb.mxu3 %v5057_v13  ;;  %2815 = vmatmul.bf16.vlgmr.msrb.gmra.mxu0 %v7317_v52  ;;  %v6675_v3 = vld [vmem:[#allocation6 + $0x54c] sm:$0xf]  ;;  %v4929_v8 = vor.u32 %v6515_v23, %v4926_v62  ;;  %v5028_v23 = vld [vmem:[#allocation6 + $0x110] sm:$0xf] }
 0x2c2   :  { %v5436_v14 = vld [vmem:[#allocation6 + $0x448] sm:$0xf]  ;;  %2863 = vmatpush.bf16.msra.mxu0 %v5377_v22  ;;  %v5757_v24 = vor.u32 %v6727_v10, %v5756_v9  ;;  %2826 = vmatpush.bf16.msrb.mxu1 %v5469_v7  ;;  %v5566_v11 = vld [vmem:[#allocation6 + $0x568] sm:$0xf0]  ;;  %v6544_v62 = vld [vmem:[#allocation6 + $0x12c] sm:$0xf0] }
 0x2c3   :  { %v6647_v15 = vld [vmem:[#allocation6 + $0x464] sm:$0xf0]  ;;  %v6587_v27 = vld [vmem:[#allocation6 + $0x28c] sm:$0xf]  ;;  %v5569_v9 = vor.u32 %v6675_v3, %v5566_v11  ;;  %v5316_v3 = vld [vmem:[#allocation6 + $0x350] sm:$0xf] }
 0x2c4   :  { %v5724_v30 = vld [vmem:[#allocation6 + $0x688] sm:$0xf]  ;;  %v5437_v36 = vor.u32 %v6647_v15, %v5436_v14  ;;  %2839 = vmatpush.bf16.msrb.mxu2 %v5757_v24  ;;  %v5214_v5 = vld [vmem:[#allocation6 + $0x2a8] sm:$0xf0]  ;;  %v5124_v14 = vld [vmem:[#allocation6 + $0x1d0] sm:$0xf] }
 0x2c5   :  { %v6719_v31 = vld [vmem:[#allocation6 + $0x6a4] sm:$0xf0]  ;;  %2852 = vmatpush.bf16.msrb.mxu3 %v5025_v37  ;;  %v6747_v21 = vld [vmem:[#allocation6 + $0x78c] sm:$0xf]  ;;  %v5217_v7 = vor.u32 %v6587_v27, %v5214_v5  ;;  %v6568_v15 = vld [vmem:[#allocation6 + $0x1ec] sm:$0xf0]  ;;  %v5029_v5 = vor.u32 %v6544_v62, %v5028_v23 }
 0x2c6   :  { %v5404_v38 = vld [vmem:[#allocation6 + $0x408] sm:$0xf]  ;;  %2864 = vmatpush.bf16.msra.mxu0 %v5345_v26  ;;  %v5725_v25 = vor.u32 %v6719_v31, %v5724_v30  ;;  %2827 = vmatpush.bf16.msrb.mxu1 %v5437_v36  ;;  %v5854_v22 = vld [vmem:[#allocation6 + $0x7a8] sm:$0xf0]  ;;  %v5125_v34 = vor.u32 %v6568_v15, %v5124_v14  ;;  %v6616_v11 = vld [vmem:[#allocation6 + $0x36c] sm:$0xf0] }
 0x2c7   :  { %v6639_v50 = vld [vmem:[#allocation6 + $0x424] sm:$0xf0]  ;;  %v6507_v10 = vld [vmem:[#allocation6 + $0xc] sm:$0xf]  ;;  %v5857_v47 = vor.u32 %v6747_v21, %v5854_v22  ;;  %v4996_v21 = vld [vmem:[#allocation6 + $0xd0] sm:$0xf] }
 0x2c8   :  { %v5692_v44 = vld [vmem:[#allocation6 + $0x648] sm:$0xf]  ;;  %v5405_v29 = vor.u32 %v6639_v50, %v5404_v38  ;;  %2840 = vmatpush.bf16.msrb.mxu2 %v5725_v25  ;;  %v4894_v48 = vld [vmem:[#allocation6 + $0x28] sm:$0xf0]  ;;  %v5092_v50 = vld [vmem:[#allocation6 + $0x190] sm:$0xf] }
 0x2c9   :  { %v6711_v46 = vld [vmem:[#allocation6 + $0x664] sm:$0xf0]  ;;  %2853 = vmatpush.bf16.msrb.mxu3 %v4993_v51  ;;  %v6667_v19 = vld [vmem:[#allocation6 + $0x50c] sm:$0xf]  ;;  %v4897_v26 = vor.u32 %v6507_v10, %v4894_v48  ;;  %v5093_v49 = vor.u32 %v6560_v20, %v5092_v50  ;;  %v6536_v22 = vld [vmem:[#allocation6 + $0xec] sm:$0xf0]  ;;  %v5317_v10 = vor.u32 %v6616_v11, %v5316_v3 }
 0x2ca   :  { %2865 = vmatpush.bf16.msra.mxu0 %v5313_v39  ;;  %v5693_v54 = vor.u32 %v6711_v46, %v5692_v44  ;;  %v5660_v16 = vld [vmem:[#allocation6 + $0x608] sm:$0xf]  ;;  %2828 = vmatpush.bf16.msrb.mxu1 %v5405_v29  ;;  %v5534_v13 = vld [vmem:[#allocation6 + $0x528] sm:$0xf0]  ;;  %v5380_v44 = vld [vmem:[#allocation6 + $0x3d0] sm:$0xf] }
 0x2cb   :  { %v6703_v43 = vld [vmem:[#allocation6 + $0x624] sm:$0xf0]  ;;  %v6579_v18 = vld [vmem:[#allocation6 + $0x24c] sm:$0xf]  ;;  %v5537_v32 = vor.u32 %v6667_v19, %v5534_v13  ;;  %v6632_v46 = vld [vmem:[#allocation6 + $0x3ec] sm:$0xf0] }
 0x2cc   :  { %2841 = vmatpush.bf16.msrb.mxu2 %v5693_v54  ;;  %v5661_v2 = vor.u32 %v6703_v43, %v5660_v16  ;;  %v5182_v24 = vld [vmem:[#allocation6 + $0x268] sm:$0xf0]  ;;  %v5381_v0 = vor.u32 %v6632_v46, %v5380_v44  ;;  %v5060_v54 = vld [vmem:[#allocation6 + $0x150] sm:$0xf] }
 0x2cd   :  { %2829 = vmatmul.bf16.vlgmr.msrb.gmra.mxu1 %v7332_v6  ;;  %2854 = vmatpush.bf16.msrb.mxu3 %v4961_v59  ;;  %v6739_v30 = vld [vmem:[#allocation6 + $0x74c] sm:$0xf]  ;;  %v5185_v37 = vor.u32 %v6579_v18, %v5182_v24  ;;  %v5348_v16 = vld [vmem:[#allocation6 + $0x390] sm:$0xf]  ;;  %v4997_v18 = vor.u32 %v6536_v22, %v4996_v21  ;;  %v6556_v21 = vld [vmem:[#allocation6 + $0x194] sm:$0xf] }
 0x2ce   :  { %2877 = vmatpush.bf16.msra.mxu1 %v5633_v53  ;;  %2866 = vmatpush.bf16.msra.mxu0 %v5281_v55  ;;  %v5822_v31 = vld [vmem:[#allocation6 + $0x768] sm:$0xf0]  ;;  %v6552_v55 = vld [vmem:[#allocation6 + $0x16c] sm:$0xf0]  ;;  %v5094_v22 = vld [vmem:[#allocation6 + $0x1b0] sm:$0xf0] }
 0x2cf   :  { %v6659_v36 = vld [vmem:[#allocation6 + $0x4cc] sm:$0xf]  ;;  %v5825_v1 = vor.u32 %v6739_v30, %v5822_v31  ;;  %v6624_v43 = vld [vmem:[#allocation6 + $0x3ac] sm:$0xf0]  ;;  %v5061_v4 = vor.u32 %v6552_v55, %v5060_v54 }
 0x2d0   :  { %2842 = vmatpush.bf16.msrb.mxu2 %v5661_v2  ;;  %v5502_v38 = vld [vmem:[#allocation6 + $0x4e8] sm:$0xf0]  ;;  %v5636_v48 = vld [vmem:[#allocation6 + $0x5d0] sm:$0xf] }
 0x2d1   :  { %2855 = vmatpush.bf16.msrb.mxu3 %v4929_v8  ;;  %v6571_v25 = vld [vmem:[#allocation6 + $0x20c] sm:$0xf]  ;;  %v5505_v28 = vor.u32 %v6659_v36, %v5502_v38  ;;  %v6696_v19 = vld [vmem:[#allocation6 + $0x5ec] sm:$0xf0] }
 0x2d2   :  { %2878 = vmatpush.bf16.msra.mxu1 %v5601_v61  ;;  %2867 = vmatpush.bf16.msra.mxu0 %v5249_v17  ;;  %v5150_v39 = vld [vmem:[#allocation6 + $0x228] sm:$0xf0]  ;;  %v5349_v61 = vor.u32 %v6624_v43, %v5348_v16  ;;  %v5284_v14 = vld [vmem:[#allocation6 + $0x310] sm:$0xf]  ;;  %v5637_v24 = vor.u32 %v6696_v19, %v5636_v48 }
 0x2d3   :  { %2843 = vmatmul.bf16.vlgmr.msrb.gmra.mxu2 %v7336_v35  ;;  %v6731_v40 = vld [vmem:[#allocation6 + $0x70c] sm:$0xf]  ;;  %v5153_v29 = vor.u32 %v6571_v25, %v5150_v39  ;;  %v6608_v15 = vld [vmem:[#allocation6 + $0x32c] sm:$0xf0] }
 0x2d4   :  { %2891 = vmatpush.bf16.msra.mxu2 %v5889_v45  ;;  %v5790_v41 = vld [vmem:[#allocation6 + $0x728] sm:$0xf0]  ;;  %v6528_v30 = vld [vmem:[#allocation6 + $0xac] sm:$0xf0] }
 0x2d5   :  { %2856 = vmatpush.bf16.msrb.mxu3 %v4897_v26  ;;  %v6651_v51 = vld [vmem:[#allocation6 + $0x48c] sm:$0xf]  ;;  %v5793_v63 = vor.u32 %v6731_v40, %v5790_v41  ;;  %v4964_v26 = vld [vmem:[#allocation6 + $0x90] sm:$0xf] }
 0x2d6   :  { %2879 = vmatpush.bf16.msra.mxu1 %v5569_v9  ;;  %2868 = vmatpush.bf16.msra.mxu0 %v5217_v7  ;;  %v5470_v53 = vld [vmem:[#allocation6 + $0x4a8] sm:$0xf0]  ;;  %v6688_v36 = vld [vmem:[#allocation6 + $0x5ac] sm:$0xf0]  ;;  %v4965_v39 = vor.u32 %v6528_v30, %v4964_v26  ;;  %v6548_v30 = vld [vmem:[#allocation6 + $0x154] sm:$0xf] }
 0x2d7   :  { %v6723_v56 = vld [vmem:[#allocation6 + $0x6cc] sm:$0xf]  ;;  %v5473_v58 = vor.u32 %v6651_v51, %v5470_v53  ;;  %v5252_v50 = vld [vmem:[#allocation6 + $0x2d0] sm:$0xf] }
 0x2d8   :  { %2892 = vmatpush.bf16.msra.mxu2 %v5857_v47  ;;  %2857 = vmatmul.bf16.vlgmr.msrb.gmra.mxu3 %v7313_v60  ;;  %v5758_v57 = vld [vmem:[#allocation6 + $0x6e8] sm:$0xf0]  ;;  %v6600_v20 = vld [vmem:[#allocation6 + $0x2ec] sm:$0xf0] }
 0x2d9   :  { %2905 = vmatpush.bf16.msra.mxu3 %v5125_v34  ;;  %v6643_v59 = vld [vmem:[#allocation6 + $0x44c] sm:$0xf]  ;;  %v5761_v12 = vor.u32 %v6723_v56, %v5758_v57  ;;  %v5604_v34 = vld [vmem:[#allocation6 + $0x590] sm:$0xf]  ;;  %v5253_v44 = vor.u32 %v6600_v20, %v5252_v50 }
 0x2da   :  { %2880 = vmatpush.bf16.msra.mxu1 %v5537_v32  ;;  %2869 = vmatpush.bf16.msra.mxu0 %v5185_v37  ;;  %v5438_v33 = vld [vmem:[#allocation6 + $0x468] sm:$0xf0]  ;;  %v5285_v32 = vor.u32 %v6608_v15, %v5284_v14  ;;  %v6760_v25 = vld [vmem:[#allocation6 + $0x7ec] sm:$0xf0]  ;;  %v5605_v40 = vor.u32 %v6688_v36, %v5604_v34  ;;  %v5097_v15 = vor.u32 %v6556_v21, %v5094_v22  ;;  %v5254_v21 = vld [vmem:[#allocation6 + $0x2f0] sm:$0xf0] }
 0x2db   :  { %v6715_v2 = vld [vmem:[#allocation6 + $0x68c] sm:$0xf]  ;;  %v5441_v45 = vor.u32 %v6643_v59, %v5438_v33  ;;  %v4932_v46 = vld [vmem:[#allocation6 + $0x50] sm:$0xf]  ;;  %v6564_v33 = vld [vmem:[#allocation6 + $0x1d4] sm:$0xf] }
 0x2dc   :  { %2893 = vmatpush.bf16.msra.mxu2 %v5825_v1  ;;  %v5726_v17 = vld [vmem:[#allocation6 + $0x6a8] sm:$0xf0]  ;;  %v5892_v1 = vld [vmem:[#allocation6 + $0x7d0] sm:$0xf]  ;;  %v6756_v22 = vld [vmem:[#allocation6 + $0x7d4] sm:$0xf] }
 0x2dd   :  { %2906 = vmatpush.bf16.msra.mxu3 %v5093_v49  ;;  %v6635_v27 = vld [vmem:[#allocation6 + $0x40c] sm:$0xf]  ;;  %v5729_v9 = vor.u32 %v6715_v2, %v5726_v17  ;;  %v5572_v49 = vld [vmem:[#allocation6 + $0x550] sm:$0xf] }
 0x2de   :  { %2881 = vmatpush.bf16.msra.mxu1 %v5505_v28  ;;  %2870 = vmatpush.bf16.msra.mxu0 %v5153_v29  ;;  %v5406_v8 = vld [vmem:[#allocation6 + $0x428] sm:$0xf0]  ;;  %v6520_v28 = vld [vmem:[#allocation6 + $0x6c] sm:$0xf0]  ;;  %v5893_v29 = vor.u32 %v6760_v25, %v5892_v1 }
 0x2df   :  { %v6707_v7 = vld [vmem:[#allocation6 + $0x64c] sm:$0xf]  ;;  %v5409_v47 = vor.u32 %v6635_v27, %v5406_v8  ;;  %v6680_v51 = vld [vmem:[#allocation6 + $0x56c] sm:$0xf0]  ;;  %v4933_v55 = vor.u32 %v6520_v28, %v4932_v46 }
 0x2e0   :  { %2894 = vmatpush.bf16.msra.mxu2 %v5793_v63  ;;  %v5694_v13 = vld [vmem:[#allocation6 + $0x668] sm:$0xf0]  ;;  %v5220_v53 = vld [vmem:[#allocation6 + $0x290] sm:$0xf]  ;;  %v5573_v57 = vor.u32 %v6680_v51, %v5572_v49  ;;  %v6612_v49 = vld [vmem:[#allocation6 + $0x354] sm:$0xf] }
 0x2e1   :  { %2871 = vmatmul.bf16.vlgmr.msra.gmra.mxu0 %v7317_v52  ;;  %2907 = vmatpush.bf16.msra.mxu3 %v5061_v4  ;;  %v5697_v31 = vor.u32 %v6707_v7, %v5694_v13  ;;  %v6699_v37 = vld [vmem:[#allocation6 + $0x60c] sm:$0xf]  ;;  %v6592_v63 = vld [vmem:[#allocation6 + $0x2ac] sm:$0xf0]  ;;  %v6628_v7 = vld [vmem:[#allocation6 + $0x3d4] sm:$0xf] }
 0x2e2   :  { %2919 = vmatpush.bf16.msrb.mxu0 %v5381_v0  ;;  %2882 = vmatpush.bf16.msra.mxu1 %v5473_v58  ;;  %v5662_v38 = vld [vmem:[#allocation6 + $0x628] sm:$0xf0]  ;;  %v5860_v0 = vld [vmem:[#allocation6 + $0x790] sm:$0xf]  ;;  %v5221_v16 = vor.u32 %v6592_v63, %v5220_v53  ;;  %v5382_v13 = vld [vmem:[#allocation6 + $0x3f0] sm:$0xf0] }
 0x2e3   :  { %v5665_v41 = vor.u32 %v6699_v37, %v5662_v38  ;;  %v6752_v54 = vld [vmem:[#allocation6 + $0x7ac] sm:$0xf0]  ;;  %v6620_v37 = vld [vmem:[#allocation6 + $0x394] sm:$0xf] }
 0x2e4   :  { %2895 = vmatpush.bf16.msra.mxu2 %v5761_v12  ;;  %v4900_v56 = vld [vmem:[#allocation6 + $0x10] sm:$0xf]  ;;  %v5861_v59 = vor.u32 %v6752_v54, %v5860_v0  ;;  %v5126_v12 = vld [vmem:[#allocation6 + $0x1f0] sm:$0xf0] }
 0x2e5   :  { %2908 = vmatpush.bf16.msra.mxu3 %v5029_v5  ;;  %v6512_v43 = vld [vmem:[#allocation6 + $0x2c] sm:$0xf0]  ;;  %v5129_v11 = vor.u32 %v6564_v33, %v5126_v12  ;;  %v5350_v38 = vld [vmem:[#allocation6 + $0x3b0] sm:$0xf0] }
 0x2e6   :  { %2920 = vmatpush.bf16.msrb.mxu0 %v5349_v61  ;;  %2883 = vmatpush.bf16.msra.mxu1 %v5441_v45  ;;  %v5540_v58 = vld [vmem:[#allocation6 + $0x510] sm:$0xf]  ;;  %v4901_v17 = vor.u32 %v6512_v43, %v4900_v56  ;;  %v4998_v56 = vld [vmem:[#allocation6 + $0xf0] sm:$0xf0] }
 0x2e7   :  { %v6672_v4 = vld [vmem:[#allocation6 + $0x52c] sm:$0xf0]  ;;  %v5638_v43 = vld [vmem:[#allocation6 + $0x5f0] sm:$0xf0] }
 0x2e8   :  { %2896 = vmatpush.bf16.msra.mxu2 %v5729_v9  ;;  %v5188_v61 = vld [vmem:[#allocation6 + $0x250] sm:$0xf]  ;;  %v5541_v3 = vor.u32 %v6672_v4, %v5540_v58  ;;  %v5286_v33 = vld [vmem:[#allocation6 + $0x330] sm:$0xf0] }
 0x2e9   :  { %2909 = vmatpush.bf16.msra.mxu3 %v4997_v18  ;;  %v6584_v23 = vld [vmem:[#allocation6 + $0x26c] sm:$0xf0] }
 0x2ea   :  { %2921 = vmatpush.bf16.msrb.mxu0 %v5317_v10  ;;  %2884 = vmatpush.bf16.msra.mxu1 %v5409_v47  ;;  %v5828_v62 = vld [vmem:[#allocation6 + $0x750] sm:$0xf]  ;;  %v5189_v5 = vor.u32 %v6584_v23, %v5188_v61 }
 0x2eb   :  { %v6744_v2 = vld [vmem:[#allocation6 + $0x76c] sm:$0xf0] }
 0x2ec   :  { %2897 = vmatpush.bf16.msra.mxu2 %v5697_v31  ;;  %v5508_v45 = vld [vmem:[#allocation6 + $0x4d0] sm:$0xf]  ;;  %v5829_v8 = vor.u32 %v6744_v2, %v5828_v62  ;;  %v5385_v31 = vor.u32 %v6628_v7, %v5382_v13  ;;  %v6524_v62 = vld [vmem:[#allocation6 + $0x94] sm:$0xf] }
 0x2ed   :  { %2885 = vmatmul.bf16.vlgmr.msra.gmra.mxu1 %v7332_v6  ;;  %2910 = vmatpush.bf16.msra.mxu3 %v4965_v39  ;;  %v6664_v27 = vld [vmem:[#allocation6 + $0x4ec] sm:$0xf0]  ;;  %v4966_v2 = vld [vmem:[#allocation6 + $0xb0] sm:$0xf0] }
 0x2ee   :  { %2933 = vmatpush.bf16.msrb.mxu1 %v5637_v24  ;;  %2922 = vmatpush.bf16.msrb.mxu0 %v5285_v32  ;;  %v5156_v9 = vld [vmem:[#allocation6 + $0x210] sm:$0xf]  ;;  %v5509_v14 = vor.u32 %v6664_v27, %v5508_v45  ;;  %v5062_v32 = vld [vmem:[#allocation6 + $0x170] sm:$0xf0] }
 0x2ef   :  { %v6576_v10 = vld [vmem:[#allocation6 + $0x22c] sm:$0xf0]  ;;  %v5065_v20 = vor.u32 %v6548_v30, %v5062_v32  ;;  %v5606_v45 = vld [vmem:[#allocation6 + $0x5b0] sm:$0xf0] }
 0x2f0   :  { %2898 = vmatpush.bf16.msra.mxu2 %v5665_v41  ;;  %v5796_v48 = vld [vmem:[#allocation6 + $0x710] sm:$0xf]  ;;  %v5157_v47 = vor.u32 %v6576_v10, %v5156_v9  ;;  %v5353_v41 = vor.u32 %v6620_v37, %v5350_v38  ;;  %v5894_v9 = vld [vmem:[#allocation6 + $0x7f0] sm:$0xf0]  ;;  %v4969_v10 = vor.u32 %v6524_v62, %v4966_v2  ;;  %v5068_v2 = vld [vmem:[#allocation6 + $0x158] sm:$0xf] }
 0x2f1   :  { %2911 = vmatpush.bf16.msra.mxu3 %v4933_v55  ;;  %v6736_v19 = vld [vmem:[#allocation6 + $0x72c] sm:$0xf0]  ;;  %v6532_v55 = vld [vmem:[#allocation6 + $0xd4] sm:$0xf] }
 0x2f2   :  { %2934 = vmatpush.bf16.msrb.mxu1 %v5605_v40  ;;  %2923 = vmatpush.bf16.msrb.mxu0 %v5253_v44  ;;  %v5797_v18 = vor.u32 %v6736_v19, %v5796_v48  ;;  %v5476_v24 = vld [vmem:[#allocation6 + $0x490] sm:$0xf]  ;;  %v6540_v40 = vld [vmem:[#allocation6 + $0x114] sm:$0xf]  ;;  %v5001_v61 = vor.u32 %v6532_v55, %v4998_v56  ;;  %v6561_v55 = vld [vmem:[#allocation6 + $0x1b4] sm:$0xf0] }
 0x2f3   :  { %2899 = vmatmul.bf16.vlgmr.msra.gmra.mxu2 %v7336_v35  ;;  %v6656_v26 = vld [vmem:[#allocation6 + $0x4ac] sm:$0xf0]  ;;  %v5030_v44 = vld [vmem:[#allocation6 + $0x130] sm:$0xf0] }
 0x2f4   :  { %2947 = vmatpush.bf16.msrb.mxu2 %v5893_v29  ;;  %v5764_v34 = vld [vmem:[#allocation6 + $0x6d0] sm:$0xf]  ;;  %v5477_v50 = vor.u32 %v6656_v26, %v5476_v24  ;;  %v5318_v29 = vld [vmem:[#allocation6 + $0x370] sm:$0xf0]  ;;  %v5033_v63 = vor.u32 %v6540_v40, %v5030_v44 }
 0x2f5   :  { %2912 = vmatpush.bf16.msra.mxu3 %v4901_v17  ;;  %v6728_v36 = vld [vmem:[#allocation6 + $0x6ec] sm:$0xf0]  ;;  %v6516_v13 = vld [vmem:[#allocation6 + $0x54] sm:$0xf] }
 0x2f6   :  { %2935 = vmatpush.bf16.msrb.mxu1 %v5573_v57  ;;  %2924 = vmatpush.bf16.msrb.mxu0 %v5221_v16  ;;  %v5765_v1 = vor.u32 %v6728_v36, %v5764_v34  ;;  %v5444_v25 = vld [vmem:[#allocation6 + $0x450] sm:$0xf]  ;;  %v5321_v57 = vor.u32 %v6612_v49, %v5318_v29  ;;  %v6692_v16 = vld [vmem:[#allocation6 + $0x5d4] sm:$0xf] }
 0x2f7   :  { %v6648_v39 = vld [vmem:[#allocation6 + $0x46c] sm:$0xf0]  ;;  %v5641_v23 = vor.u32 %v6692_v16, %v5638_v43  ;;  %v6588_v24 = vld [vmem:[#allocation6 + $0x294] sm:$0xf] }
 0x2f8   :  { %2948 = vmatpush.bf16.msrb.mxu2 %v5861_v59  ;;  %2913 = vmatmul.bf16.vlgmr.msra.gmra.mxu3 %v7313_v60  ;;  %v5732_v46 = vld [vmem:[#allocation6 + $0x690] sm:$0xf]  ;;  %v5445_v51 = vor.u32 %v6648_v39, %v5444_v25  ;;  %v6604_v59 = vld [vmem:[#allocation6 + $0x314] sm:$0xf]  ;;  %v5132_v25 = vld [vmem:[#allocation6 + $0x1d8] sm:$0xf] }
 0x2f9   :  { %2961 = vmatpush.bf16.msrb.mxu3 %v5129_v11  ;;  %v6720_v28 = vld [vmem:[#allocation6 + $0x6ac] sm:$0xf0]  ;;  %v6684_v11 = vld [vmem:[#allocation6 + $0x594] sm:$0xf]  ;;  %v6569_v39 = vld [vmem:[#allocation6 + $0x1f4] sm:$0xf0] }
 0x2fa   :  { %2936 = vmatpush.bf16.msrb.mxu1 %v5541_v3  ;;  %2925 = vmatpush.bf16.msrb.mxu0 %v5189_v5  ;;  %v5412_v53 = vld [vmem:[#allocation6 + $0x410] sm:$0xf]  ;;  %v5733_v0 = vor.u32 %v6720_v28, %v5732_v46  ;;  %v5289_v3 = vor.u32 %v6604_v59, %v5286_v33  ;;  %v5609_v48 = vor.u32 %v6684_v11, %v5606_v45  ;;  %v5222_v26 = vld [vmem:[#allocation6 + $0x2b0] sm:$0xf0] }
 0x2fb   :  { %v6640_v54 = vld [vmem:[#allocation6 + $0x42c] sm:$0xf0]  ;;  %v6748_v30 = vld [vmem:[#allocation6 + $0x794] sm:$0xf]  ;;  %v5225_v37 = vor.u32 %v6588_v24, %v5222_v26  ;;  %v5133_v29 = vor.u32 %v6569_v39, %v5132_v25  ;;  %v6609_v25 = vld [vmem:[#allocation6 + $0x334] sm:$0xf0] }
 0x2fc   :  { %2949 = vmatpush.bf16.msrb.mxu2 %v5829_v8  ;;  %v5700_v58 = vld [vmem:[#allocation6 + $0x650] sm:$0xf]  ;;  %v5413_v12 = vor.u32 %v6640_v54, %v5412_v53  ;;  %v6596_v8 = vld [vmem:[#allocation6 + $0x2d4] sm:$0xf]  ;;  %v5100_v54 = vld [vmem:[#allocation6 + $0x198] sm:$0xf] }
 0x2fd   :  { %2962 = vmatpush.bf16.msrb.mxu3 %v5097_v15  ;;  %v6712_v4 = vld [vmem:[#allocation6 + $0x66c] sm:$0xf0]  ;;  %v5257_v7 = vor.u32 %v6596_v8, %v5254_v21  ;;  %v6676_v15 = vld [vmem:[#allocation6 + $0x554] sm:$0xf]  ;;  %v5101_v33 = vor.u32 %v6561_v55, %v5100_v54  ;;  %v6601_v54 = vld [vmem:[#allocation6 + $0x2f4] sm:$0xf0] }
 0x2fe   :  { %2937 = vmatpush.bf16.msrb.mxu1 %v5509_v14  ;;  %2926 = vmatpush.bf16.msrb.mxu0 %v5157_v47  ;;  %v5701_v17 = vor.u32 %v6712_v4, %v5700_v58  ;;  %v5668_v27 = vld [vmem:[#allocation6 + $0x610] sm:$0xf]  ;;  %v4934_v14 = vld [vmem:[#allocation6 + $0x70] sm:$0xf0]  ;;  %v5897_v47 = vor.u32 %v6756_v22, %v5894_v9  ;;  %v5388_v58 = vld [vmem:[#allocation6 + $0x3d8] sm:$0xf] }
 0x2ff   :  { %v6704_v5 = vld [vmem:[#allocation6 + $0x62c] sm:$0xf0]  ;;  %v4937_v32 = vor.u32 %v6516_v13, %v4934_v14  ;;  %v6508_v34 = vld [vmem:[#allocation6 + $0x14] sm:$0xf]  ;;  %v6633_v4 = vld [vmem:[#allocation6 + $0x3f4] sm:$0xf0] }
 0x300   :  { %2950 = vmatpush.bf16.msrb.mxu2 %v5797_v18  ;;  %v5669_v19 = vor.u32 %v6704_v5, %v5668_v27  ;;  %v5574_v18 = vld [vmem:[#allocation6 + $0x570] sm:$0xf0]  ;;  %v5356_v27 = vld [vmem:[#allocation6 + $0x398] sm:$0xf] }
 0x301   :  { %2927 = vmatmul.bf16.vlgmr.msrb.gmra.mxu0 %v7317_v52  ;;  %2963 = vmatpush.bf16.msrb.mxu3 %v5065_v20  ;;  %v5577_v36 = vor.u32 %v6676_v15, %v5574_v18  ;;  %v4902_v38 = vld [vmem:[#allocation6 + $0x30] sm:$0xf0]  ;;  %v6625_v5 = vld [vmem:[#allocation6 + $0x3b4] sm:$0xf0] }
 0x302   :  { %2975 = vmatpush.bf16.msra.mxu0 %v5385_v31  ;;  %2938 = vmatpush.bf16.msrb.mxu1 %v5477_v50  ;;  %v5862_v31 = vld [vmem:[#allocation6 + $0x7b0] sm:$0xf0]  ;;  %v4905_v28 = vor.u32 %v6508_v34, %v4902_v38  ;;  %v5324_v15 = vld [vmem:[#allocation6 + $0x358] sm:$0xf] }
 0x303   :  { %v6668_v50 = vld [vmem:[#allocation6 + $0x514] sm:$0xf]  ;;  %v6537_v34 = vld [vmem:[#allocation6 + $0xf4] sm:$0xf0] }
 0x304   :  { %2951 = vmatpush.bf16.msrb.mxu2 %v5765_v1  ;;  %v5542_v20 = vld [vmem:[#allocation6 + $0x530] sm:$0xf0]  ;;  %v5865_v1 = vor.u32 %v6748_v30, %v5862_v31  ;;  %v6697_v38 = vld [vmem:[#allocation6 + $0x5f4] sm:$0xf0] }
 0x305   :  { %2964 = vmatpush.bf16.msrb.mxu3 %v5033_v63  ;;  %v6580_v40 = vld [vmem:[#allocation6 + $0x254] sm:$0xf]  ;;  %v5545_v49 = vor.u32 %v6668_v50, %v5542_v20  ;;  %v5900_v55 = vld [vmem:[#allocation6 + $0x7d8] sm:$0xf] }
 0x306   :  { %2976 = vmatpush.bf16.msra.mxu0 %v5353_v41  ;;  %2939 = vmatpush.bf16.msrb.mxu1 %v5445_v51  ;;  %v5190_v41 = vld [vmem:[#allocation6 + $0x270] sm:$0xf0] }
 0x307   :  { %v6740_v44 = vld [vmem:[#allocation6 + $0x754] sm:$0xf]  ;;  %v5193_v63 = vor.u32 %v6580_v40, %v5190_v41 }
 0x308   :  { %2952 = vmatpush.bf16.msrb.mxu2 %v5733_v0  ;;  %v5830_v46 = vld [vmem:[#allocation6 + $0x770] sm:$0xf0] }
 0x309   :  { %2965 = vmatpush.bf16.msrb.mxu3 %v5001_v61  ;;  %v6660_v51 = vld [vmem:[#allocation6 + $0x4d4] sm:$0xf]  ;;  %v5833_v0 = vor.u32 %v6740_v44, %v5830_v46  ;;  %v4972_v44 = vld [vmem:[#allocation6 + $0x98] sm:$0xf] }
 0x30a   :  { %2977 = vmatpush.bf16.msra.mxu0 %v5321_v57  ;;  %2940 = vmatpush.bf16.msrb.mxu1 %v5413_v12  ;;  %v5510_v53 = vld [vmem:[#allocation6 + $0x4f0] sm:$0xf0]  ;;  %v6529_v46 = vld [vmem:[#allocation6 + $0xb4] sm:$0xf0] }
 0x30b   :  { %v6572_v56 = vld [vmem:[#allocation6 + $0x214] sm:$0xf]  ;;  %v5513_v59 = vor.u32 %v6660_v51, %v5510_v53  ;;  %v6689_v51 = vld [vmem:[#allocation6 + $0x5b4] sm:$0xf0] }
 0x30c   :  { %2953 = vmatpush.bf16.msrb.mxu2 %v5701_v17  ;;  %v5158_v57 = vld [vmem:[#allocation6 + $0x230] sm:$0xf0]  ;;  %v5389_v17 = vor.u32 %v6633_v4, %v5388_v58 }
 0x30d   :  { %2941 = vmatmul.bf16.vlgmr.msrb.gmra.mxu1 %v7332_v6  ;;  %2966 = vmatpush.bf16.msrb.mxu3 %v4969_v10  ;;  %v6732_v16 = vld [vmem:[#allocation6 + $0x714] sm:$0xf]  ;;  %v5161_v12 = vor.u32 %v6572_v56, %v5158_v57  ;;  %v6761_v56 = vld [vmem:[#allocation6 + $0x7f4] sm:$0xf0]  ;;  %v4973_v57 = vor.u32 %v6529_v46, %v4972_v44 }
 0x30e   :  { %2989 = vmatpush.bf16.msra.mxu1 %v5641_v23  ;;  %2978 = vmatpush.bf16.msra.mxu0 %v5289_v3  ;;  %v5798_v43 = vld [vmem:[#allocation6 + $0x730] sm:$0xf0]  ;;  %v6553_v3 = vld [vmem:[#allocation6 + $0x174] sm:$0xf0] }
 0x30f   :  { %v5801_v61 = vor.u32 %v6732_v16, %v5798_v43  ;;  %v6652_v23 = vld [vmem:[#allocation6 + $0x494] sm:$0xf]  ;;  %v5069_v21 = vor.u32 %v6553_v3, %v5068_v2  ;;  %v5228_v2 = vld [vmem:[#allocation6 + $0x298] sm:$0xf] }
 0x310   :  { %2954 = vmatpush.bf16.msrb.mxu2 %v5669_v19  ;;  %v5478_v62 = vld [vmem:[#allocation6 + $0x4b0] sm:$0xf0]  ;;  %v5357_v19 = vor.u32 %v6625_v5, %v5356_v27  ;;  %v5868_v3 = vld [vmem:[#allocation6 + $0x798] sm:$0xf] }
 0x311   :  { %2967 = vmatpush.bf16.msrb.mxu3 %v4937_v32  ;;  %v6724_v11 = vld [vmem:[#allocation6 + $0x6d4] sm:$0xf]  ;;  %v5481_v8 = vor.u32 %v6652_v23, %v5478_v62  ;;  %v5004_v32 = vld [vmem:[#allocation6 + $0xd8] sm:$0xf]  ;;  %v5901_v23 = vor.u32 %v6761_v56, %v5900_v55 }
 0x312   :  { %2990 = vmatpush.bf16.msra.mxu1 %v5609_v48  ;;  %2979 = vmatpush.bf16.msra.mxu0 %v5257_v7  ;;  %v5766_v45 = vld [vmem:[#allocation6 + $0x6f0] sm:$0xf0]  ;;  %v5036_v48 = vld [vmem:[#allocation6 + $0x118] sm:$0xf]  ;;  %v5005_v40 = vor.u32 %v6537_v34, %v5004_v32 }
 0x313   :  { %2955 = vmatmul.bf16.vlgmr.msrb.gmra.mxu2 %v7336_v35  ;;  %v5769_v22 = vor.u32 %v6724_v11, %v5766_v45  ;;  %v6644_v9 = vld [vmem:[#allocation6 + $0x454] sm:$0xf]  ;;  %v6545_v7 = vld [vmem:[#allocation6 + $0x134] sm:$0xf0] }
 0x314   :  { %3003 = vmatpush.bf16.msra.mxu2 %v5897_v47  ;;  %v5446_v10 = vld [vmem:[#allocation6 + $0x470] sm:$0xf0]  ;;  %v6617_v47 = vld [vmem:[#allocation6 + $0x374] sm:$0xf0]  ;;  %v5037_v26 = vor.u32 %v6545_v7, %v5036_v48  ;;  %v5134_v7 = vld [vmem:[#allocation6 + $0x1f8] sm:$0xf0] }
 0x315   :  { %2968 = vmatpush.bf16.msrb.mxu3 %v4905_v28  ;;  %v6716_v13 = vld [vmem:[#allocation6 + $0x694] sm:$0xf]  ;;  %v5449_v18 = vor.u32 %v6644_v9, %v5446_v10  ;;  %v6681_v62 = vld [vmem:[#allocation6 + $0x574] sm:$0xf0] }
 0x316   :  { %2991 = vmatpush.bf16.msra.mxu1 %v5577_v36  ;;  %2980 = vmatpush.bf16.msra.mxu0 %v5225_v37  ;;  %v5734_v14 = vld [vmem:[#allocation6 + $0x6b0] sm:$0xf0]  ;;  %v5325_v36 = vor.u32 %v6617_v47, %v5324_v15  ;;  %v5644_v37 = vld [vmem:[#allocation6 + $0x5d8] sm:$0xf] }
 0x317   :  { %v6636_v24 = vld [vmem:[#allocation6 + $0x414] sm:$0xf]  ;;  %v5737_v30 = vor.u32 %v6716_v13, %v5734_v14  ;;  %v5645_v41 = vor.u32 %v6697_v38, %v5644_v37  ;;  %v6753_v11 = vld [vmem:[#allocation6 + $0x7b4] sm:$0xf0]  ;;  %v5102_v37 = vld [vmem:[#allocation6 + $0x1b8] sm:$0xf0] }
 0x318   :  { %3004 = vmatpush.bf16.msra.mxu2 %v5865_v1  ;;  %2969 = vmatmul.bf16.vlgmr.msrb.gmra.mxu3 %v7313_v60  ;;  %v5414_v31 = vld [vmem:[#allocation6 + $0x430] sm:$0xf0]  ;;  %v5292_v1 = vld [vmem:[#allocation6 + $0x318] sm:$0xf]  ;;  %v5869_v48 = vor.u32 %v6753_v11, %v5868_v3 }
 0x319   :  { %3017 = vmatpush.bf16.msra.mxu3 %v5133_v29  ;;  %v6708_v50 = vld [vmem:[#allocation6 + $0x654] sm:$0xf]  ;;  %v5417_v39 = vor.u32 %v6636_v24, %v5414_v31  ;;  %v5612_v29 = vld [vmem:[#allocation6 + $0x598] sm:$0xf] }
 0x31a   :  { %2992 = vmatpush.bf16.msra.mxu1 %v5545_v49  ;;  %2981 = vmatpush.bf16.msra.mxu0 %v5193_v63  ;;  %v5702_v20 = vld [vmem:[#allocation6 + $0x670] sm:$0xf0]  ;;  %v5293_v49 = vor.u32 %v6609_v25, %v5292_v1  ;;  %v5613_v16 = vor.u32 %v6689_v51, %v5612_v29  ;;  %v4908_v27 = vld [vmem:[#allocation6 + $0x18] sm:$0xf] }
 0x31b   :  { %v5705_v28 = vor.u32 %v6708_v50, %v5702_v20  ;;  %v6700_v53 = vld [vmem:[#allocation6 + $0x614] sm:$0xf]  ;;  %v7356_v43 = vpop.f32.mrf.mxu3  ;;  %v6673_v9 = vld [vmem:[#allocation6 + $0x534] sm:$0xf0] }
 0x31c   :  { %3005 = vmatpush.bf16.msra.mxu2 %v5833_v0  ;;  %v5670_v63 = vld [vmem:[#allocation6 + $0x630] sm:$0xf0]  ;;  %v5260_v0 = vld [vmem:[#allocation6 + $0x2d8] sm:$0xf] }
 0x31d   :  { %3018 = vmatpush.bf16.msra.mxu3 %v5101_v33  ;;  %v5673_v58 = vor.u32 %v6700_v53, %v5670_v63  ;;  %v5261_v4 = vor.u32 %v6601_v54, %v5260_v0  ;;  %v6521_v33 = vld [vmem:[#allocation6 + $0x74] sm:$0xf0]  ;;  %v6549_v63 = vld [vmem:[#allocation6 + $0x15c] sm:$0xf] }
 0x31e   :  { %2993 = vmatpush.bf16.msra.mxu1 %v5513_v59  ;;  %2982 = vmatpush.bf16.msra.mxu0 %v5161_v12  ;;  %v4940_v59 = vld [vmem:[#allocation6 + $0x58] sm:$0xf]  ;;  %v5070_v54 = vld [vmem:[#allocation6 + $0x178] sm:$0xf0] }
 0x31f   :  { %v5580_v12 = vld [vmem:[#allocation6 + $0x558] sm:$0xf]  ;;  %v4941_v45 = vor.u32 %v6521_v33, %v4940_v59  ;;  %v5073_v33 = vor.u32 %v6549_v63, %v5070_v54  ;;  %v5902_v63 = vld [vmem:[#allocation6 + $0x7f8] sm:$0xf0] }
 0x320   :  { %3006 = vmatpush.bf16.msra.mxu2 %v5801_v61  ;;  %v7358_v61 = vpop.f32.mrf.mxu0  ;;  %v5581_v5 = vor.u32 %v6681_v62, %v5580_v12  ;;  %v5196_v13 = vld [vmem:[#allocation6 + $0x258] sm:$0xf]  ;;  %v6541_v62 = vld [vmem:[#allocation6 + $0x11c] sm:$0xf] }
 0x321   :  { %2983 = vmatmul.bf16.vlgmr.msra.gmra.mxu0 %v7317_v52  ;;  %3019 = vmatpush.bf16.msra.mxu3 %v5069_v21  ;;  %v6513_v21 = vld [vmem:[#allocation6 + $0x34] sm:$0xf0] }
 0x322   :  { %3031 = vmatpush.bf16.msrb.mxu0 %v5389_v17  ;;  %2994 = vmatpush.bf16.msra.mxu1 %v5481_v8  ;;  %v6593_v17 = vld [vmem:[#allocation6 + $0x2b4] sm:$0xf0] }
 0x323   :  { %v5229_v8 = vor.u32 %v6593_v17, %v5228_v2  ;;  %v6585_v14 = vld [vmem:[#allocation6 + $0x274] sm:$0xf0]  ;;  %v2692_v50 = vpop.f32.mrf.mxu3  ;;  %v5038_v2 = vld [vmem:[#allocation6 + $0x138] sm:$0xf0] }
 0x324   :  { %3007 = vmatpush.bf16.msra.mxu2 %v5769_v22  ;;  %v5548_v22 = vld [vmem:[#allocation6 + $0x518] sm:$0xf]  ;;  %v5197_v32 = vor.u32 %v6585_v14, %v5196_v13  ;;  %v6533_v14 = vld [vmem:[#allocation6 + $0xdc] sm:$0xf] }
 0x325   :  { %3020 = vmatpush.bf16.msra.mxu3 %v5037_v26  ;;  %v5836_v15 = vld [vmem:[#allocation6 + $0x758] sm:$0xf]  ;;  %v5549_v24 = vor.u32 %v6673_v9, %v5548_v22  ;;  %v2705_v9 = vadd.f32 %v7358_v61, %v7356_v43  ;;  %v6605_v61 = vld [vmem:[#allocation6 + $0x31c] sm:$0xf] }
 0x326   :  { %3032 = vmatpush.bf16.msrb.mxu0 %v5357_v19  ;;  %2995 = vmatpush.bf16.msra.mxu1 %v5449_v18  ;;  %v7361_v10 = vpop.f32.mrf.mxu1  ;;  %v6565_v19 = vld [vmem:[#allocation6 + $0x1dc] sm:$0xf]  ;;  %v6745_v47 = vld [vmem:[#allocation6 + $0x774] sm:$0xf0]  ;;  %v4909_v18 = vor.u32 %v6513_v21, %v4908_v27  ;;  %v5041_v21 = vor.u32 %v6541_v62, %v5038_v2 }
 0x327   :  { %v5137_v26 = vor.u32 %v6565_v19, %v5134_v7  ;;  %v6665_v31 = vld [vmem:[#allocation6 + $0x4f4] sm:$0xf0]  ;;  %v5837_v34 = vor.u32 %v6745_v47, %v5836_v15  ;;  %v5326_v27 = vld [vmem:[#allocation6 + $0x378] sm:$0xf0] }
 0x328   :  { %3008 = vmatpush.bf16.msra.mxu2 %v5737_v30  ;;  %v5516_v30 = vld [vmem:[#allocation6 + $0x4d8] sm:$0xf]  ;;  %v5006_v15 = vld [vmem:[#allocation6 + $0xf8] sm:$0xf0] }
 0x329   :  { %3021 = vmatpush.bf16.msra.mxu3 %v5005_v40  ;;  %v5164_v38 = vld [vmem:[#allocation6 + $0x218] sm:$0xf]  ;;  %v6629_v40 = vld [vmem:[#allocation6 + $0x3dc] sm:$0xf]  ;;  %v5517_v44 = vor.u32 %v6665_v31, %v5516_v30  ;;  %v2719_v30 = vadd.f32 %v7361_v10, %v2705_v9 }
 0x32a   :  { %3033 = vmatpush.bf16.msrb.mxu0 %v5325_v36  ;;  %2996 = vmatpush.bf16.msra.mxu1 %v5417_v39  ;;  %v6557_v36 = vld [vmem:[#allocation6 + $0x19c] sm:$0xf]  ;;  %v6577_v20 = vld [vmem:[#allocation6 + $0x234] sm:$0xf0]  ;;  %v2706_v39 = vpop.f32.mrf.mxu0 }
 0x32b   :  { %v5804_v1 = vld [vmem:[#allocation6 + $0x718] sm:$0xf]  ;;  %v5105_v46 = vor.u32 %v6557_v36, %v5102_v37  ;;  %v5582_v62 = vld [vmem:[#allocation6 + $0x578] sm:$0xf0] }
 0x32c   :  { %3009 = vmatpush.bf16.msra.mxu2 %v5705_v28  ;;  %v6737_v25 = vld [vmem:[#allocation6 + $0x734] sm:$0xf0]  ;;  %v6589_v2 = vld [vmem:[#allocation6 + $0x29c] sm:$0xf] }
 0x32d   :  { %2997 = vmatmul.bf16.vlgmr.msra.gmra.mxu1 %v7332_v6  ;;  %3022 = vmatpush.bf16.msra.mxu3 %v4973_v57  ;;  %v5805_v29 = vor.u32 %v6737_v25, %v5804_v1  ;;  %v5484_v51 = vld [vmem:[#allocation6 + $0x498] sm:$0xf]  ;;  %v6621_v57 = vld [vmem:[#allocation6 + $0x39c] sm:$0xf] }
 0x32e   :  { %3045 = vmatpush.bf16.msrb.mxu1 %v5645_v41  ;;  %3034 = vmatpush.bf16.msrb.mxu0 %v5293_v49  ;;  %v5390_v41 = vld [vmem:[#allocation6 + $0x3f8] sm:$0xf0]  ;;  %v2720_v28 = vpop.f32.mrf.mxu1  ;;  %v5165_v49 = vor.u32 %v6577_v20, %v5164_v38  ;;  %v6657_v53 = vld [vmem:[#allocation6 + $0x4b4] sm:$0xf0]  ;;  %v5009_v38 = vor.u32 %v6533_v14, %v5006_v15 }
 0x32f   :  { %v5393_v0 = vor.u32 %v6629_v40, %v5390_v41  ;;  %v5772_v55 = vld [vmem:[#allocation6 + $0x6d8] sm:$0xf]  ;;  %v6525_v25 = vld [vmem:[#allocation6 + $0x9c] sm:$0xf] }
 0x330   :  { %3010 = vmatpush.bf16.msra.mxu2 %v5673_v58  ;;  %v6729_v56 = vld [vmem:[#allocation6 + $0x6f4] sm:$0xf0]  ;;  %v5485_v58 = vor.u32 %v6657_v53, %v5484_v51  ;;  %v6685_v41 = vld [vmem:[#allocation6 + $0x59c] sm:$0xf] }
 0x331   :  { %3023 = vmatpush.bf16.msra.mxu3 %v4941_v45  ;;  %v5452_v59 = vld [vmem:[#allocation6 + $0x458] sm:$0xf]  ;;  %v5773_v12 = vor.u32 %v6729_v56, %v5772_v55  ;;  %v6613_v45 = vld [vmem:[#allocation6 + $0x35c] sm:$0xf] }
 0x332   :  { %3046 = vmatpush.bf16.msrb.mxu1 %v5613_v16  ;;  %3035 = vmatpush.bf16.msrb.mxu0 %v5261_v4  ;;  %v5358_v16 = vld [vmem:[#allocation6 + $0x3b8] sm:$0xf0]  ;;  %v2732_v4 = vpop.f32.mrf.mxu2  ;;  %v5740_v3 = vld [vmem:[#allocation6 + $0x698] sm:$0xf]  ;;  %v7370_v19 = vpop.f32.mrf.mxu0  ;;  %v5329_v47 = vor.u32 %v6613_v45, %v5326_v27 }
 0x333   :  { %3011 = vmatmul.bf16.vlgmr.msra.gmra.mxu2 %v7336_v35  ;;  %v5361_v17 = vor.u32 %v6621_v57, %v5358_v16  ;;  %v6721_v11 = vld [vmem:[#allocation6 + $0x6b4] sm:$0xf0]  ;;  %v5262_v51 = vld [vmem:[#allocation6 + $0x2f8] sm:$0xf0] }
 0x334   :  { %3059 = vmatpush.bf16.msrb.mxu2 %v5901_v23  ;;  %v6649_v23 = vld [vmem:[#allocation6 + $0x474] sm:$0xf0]  ;;  %v5741_v7 = vor.u32 %v6721_v11, %v5740_v3  ;;  %v6757_v53 = vld [vmem:[#allocation6 + $0x7dc] sm:$0xf] }
 0x335   :  { %3024 = vmatpush.bf16.msra.mxu3 %v4909_v18  ;;  %v5420_v22 = vld [vmem:[#allocation6 + $0x418] sm:$0xf]  ;;  %v6693_v18 = vld [vmem:[#allocation6 + $0x5dc] sm:$0xf] }
 0x336   :  { %3047 = vmatpush.bf16.msrb.mxu1 %v5581_v5  ;;  %3036 = vmatpush.bf16.msrb.mxu0 %v5229_v8  ;;  %v7365_v5 = vpop.f32.mrf.mxu3  ;;  %v5453_v8 = vor.u32 %v6649_v23, %v5452_v59  ;;  %v6641_v13 = vld [vmem:[#allocation6 + $0x434] sm:$0xf0]  ;;  %v6677_v59 = vld [vmem:[#allocation6 + $0x55c] sm:$0xf]  ;;  %v5905_v23 = vor.u32 %v6757_v53, %v5902_v63  ;;  %v5956_v63 = vld [vmem:[#allocation7 + $0x60] sm:$0xf] }
 0x337   :  { %v6713_v43 = vld [vmem:[#allocation6 + $0x674] sm:$0xf0]  ;;  %v5421_v36 = vor.u32 %v6641_v13, %v5420_v22  ;;  %v6749_v3 = vld [vmem:[#allocation6 + $0x79c] sm:$0xf]  ;;  %v5585_v9 = vor.u32 %v6677_v59, %v5582_v62 }
 0x338   :  { %3060 = vmatpush.bf16.msrb.mxu2 %v5869_v48  ;;  %3025 = vmatmul.bf16.vlgmr.msra.gmra.mxu3 %v7313_v60  ;;  %v2707_v48 = vadd.f32 %v2706_v39, %v2692_v50  ;;  %v7375_v50 = vadd.f32 %v2732_v4, %v2719_v30  ;;  %v4974_v39 = vld [vmem:[#allocation6 + $0xb8] sm:$0xf0] }
 0x339   :  { %3073 = vmatpush.bf16.msrb.mxu3 %v5137_v26  ;;  %v5708_v26 = vld [vmem:[#allocation6 + $0x658] sm:$0xf]  ;;  %v4977_v54 = vor.u32 %v6525_v25, %v4974_v39  ;;  %v4942_v4 = vld [vmem:[#allocation6 + $0x78] sm:$0xf0] }
 0x33a   :  { %3048 = vmatpush.bf16.msrb.mxu1 %v5549_v24  ;;  %3037 = vmatpush.bf16.msrb.mxu0 %v5197_v32  ;;  %v5646_v24 = vld [vmem:[#allocation6 + $0x5f8] sm:$0xf0]  ;;  %v2721_v31 = vadd.f32 %v2720_v28, %v2707_v48  ;;  %v7373_v32 = vpop.f32.mrf.mxu1  ;;  %v2734_v37 = vpop.f32.mrf.mxu2  ;;  %v5709_v10 = vor.u32 %v6713_v43, %v5708_v26  ;;  %v6777_v43 = vld [vmem:[#allocation7 + $0x74] sm:$0xf0] }
 0x33b   :  { %v5649_v1 = vor.u32 %v6693_v18, %v5646_v24  ;;  %v5870_v11 = vld [vmem:[#allocation6 + $0x7b8] sm:$0xf0] }
 0x33c   :  { %3061 = vmatpush.bf16.msrb.mxu2 %v5837_v34  ;;  %v5294_v34 = vld [vmem:[#allocation6 + $0x338] sm:$0xf0]  ;;  %v7377_v20 = vadd.f32 %v2734_v37, %v2721_v31  ;;  %v5964_v31 = vld [vmem:[#allocation7 + $0x70] sm:$0xf] }
 0x33d   :  { %3074 = vmatpush.bf16.msrb.mxu3 %v5105_v46  ;;  %v5297_v40 = vor.u32 %v6605_v61, %v5294_v34  ;;  %v5676_v46 = vld [vmem:[#allocation6 + $0x618] sm:$0xf]  ;;  %v6509_v22 = vld [vmem:[#allocation6 + $0x1c] sm:$0xf] }
 0x33e   :  { %3049 = vmatpush.bf16.msrb.mxu1 %v5517_v44  ;;  %3038 = vmatpush.bf16.msrb.mxu0 %v5165_v49  ;;  %v5614_v44 = vld [vmem:[#allocation6 + $0x5b8] sm:$0xf0]  ;;  %v3131_v28 = vadd.f32 %v7377_v20, %v7375_v50  ;;  %v6705_v49 = vld [vmem:[#allocation6 + $0x634] sm:$0xf0]  ;;  %v2748_v56 = vpop.f32.mrf.mxu3 }
 0x33f   :  { %v5617_v55 = vor.u32 %v6685_v41, %v5614_v44  ;;  %v5677_v57 = vor.u32 %v6705_v49, %v5676_v46  ;;  %v6669_v13 = vld [vmem:[#allocation6 + $0x51c] sm:$0xf]  ;;  %v5965_v49 = vor.u32 %v6777_v43, %v5964_v31 }
 0x340   :  { %3062 = vmatpush.bf16.msrb.mxu2 %v5805_v29  ;;  %v6597_v29 = vld [vmem:[#allocation6 + $0x2dc] sm:$0xf] }
 0x341   :  { %3039 = vmatmul.bf16.vlgmr.msrb.gmra.mxu0 %v7317_v52  ;;  %3075 = vmatpush.bf16.msrb.mxu3 %v5073_v33  ;;  %v5265_v16 = vor.u32 %v6597_v29, %v5262_v51  ;;  %v2762_v33 = vpop.f32.mrf.mxu0  ;;  %v5550_v14 = vld [vmem:[#allocation6 + $0x538] sm:$0xf0] }
 0x342   :  { %3087 = vmatpush.bf16.msra.mxu0 %v5393_v0  ;;  %3050 = vmatpush.bf16.msrb.mxu1 %v5485_v58  ;;  %v3132_v0 = vrot.slane %v3131_v28, 4  ;;  %v6517_v58 = vld [vmem:[#allocation6 + $0x5c] sm:$0xf]  ;;  %v2776_v27 = vpop.f32.mrf.mxu1 }
 0x343   :  { %v6581_v18 = vld [vmem:[#allocation6 + $0x25c] sm:$0xf] }
 0x344   :  { %3063 = vmatpush.bf16.msrb.mxu2 %v5773_v12  ;;  %v3133_v12 = vadd.f32 %v3132_v0, %v3131_v28  ;;  %v5198_v24 = vld [vmem:[#allocation6 + $0x278] sm:$0xf0] }
 0x345   :  { %3076 = vmatpush.bf16.msrb.mxu3 %v5041_v21  ;;  %v4945_v21 = vor.u32 %v6517_v58, %v4942_v4  ;;  %v6741_v26 = vld [vmem:[#allocation6 + $0x75c] sm:$0xf]  ;;  %v5201_v25 = vor.u32 %v6581_v18, %v5198_v24 }
 0x346   :  { %3088 = vmatpush.bf16.msra.mxu0 %v5361_v17  ;;  %3051 = vmatpush.bf16.msrb.mxu1 %v5453_v8  ;;  %v5230_v17 = vld [vmem:[#allocation6 + $0x2b8] sm:$0xf0]  ;;  %v3134_v45 = vrot.slane %v3133_v12, 2  ;;  %v2788_v8 = vpop.f32.mrf.mxu2  ;;  %v7386_v51 = vpop.f32.mrf.mxu3 }
 0x347   :  { %v5233_v48 = vor.u32 %v6589_v2, %v5230_v17  ;;  %v5838_v30 = vld [vmem:[#allocation6 + $0x778] sm:$0xf0] }
 0x348   :  { %3064 = vmatpush.bf16.msrb.mxu2 %v5741_v7  ;;  %v4910_v7 = vld [vmem:[#allocation6 + $0x38] sm:$0xf0]  ;;  %v3135_v15 = vadd.f32 %v3134_v45, %v3133_v12  ;;  %v5841_v44 = vor.u32 %v6741_v26, %v5838_v30 }
 0x349   :  { %3077 = vmatpush.bf16.msrb.mxu3 %v5009_v38  ;;  %v4913_v34 = vor.u32 %v6509_v22, %v4910_v7  ;;  %v6661_v37 = vld [vmem:[#allocation6 + $0x4dc] sm:$0xf]  ;;  %v2761_v38 = vadd.f32 %v7370_v19, %v7365_v5  ;;  %v6775_v5 = vld [vmem:[#allocation7 + $0x64] sm:$0xf0]  ;;  %v7389_v0 = vpop.f32.mrf.mxu0 }
 0x34a   :  { %3089 = vmatpush.bf16.msra.mxu0 %v5329_v47  ;;  %3052 = vmatpush.bf16.msrb.mxu1 %v5421_v36  ;;  %v5873_v47 = vor.u32 %v6749_v3, %v5870_v11  ;;  %v3136_v61 = vrot.slane %v3135_v15, 1  ;;  %v5553_v36 = vor.u32 %v6669_v13, %v5550_v14  ;;  %v5518_v39 = vld [vmem:[#allocation6 + $0x4f8] sm:$0xf0]  ;;  %v7401_v59 = vpop.f32.mrf.mxu1  ;;  %v5957_v62 = vor.u32 %v6775_v5, %v5956_v63  ;;  %v5948_v3 = vld [vmem:[#allocation7 + $0x50] sm:$0xf] }
 0x34b   :  { %v6733_v46 = vld [vmem:[#allocation6 + $0x71c] sm:$0xf]  ;;  %v2775_v29 = vadd.f32 %v7373_v32, %v2761_v38  ;;  %v5940_v14 = vld [vmem:[#allocation7 + $0x40] sm:$0xf] }
 0x34c   :  { %3065 = vmatpush.bf16.msrb.mxu2 %v5709_v10  ;;  %v6573_v10 = vld [vmem:[#allocation6 + $0x21c] sm:$0xf]  ;;  %v3137_v41 = vadd.f32 %v3136_v61, %v3135_v15  ;;  %v6771_v15 = vld [vmem:[#allocation7 + $0x44] sm:$0xf0] }
 0x34d   :  { %3053 = vmatmul.bf16.vlgmr.msrb.gmra.mxu1 %v7332_v6  ;;  %3078 = vmatpush.bf16.msrb.mxu3 %v4977_v54  ;;  %v5806_v28 = vld [vmem:[#allocation6 + $0x738] sm:$0xf0]  ;;  %v5941_v38 = vor.u32 %v6771_v15, %v5940_v14 }
 0x34e   :  { %3101 = vmatpush.bf16.msra.mxu1 %v5649_v1  ;;  %3090 = vmatpush.bf16.msra.mxu0 %v5297_v40  ;;  %v2763_v1 = vadd.f32 %v2762_v33, %v2748_v56  ;;  %v5166_v40 = vld [vmem:[#allocation6 + $0x238] sm:$0xf0]  ;;  %v3187_v19 = vmul.f32 %v3137_v41, %v7140_v42  ;;  %v2790_v54 = vpop.f32.mrf.mxu2  ;;  %v5809_v32 = vor.u32 %v6733_v46, %v5806_v28  ;;  %v2804_v61 = vpop.f32.mrf.mxu3 }
 0x34f   :  { %v5169_v56 = vor.u32 %v6573_v10, %v5166_v40  ;;  %v6653_v33 = vld [vmem:[#allocation6 + $0x49c] sm:$0xf]  ;;  %v5932_v40 = vld [vmem:[#allocation7 + $0x30] sm:$0xf]  ;;  %v2817_v28 = vadd.f32 %v7389_v0, %v7386_v51  ;;  %v6767_v51 = vld [vmem:[#allocation7 + $0x24] sm:$0xf0] }
 0x350   :  { %3066 = vmatpush.bf16.msrb.mxu2 %v5677_v57  ;;  %v2777_v53 = vadd.f32 %v2776_v27, %v2763_v1  ;;  %v7391_v57 = vadd.f32 %v2788_v8, %v2775_v29  ;;  %v7396_v58 = vsub.f32 %v7375_v50, %v3187_v19  ;;  %v7399_v4 = vsub.f32 %v7377_v20, %v3187_v19  ;;  %v5486_v12 = vld [vmem:[#allocation6 + $0x4b8] sm:$0xf0]  ;;  %v6773_v50 = vld [vmem:[#allocation7 + $0x54] sm:$0xf0]  ;;  %v6028_v1 = vld [vmem:[#allocation7 + $0xf0] sm:$0xf] }
 0x351   :  { %3079 = vmatpush.bf16.msrb.mxu3 %v4945_v21  ;;  %v5774_v17 = vld [vmem:[#allocation6 + $0x6f8] sm:$0xf0]  ;;  %v5489_v27 = vor.u32 %v6653_v33, %v5486_v12 }
 0x352   :  { %3102 = vmatpush.bf16.msra.mxu1 %v5617_v55  ;;  %3091 = vmatpush.bf16.msra.mxu0 %v5265_v16  ;;  %v5521_v55 = vor.u32 %v6661_v37, %v5518_v39  ;;  %v7393_v16 = vadd.f32 %v2790_v54, %v2777_v53  ;;  %v3211_v20 = vmul.f32 %v7396_v58, %v7396_v58  ;;  %v5454_v22 = vld [vmem:[#allocation6 + $0x478] sm:$0xf0]  ;;  %v2832_v46 = vpop.f32.mrf.mxu1 }
 0x353   :  { %3067 = vmatmul.bf16.vlgmr.msrb.gmra.mxu2 %v7336_v35  ;;  %v3219_v11 = vmul.f32 %v7399_v4, %v7399_v4  ;;  %v5742_v13 = vld [vmem:[#allocation6 + $0x6b8] sm:$0xf0] }
 0x354   :  { %3115 = vmatpush.bf16.msra.mxu2 %v5905_v23  ;;  %v6725_v23 = vld [vmem:[#allocation6 + $0x6dc] sm:$0xf]  ;;  %v3138_v2 = vadd.f32 %v7393_v16, %v7391_v57 }
 0x355   :  { %3080 = vmatpush.bf16.msrb.mxu3 %v4913_v34  ;;  %v3227_v8 = vadd.f32 %v3219_v11, %v3211_v20  ;;  %v5777_v21 = vor.u32 %v6725_v23, %v5774_v17  ;;  %v6637_v30 = vld [vmem:[#allocation6 + $0x41c] sm:$0xf]  ;;  %v2818_v34 = vpop.f32.mrf.mxu0  ;;  %v6012_v11 = vld [vmem:[#allocation7 + $0xd0] sm:$0xf] }
 0x356   :  { %3103 = vmatpush.bf16.msra.mxu1 %v5585_v9  ;;  %3092 = vmatpush.bf16.msra.mxu0 %v5233_v48  ;;  %v3139_v45 = vrot.slane %v3138_v2, 4  ;;  %v6717_v9 = vld [vmem:[#allocation6 + $0x69c] sm:$0xf]  ;;  %v5949_v48 = vor.u32 %v6773_v50, %v5948_v3  ;;  %v2844_v18 = vpop.f32.mrf.mxu2 }
 0x357   :  { %v5422_v31 = vld [vmem:[#allocation6 + $0x438] sm:$0xf0] }
 0x358   :  { %3116 = vmatpush.bf16.msra.mxu2 %v5873_v47  ;;  %3081 = vmatmul.bf16.vlgmr.msrb.gmra.mxu3 %v7313_v60  ;;  %v6645_v60 = vld [vmem:[#allocation6 + $0x45c] sm:$0xf]  ;;  %v3140_v7 = vadd.f32 %v3139_v45, %v3138_v2  ;;  %v3228_v47 = vrot.slane %v3227_v8, 4  ;;  %v5425_v53 = vor.u32 %v6637_v30, %v5422_v31  ;;  %v5908_v31 = vld [vmem:[#allocation7] sm:$0xf] }
 0x359   :  { %4291 = vmatpush.bf16.msra.mxu3 %v5965_v49  ;;  %v5457_v26 = vor.u32 %v6645_v60, %v5454_v22  ;;  %v6709_v37 = vld [vmem:[#allocation6 + $0x65c] sm:$0xf]  ;;  %v2819_v49 = vadd.f32 %v2818_v34, %v2804_v61 }
 0x35a   :  { %3104 = vmatpush.bf16.msra.mxu1 %v5553_v36  ;;  %3093 = vmatpush.bf16.msra.mxu0 %v5201_v25  ;;  %v3141_v24 = vrot.slane %v3140_v7, 2  ;;  %v3229_v43 = vadd.f32 %v3228_v47, %v3227_v8  ;;  %v5745_v36 = vor.u32 %v6717_v9, %v5742_v13  ;;  %v6793_v25 = vld [vmem:[#allocation7 + $0xf4] sm:$0xf0]  ;;  %v5710_v10 = vld [vmem:[#allocation6 + $0x678] sm:$0xf0] }
 0x35b   :  { %v6029_v41 = vor.u32 %v6793_v25, %v6028_v1  ;;  %v5713_v5 = vor.u32 %v6709_v37, %v5710_v10  ;;  %v6701_v19 = vld [vmem:[#allocation6 + $0x61c] sm:$0xf]  ;;  %v2833_v12 = vadd.f32 %v2832_v46, %v2819_v49  ;;  %v6789_v8 = vld [vmem:[#allocation7 + $0xd4] sm:$0xf0]  ;;  %v5916_v9 = vld [vmem:[#allocation7 + $0x10] sm:$0xf] }
 0x35c   :  { %3117 = vmatpush.bf16.msra.mxu2 %v5841_v44  ;;  %v3142_v39 = vadd.f32 %v3141_v24, %v3140_v7  ;;  %v3230_v44 = vrot.slane %v3229_v43, 2  ;;  %v5678_v23 = vld [vmem:[#allocation6 + $0x638] sm:$0xf0]  ;;  %v6013_v7 = vor.u32 %v6789_v8, %v6012_v11  ;;  %v6787_v24 = vld [vmem:[#allocation7 + $0xc4] sm:$0xf0]  ;;  %v7448_v8 = vld [vmem:[%s7685_s6 + $0xe] sm:$0xff] }
 0x35d   :  { %4292 = vmatpush.bf16.msra.mxu3 %v5957_v62  ;;  %v5924_v62 = vld [vmem:[#allocation7 + $0x20] sm:$0xf]  ;;  %v6785_v37 = vld [vmem:[#allocation7 + $0xb4] sm:$0xf0]  ;;  %v6092_v25 = vld [vmem:[#allocation7 + $0x170] sm:$0xf] }
 0x35e   :  { %3105 = vmatpush.bf16.msra.mxu1 %v5521_v55  ;;  %3094 = vmatpush.bf16.msra.mxu0 %v5169_v56  ;;  %v3143_v29 = vrot.slane %v3142_v39, 1  ;;  %v3231_v63 = vadd.f32 %v3230_v44, %v3229_v43  ;;  %v6020_v55 = vld [vmem:[#allocation7 + $0xe0] sm:$0xf]  ;;  %v6791_v56 = vld [vmem:[#allocation7 + $0xe4] sm:$0xf0]  ;;  %v2846_v17 = vpop.f32.mrf.mxu2  ;;  %v2872_v44 = vpop.f32.mrf.mxu0 }
 0x35f   :  { %v6021_v0 = vor.u32 %v6791_v56, %v6020_v55  ;;  %v7417_v20 = vadd.f32 %v2846_v17, %v2833_v12  ;;  %v6763_v43 = vld [vmem:[#allocation7 + $0x4] sm:$0xf0]  ;;  %v5988_v49 = vld [vmem:[#allocation7 + $0xa0] sm:$0xf]  ;;  %v6805_v17 = vld [vmem:[#allocation7 + $0x154] sm:$0xf0] }
 0x360   :  { %3118 = vmatpush.bf16.msra.mxu2 %v5809_v32  ;;  %v2831_v32 = vadd.f32 %v7401_v59, %v2817_v28  ;;  %v3144_v33 = vadd.f32 %v3143_v29, %v3142_v39  ;;  %v3232_v2 = vrot.slane %v3231_v63, 1  ;;  %v5681_v59 = vor.u32 %v6701_v19, %v5678_v23  ;;  %v6809_v39 = vld [vmem:[#allocation7 + $0x174] sm:$0xf0] }
 0x361   :  { %3095 = vmatmul.bf16.vlgmr.msra.gmra.mxu0 %v7317_v52  ;;  %4293 = vmatpush.bf16.msra.mxu3 %v5949_v48  ;;  %v6769_v52 = vld [vmem:[#allocation7 + $0x34] sm:$0xf0] }
 0x362   :  { %3106 = vmatpush.bf16.msra.mxu1 %v5489_v27  ;;  %4305 = vmatpush.bf16.msrb.mxu0 %v6029_v41  ;;  %v5933_v54 = vor.u32 %v6769_v52, %v5932_v40  ;;  %v3188_v3 = vmul.f32 %v3144_v33, %v7140_v42  ;;  %v7415_v50 = vadd.f32 %v2844_v18, %v2831_v32  ;;  %v6765_v48 = vld [vmem:[#allocation7 + $0x14] sm:$0xf0]  ;;  %v6004_v18 = vld [vmem:[#allocation7 + $0xc0] sm:$0xf]  ;;  %v2858_v41 = vpop.f32.mrf.mxu3 }
 0x363   :  { %v3233_v45 = vadd.f32 %v3232_v2, %v3231_v63  ;;  %v5925_v27 = vor.u32 %v6767_v51, %v5924_v62  ;;  %v5917_v47 = vor.u32 %v6765_v48, %v5916_v9  ;;  %v6093_v52 = vor.u32 %v6809_v39, %v6092_v25  ;;  %v6807_v63 = vld [vmem:[#allocation7 + $0x164] sm:$0xf0]  ;;  %v5980_v62 = vld [vmem:[#allocation7 + $0x90] sm:$0xf]  ;;  %v6781_v51 = vld [vmem:[#allocation7 + $0x94] sm:$0xf0] }
 0x364   :  { %3119 = vmatpush.bf16.msra.mxu2 %v5777_v21  ;;  %v7420_v21 = vsub.f32 %v7391_v57, %v3188_v3  ;;  %v7423_v60 = vsub.f32 %v7393_v16, %v3188_v3  ;;  %v3145_v22 = vadd.f32 %v7417_v20, %v7415_v50  ;;  %v6076_v2 = vld [vmem:[#allocation7 + $0x150] sm:$0xf] }
 0x365   :  { %4294 = vmatpush.bf16.msra.mxu3 %v5941_v38  ;;  %v3283_v13 = vmul.f32 %v3233_v45, %v7140_v42  ;;  %v5909_v38 = vor.u32 %v6763_v43, %v5908_v31 }
 0x366   :  { %3107 = vmatpush.bf16.msra.mxu1 %v5457_v26  ;;  %4306 = vmatpush.bf16.msrb.mxu0 %v6021_v0  ;;  %v3212_v14 = vmul.f32 %v7420_v21, %v7420_v21  ;;  %v3220_v57 = vmul.f32 %v7423_v60, %v7423_v60  ;;  %v3146_v15 = vrot.slane %v3145_v22, 4  ;;  %v5981_v0 = vor.u32 %v6781_v51, %v5980_v62 }
 0x367   :  { %v7433_v16 = vadd.f32 0.8, %v3283_v13  ;;  %v5972_v13 = vld [vmem:[#allocation7 + $0x80] sm:$0xf] }
 0x368   :  { %3120 = vmatpush.bf16.msra.mxu2 %v5745_v36  ;;  %v3234_v26 = vadd.f32 %v3220_v57, %v3212_v14  ;;  %v3147_v30 = vadd.f32 %v3146_v15, %v3145_v22  ;;  %v5996_v36 = vld [vmem:[#allocation7 + $0xb0] sm:$0xf]  ;;  %v2874_v57 = vpop.f32.mrf.mxu0 }
 0x369   :  { %4295 = vmatpush.bf16.msra.mxu3 %v5933_v54  ;;  %6919 = vrsqrt.f32 %v7433_v16  ;;  %v5997_v1 = vor.u32 %v6785_v37, %v5996_v36  ;;  %vm3305_vm5 = vweird.f32 %v7433_v16 }
 0x36a   :  { %3108 = vmatpush.bf16.msra.mxu1 %v5425_v53  ;;  %4307 = vmatpush.bf16.msrb.mxu0 %v6013_v7  ;;  %v3235_v61 = vrot.slane %v3234_v26, 4  ;;  %v3148_v34 = vrot.slane %v3147_v30, 2  ;;  %v6084_v53 = vld [vmem:[#allocation7 + $0x160] sm:$0xf]  ;;  %v2886_v55 = vpop.f32.mrf.mxu1  ;;  %v2860_v14 = vpop.f32.mrf.mxu3 }
 0x36b   :  { %v6085_v32 = vor.u32 %v6807_v63, %v6084_v53  ;;  %v2875_v36 = vadd.f32 %v2874_v57, %v2860_v14  ;;  %v6052_v53 = vld [vmem:[#allocation7 + $0x120] sm:$0xf]  ;;  %v6799_v63 = vld [vmem:[#allocation7 + $0x124] sm:$0xf0] }
 0x36c   :  { %3121 = vmatpush.bf16.msra.mxu2 %v5713_v5  ;;  %v3236_v10 = vadd.f32 %v3235_v61, %v3234_v26  ;;  %v3149_v40 = vadd.f32 %v3148_v34, %v3147_v30 }
 0x36d   :  { %3109 = vmatmul.bf16.vlgmr.msra.gmra.mxu1 %v7332_v6  ;;  %4296 = vmatpush.bf16.msra.mxu3 %v5925_v27  ;;  %v6005_v6 = vor.u32 %v6787_v24, %v6004_v18  ;;  %v6077_v27 = vor.u32 %v6805_v17, %v6076_v2  ;;  %v6803_v18 = vld [vmem:[#allocation7 + $0x144] sm:$0xf0]  ;;  %v7459_v24 = vld [vmem:[%s7685_s6 + $0x16] sm:$0xff] }
 0x36e   :  { %v3237_v46 = vrot.slane %v3236_v10, 2  ;;  %v3150_v28 = vrot.slane %v3149_v40, 1  ;;  %4319 = vmatpush.bf16.msrb.mxu1 %v6093_v52  ;;  %v6797_v2 = vld [vmem:[#allocation7 + $0x114] sm:$0xf0] }
 0x36f   :  { %4308 = vmatpush.bf16.msrb.mxu0 %v6005_v6  ;;  %v6920_v29 = vpop.eup %6919  ;;  %v2873_v6 = vadd.f32 %v2872_v44, %v2858_v41 }
 0x370   :  { %3122 = vmatpush.bf16.msra.mxu2 %v5681_v59  ;;  %v3300_v5 = vmul.f32 %v6920_v29, %v7433_v16  ;;  %v3238_v19 = vadd.f32 %v3237_v46, %v3236_v10  ;;  %v3151_v54 = vadd.f32 %v3150_v28, %v3149_v40  ;;  %vm3306_vm4 = vweird.f32 %v6920_v29 }
 0x371   :  { %4297 = vmatpush.bf16.msra.mxu3 %v5917_v47  ;;  %v6068_v47 = vld [vmem:[#allocation7 + $0x140] sm:$0xf]  ;;  %vm3307_vm6 = vmor %vm3305_vm5, %vm3306_vm4  ;;  %v3396_v16 = vperm.slane %v7448_v8, 0  ;;  %v3429_v10 = vperm.slane %v7459_v24, 0  ;;  %v2887_v46 = vadd.f32 %v2886_v55, %v2873_v6  ;;  %v6841_v6 = vld [vmem:[#allocation7 + $0x274] sm:$0xf0] }
 0x372   :  { %v3301_v33 = vmul.f32 %v6920_v29, %v3300_v5  ;;  %v3239_v12 = vrot.slane %v3238_v19, 1  ;;  %v3189_v23 = vmul.f32 %v3151_v54, %v7140_v42  ;;  %4320 = vmatpush.bf16.msrb.mxu1 %v6085_v32  ;;  %v6069_v43 = vor.u32 %v6803_v18, %v6068_v47  ;;  %v2888_v37 = vpop.f32.mrf.mxu1  ;;  %v6825_v47 = vld [vmem:[#allocation7 + $0x1f4] sm:$0xf0] }
 0x373   :  { %3123 = vmatmul.bf16.vlgmr.msra.gmra.mxu2 %v7336_v35  ;;  %4309 = vmatpush.bf16.msrb.mxu0 %v5997_v1  ;;  %v6783_v35 = vld [vmem:[#allocation7 + $0xa4] sm:$0xf0]  ;;  %v6801_v1 = vld [vmem:[#allocation7 + $0x134] sm:$0xf0]  ;;  %v2889_v28 = vadd.f32 %v2888_v37, %v2875_v36  ;;  %v6148_v36 = vld [vmem:[#allocation7 + $0x1e0] sm:$0xf] }
 0x374   :  { %v5989_v56 = vor.u32 %v6783_v35, %v5988_v49  ;;  %v3302_v3 = vmul.f32 0.5, %v3301_v33  ;;  %v3240_v11 = vadd.f32 %v3239_v12, %v3238_v19  ;;  %v7440_v45 = vsub.f32 %v7415_v50, %v3189_v23  ;;  %v6823_v37 = vld [vmem:[#allocation7 + $0x1e4] sm:$0xf0] }
 0x375   :  { %4298 = vmatpush.bf16.msra.mxu3 %v5909_v38  ;;  %v7443_v59 = vsub.f32 %v7417_v20, %v3189_v23  ;;  %v6779_v20 = vld [vmem:[#allocation7 + $0x84] sm:$0xf0]  ;;  %v6060_v38 = vld [vmem:[#allocation7 + $0x130] sm:$0xf] }
 0x376   :  { %v3303_v22 = vsub.f32 1.5, %v3302_v3  ;;  %v3284_v9 = vmul.f32 %v3240_v11, %v7140_v42  ;;  %v3213_v48 = vmul.f32 %v7440_v45, %v7440_v45  ;;  %v2900_v7 = vpop.f32.mrf.mxu2  ;;  %4321 = vmatpush.bf16.msrb.mxu1 %v6077_v27  ;;  %v5973_v15 = vor.u32 %v6779_v20, %v5972_v13  ;;  %v6795_v13 = vld [vmem:[#allocation7 + $0x104] sm:$0xf0]  ;;  %v6156_v20 = vld [vmem:[#allocation7 + $0x1f0] sm:$0xf] }
 0x377   :  { %4310 = vmatpush.bf16.msrb.mxu0 %v5989_v56  ;;  %v3221_v50 = vmul.f32 %v7443_v59, %v7443_v59  ;;  %v6061_v40 = vor.u32 %v6801_v1, %v6060_v38 }
 0x378   :  { %v3304_v26 = vmul.f32 %v6920_v29, %v3303_v22  ;;  %v7461_v30 = vadd.f32 0.8, %v3284_v9 }
 0x379   :  { %v3241_v31 = vadd.f32 %v3221_v50, %v3213_v48 }
 0x37a   :  { %v3308_v61 = vsel %vm3307_vm6, %v6920_v29, %v3304_v26  ;;  %6921 = vrsqrt.f32 %v7461_v30  ;;  %4322 = vmatpush.bf16.msrb.mxu1 %v6069_v43  ;;  %v7469_v29 = vadd.f32 %v2900_v7, %v2887_v46  ;;  %v6036_v7 = vld [vmem:[#allocation7 + $0x100] sm:$0xf]  ;;  %v6157_v26 = vor.u32 %v6825_v47, %v6156_v20  ;;  %v6124_v47 = vld [vmem:[#allocation7 + $0x1b0] sm:$0xf] }
 0x37b   :  { %4311 = vmatpush.bf16.msrb.mxu0 %v5981_v0  ;;  %v3242_v34 = vrot.slane %v3241_v31, 4  ;;  %v3379_v25 = vmul.f32 %v3308_v61, %v7396_v58  ;;  %v3387_v39 = vmul.f32 %v3308_v61, %v7399_v4  ;;  %v6053_v4 = vor.u32 %v6799_v63, %v6052_v53  ;;  %v6044_v0 = vld [vmem:[#allocation7 + $0x110] sm:$0xf] }
 0x37c   :  { %v6045_v27 = vor.u32 %v6797_v2, %v6044_v0  ;;  %vm3315_vm10 = vweird.f32 %v7461_v30  ;;  %v3397_v61 = vperm.slane %v7448_v8, 1  ;;  %4333 = vmatpush.bf16.msrb.mxu2 %v6157_v26  ;;  %v6140_v63 = vld [vmem:[#allocation7 + $0x1d0] sm:$0xf]  ;;  %v6817_v26 = vld [vmem:[#allocation7 + $0x1b4] sm:$0xf0] }
 0x37d   :  { %v3243_v52 = vadd.f32 %v3242_v34, %v3241_v31  ;;  %v3412_v41 = vmul.f32 %v3396_v16, %v3379_v25  ;;  %v3420_v44 = vmul.f32 %v3396_v16, %v3387_v39  ;;  %v6220_v16 = vld [vmem:[#allocation7 + $0x270] sm:$0xf]  ;;  %v6149_v25 = vor.u32 %v6823_v37, %v6148_v36 }
 0x37e   :  { %v2902_v35 = vpop.f32.mrf.mxu2  ;;  %4323 = vmatpush.bf16.msrb.mxu1 %v6061_v40  ;;  %v6221_v34 = vor.u32 %v6841_v6, %v6220_v16  ;;  %v2914_v40 = vpop.f32.mrf.mxu3  ;;  %v6125_v16 = vor.u32 %v6817_v26, %v6124_v47  ;;  %v6164_v47 = vld [vmem:[#allocation7 + $0x200] sm:$0xf]  ;;  %v6827_v26 = vld [vmem:[#allocation7 + $0x204] sm:$0xf0] }
 0x37f   :  { %4312 = vmatpush.bf16.msrb.mxu0 %v5973_v15  ;;  %v3244_v49 = vrot.slane %v3243_v52, 2  ;;  %v3445_v5 = vadd.f32 %v3429_v10, %v3412_v41  ;;  %v3453_v58 = vadd.f32 %v3429_v10, %v3420_v44  ;;  %v7471_v19 = vadd.f32 %v2902_v35, %v2889_v28  ;;  %v6212_v41 = vld [vmem:[#allocation7 + $0x260] sm:$0xf]  ;;  %v6839_v44 = vld [vmem:[#allocation7 + $0x264] sm:$0xf0] }
 0x380   :  { %v6922_v54 = vpop.eup %6921  ;;  %v6037_v15 = vor.u32 %v6795_v13, %v6036_v7  ;;  %v3430_v10 = vperm.slane %v7459_v24, 1  ;;  %4347 = vmatpush.bf16.msrb.mxu3 %v6221_v34  ;;  %4334 = vmatpush.bf16.msrb.mxu2 %v6149_v25  ;;  %v6213_v53 = vor.u32 %v6839_v44, %v6212_v41  ;;  %v6196_v7 = vld [vmem:[#allocation7 + $0x240] sm:$0xf]  ;;  %v6835_v13 = vld [vmem:[#allocation7 + $0x244] sm:$0xf0]  ;;  %v3398_v25 = vperm.slane %v7448_v8, 2 }
 0x381   :  { %v3245_v56 = vadd.f32 %v3244_v49, %v3243_v52  ;;  %v3310_v32 = vmul.f32 %v6922_v54, %v7461_v30  ;;  %v3152_v55 = vadd.f32 %v7471_v19, %v7469_v29  ;;  %vm3461_vm7 = vcmp.gt.f32.partialorder %v3445_v5, 0.0  ;;  %v2928_v52 = vpop.f32.mrf.mxu0 }
 0x382   :  { %vm3469_vm8 = vcmp.gt.f32.partialorder %v3453_v58, 0.0  ;;  %v3477_v12 = vmul.f32 0.2, %v3445_v5  ;;  %v3485_v23 = vmul.f32 0.2, %v3453_v58  ;;  %4324 = vmatpush.bf16.msrb.mxu1 %v6053_v4  ;;  %vm3316_vm9 = vweird.f32 %v6922_v54 }
 0x383   :  { %v3246_v33 = vrot.slane %v3245_v56, 1  ;;  %v3311_v62 = vmul.f32 %v6922_v54, %v3310_v32  ;;  %v3153_v51 = vrot.slane %v3152_v55, 4  ;;  %vm3317_vm11 = vmor %vm3315_vm10, %vm3316_vm9  ;;  %v2929_v6 = vadd.f32 %v2928_v52, %v2914_v40 }
 0x384   :  { %v3493_v3 = vsel %vm3461_vm7, %v3445_v5, %v3477_v12  ;;  %v3501_v11 = vsel %vm3469_vm8, %v3453_v58, %v3485_v23  ;;  %v6821_v5 = vld [vmem:[#allocation7 + $0x1d4] sm:$0xf0]  ;;  %4348 = vmatpush.bf16.msrb.mxu3 %v6213_v53 }
 0x385   :  { %v3247_v17 = vadd.f32 %v3246_v33, %v3245_v56  ;;  %v3312_v22 = vmul.f32 0.5, %v3311_v62  ;;  %v3154_v9 = vadd.f32 %v3153_v51, %v3152_v55  ;;  %v7476_v48 = vpack.c.bf16 %v3501_v11, %v3493_v3  ;;  %v6204_v33 = vld [vmem:[#allocation7 + $0x250] sm:$0xf]  ;;  %v6837_v12 = vld [vmem:[#allocation7 + $0x254] sm:$0xf0] }
 0x386   :  { %4325 = vmatpush.bf16.msrb.mxu1 %v6045_v27  ;;  %v6132_v62 = vld [vmem:[#allocation7 + $0x1c0] sm:$0xf]  ;;  %v2916_v20 = vpop.f32.mrf.mxu3 }
 0x387   :  { %v3285_v50 = vmul.f32 %v3247_v17, %v7140_v42  ;;  %v3313_v14 = vsub.f32 1.5, %v3312_v22  ;;  %v3155_v57 = vrot.slane %v3154_v9, 2  ;;  %4299 = vmatmul.bf16.vlgmr.msra.gmra.mxu3 %v7476_v48 }
 0x389   :  { %v7480_v18 = vadd.f32 0.8, %v3285_v50  ;;  %v3314_v31 = vmul.f32 %v6922_v54, %v3313_v14  ;;  %v3156_v43 = vadd.f32 %v3155_v57, %v3154_v9  ;;  %v2930_v14 = vpop.f32.mrf.mxu0 }
 0x38a   :  { %4326 = vmatpush.bf16.msrb.mxu1 %v6037_v15  ;;  %v2942_v35 = vpop.f32.mrf.mxu1  ;;  %v6197_v15 = vor.u32 %v6835_v13, %v6196_v7  ;;  %v2931_v37 = vadd.f32 %v2930_v14, %v2916_v20 }
 0x38b   :  { %6923 = vrsqrt.f32 %v7480_v18  ;;  %v3318_v38 = vsel %vm3317_vm11, %v6922_v54, %v3314_v31  ;;  %v3157_v1 = vrot.slane %v3156_v43, 1  ;;  %vm3325_vm15 = vweird.f32 %v7480_v18 }
 0x38c   :  { %v3380_v39 = vmul.f32 %v3318_v38, %v7420_v21  ;;  %v3388_v30 = vmul.f32 %v3318_v38, %v7423_v60  ;;  %v6141_v21 = vor.u32 %v6821_v5, %v6140_v63  ;;  %v6188_v38 = vld [vmem:[#allocation7 + $0x230] sm:$0xf] }
 0x38d   :  { %v3158_v46 = vadd.f32 %v3157_v1, %v3156_v43  ;;  %v6833_v1 = vld [vmem:[#allocation7 + $0x234] sm:$0xf0] }
 0x38e   :  { %v3413_v28 = vmul.f32 %v3397_v61, %v3380_v39  ;;  %v3421_v49 = vmul.f32 %v3397_v61, %v3388_v30  ;;  %4335 = vmatpush.bf16.msrb.mxu2 %v6141_v21  ;;  %v2943_v39 = vadd.f32 %v2942_v35, %v2929_v6  ;;  %v6189_v30 = vor.u32 %v6833_v1, %v6188_v38  ;;  %v6831_v21 = vld [vmem:[#allocation7 + $0x224] sm:$0xf0]  ;;  %v6776_v6 = vld [vmem:[#allocation7 + $0x74] sm:$0xf] }
 0x38f   :  { %v3190_v58 = vmul.f32 %v3158_v46, %v7140_v42  ;;  %v6815_v46 = vld [vmem:[#allocation7 + $0x1a4] sm:$0xf0] }
 0x390   :  { %v3446_v60 = vadd.f32 %v3430_v10, %v3413_v28  ;;  %v3454_v54 = vadd.f32 %v3430_v10, %v3421_v49  ;;  %v6116_v10 = vld [vmem:[#allocation7 + $0x1a0] sm:$0xf]  ;;  %v3431_v49 = vperm.slane %v7459_v24, 2 }
 0x391   :  { %v6924_v4 = vpop.eup %6923  ;;  %v7491_v32 = vsub.f32 %v7469_v29, %v3190_v58  ;;  %v7494_v55 = vsub.f32 %v7471_v19, %v3190_v58  ;;  %v6819_v29 = vld [vmem:[#allocation7 + $0x1c4] sm:$0xf0]  ;;  %v6205_v19 = vor.u32 %v6837_v12, %v6204_v33  ;;  %v6117_v44 = vor.u32 %v6815_v46, %v6116_v10  ;;  %v6180_v58 = vld [vmem:[#allocation7 + $0x220] sm:$0xf]  ;;  %v6813_v33 = vld [vmem:[#allocation7 + $0x194] sm:$0xf0] }
 0x392   :  { %v3320_v56 = vmul.f32 %v6924_v4, %v7480_v18  ;;  %vm3462_vm12 = vcmp.gt.f32.partialorder %v3446_v60, 0.0  ;;  %vm3470_vm13 = vcmp.gt.f32.partialorder %v3454_v54, 0.0  ;;  %v3478_v23 = vmul.f32 0.2, %v3446_v60  ;;  %v2944_v61 = vpop.f32.mrf.mxu1  ;;  %v6774_v10 = vld [vmem:[#allocation7 + $0x64] sm:$0xf] }
 0x393   :  { %v3214_v0 = vmul.f32 %v7491_v32, %v7491_v32  ;;  %v3222_v2 = vmul.f32 %v7494_v55, %v7494_v55  ;;  %v3486_v17 = vmul.f32 0.2, %v3454_v54  ;;  %v6133_v27 = vor.u32 %v6819_v29, %v6132_v62  ;;  %4349 = vmatpush.bf16.msrb.mxu3 %v6205_v19 }
 0x394   :  { %v3321_v51 = vmul.f32 %v6924_v4, %v3320_v56  ;;  %v3494_v11 = vsel %vm3462_vm12, %v3446_v60, %v3478_v23  ;;  %vm3326_vm14 = vweird.f32 %v6924_v4  ;;  %v2945_v41 = vadd.f32 %v2944_v61, %v2931_v37  ;;  %v6108_v56 = vld [vmem:[#allocation7 + $0x190] sm:$0xf]  ;;  %v5966_v61 = vld [vmem:[#allocation7 + $0x78] sm:$0xf0] }
 0x395   :  { %v3248_v9 = vadd.f32 %v3222_v2, %v3214_v0  ;;  %v3502_v50 = vsel %vm3470_vm13, %v3454_v54, %v3486_v17  ;;  %4336 = vmatpush.bf16.msrb.mxu2 %v6133_v27  ;;  %vm3327_vm0 = vmor %vm3325_vm15, %vm3326_vm14  ;;  %v6109_v12 = vor.u32 %v6813_v33, %v6108_v56  ;;  %v6172_v2 = vld [vmem:[#allocation7 + $0x210] sm:$0xf]  ;;  %v6829_v17 = vld [vmem:[#allocation7 + $0x214] sm:$0xf0]  ;;  %v5969_v37 = vor.u32 %v6776_v6, %v5966_v61 }
 0x396   :  { %v2956_v3 = vpop.f32.mrf.mxu2  ;;  %v3322_v22 = vmul.f32 0.5, %v3321_v51  ;;  %v7500_v57 = vpack.c.bf16 %v3502_v50, %v3494_v11  ;;  %v6173_v27 = vor.u32 %v6829_v17, %v6172_v2  ;;  %v5942_v2 = vld [vmem:[#allocation7 + $0x48] sm:$0xf0]  ;;  %v3432_v6 = vperm.slane %v7459_v24, 3 }
 0x397   :  { %v3249_v43 = vrot.slane %v3248_v9, 4  ;;  %4350 = vmatpush.bf16.msrb.mxu3 %v6197_v15  ;;  %v7508_v5 = vadd.f32 %v2956_v3, %v2943_v39  ;;  %v6276_v39 = vld [vmem:[#allocation7 + $0x2e0] sm:$0xf] }
 0x398   :  { %v3323_v31 = vsub.f32 1.5, %v3322_v22  ;;  %4313 = vmatmul.bf16.vlgmr.msrb.gmra.mxu0 %v7500_v57  ;;  %v6100_v22 = vld [vmem:[#allocation7 + $0x180] sm:$0xf] }
 0x399   :  { %v3250_v36 = vadd.f32 %v3249_v43, %v3248_v9  ;;  %4337 = vmatpush.bf16.msrb.mxu2 %v6125_v16  ;;  %v6811_v9 = vld [vmem:[#allocation7 + $0x184] sm:$0xf0]  ;;  %v6857_v43 = vld [vmem:[#allocation7 + $0x2f4] sm:$0xf0] }
 0x39a   :  { %v3324_v34 = vmul.f32 %v6924_v4, %v3323_v31  ;;  %v6101_v13 = vor.u32 %v6811_v9, %v6100_v22  ;;  %v6284_v31 = vld [vmem:[#allocation7 + $0x2f0] sm:$0xf] }
 0x39b   :  { %v3251_v52 = vrot.slane %v3250_v36, 2  ;;  %4351 = vmatpush.bf16.msrb.mxu3 %v6189_v30  ;;  %v2970_v1 = vpop.f32.mrf.mxu3  ;;  %v6855_v30 = vld [vmem:[#allocation7 + $0x2e4] sm:$0xf0] }
 0x39c   :  { %v3328_v40 = vsel %vm3327_vm0, %v6924_v4, %v3324_v34  ;;  %v6181_v4 = vor.u32 %v6831_v21, %v6180_v58  ;;  %v6165_v34 = vor.u32 %v6827_v26, %v6164_v47  ;;  %v6772_v58 = vld [vmem:[#allocation7 + $0x54] sm:$0xf] }
 0x39d   :  { %v3381_v28 = vmul.f32 %v3328_v40, %v7440_v45  ;;  %v3389_v18 = vmul.f32 %v3328_v40, %v7443_v59  ;;  %v3252_v63 = vadd.f32 %v3251_v52, %v3250_v36  ;;  %4338 = vmatpush.bf16.msrb.mxu2 %v6117_v44  ;;  %v6285_v36 = vor.u32 %v6857_v43, %v6284_v31  ;;  %v5958_v52 = vld [vmem:[#allocation7 + $0x68] sm:$0xf0]  ;;  %v5934_v43 = vld [vmem:[#allocation7 + $0x38] sm:$0xf0] }
 0x39e   :  { %v2958_v53 = vpop.f32.mrf.mxu2  ;;  %v6277_v40 = vor.u32 %v6855_v30, %v6276_v39  ;;  %v5961_v44 = vor.u32 %v6774_v10, %v5958_v52  ;;  %v6244_v39 = vld [vmem:[#allocation7 + $0x2a0] sm:$0xf]  ;;  %v6847_v30 = vld [vmem:[#allocation7 + $0x2a4] sm:$0xf0]  ;;  %v6766_v10 = vld [vmem:[#allocation7 + $0x24] sm:$0xf] }
 0x39f   :  { %v7510_v35 = vadd.f32 %v2958_v53, %v2945_v41  ;;  %v3414_v60 = vmul.f32 %v3398_v25, %v3381_v28  ;;  %v3422_v54 = vmul.f32 %v3398_v25, %v3389_v18  ;;  %v3253_v45 = vrot.slane %v3252_v63, 1  ;;  %4352 = vmatpush.bf16.msrb.mxu3 %v6181_v4  ;;  %v2984_v25 = vpop.f32.mrf.mxu0  ;;  %4361 = vmatpush.bf16.msra.mxu0 %v6285_v36  ;;  %v6268_v53 = vld [vmem:[#allocation7 + $0x2d0] sm:$0xf]  ;;  %v5950_v4 = vld [vmem:[#allocation7 + $0x58] sm:$0xf0] }
 0x3a0   :  { %v5953_v33 = vor.u32 %v6772_v58, %v5950_v4  ;;  %v2985_v22 = vadd.f32 %v2984_v25, %v2970_v1  ;;  %v6845_v58 = vld [vmem:[#allocation7 + $0x294] sm:$0xf0] }
 0x3a1   :  { %v3159_v59 = vadd.f32 %v7510_v35, %v7508_v5  ;;  %v3447_v23 = vadd.f32 %v3431_v49, %v3414_v60  ;;  %v3455_v62 = vadd.f32 %v3431_v49, %v3422_v54  ;;  %v3254_v51 = vadd.f32 %v3253_v45, %v3252_v63  ;;  %4339 = vmatpush.bf16.msrb.mxu2 %v6109_v12  ;;  %v6853_v63 = vld [vmem:[#allocation7 + $0x2d4] sm:$0xf0] }
 0x3a2   :  { %v6269_v54 = vor.u32 %v6853_v63, %v6268_v53  ;;  %v6236_v63 = vld [vmem:[#allocation7 + $0x290] sm:$0xf] }
 0x3a3   :  { %v3160_v0 = vrot.slane %v3159_v59, 4  ;;  %vm3463_vm1 = vcmp.gt.f32.partialorder %v3447_v23, 0.0  ;;  %vm3471_vm2 = vcmp.gt.f32.partialorder %v3455_v62, 0.0  ;;  %v3479_v29 = vmul.f32 0.2, %v3447_v23  ;;  %4353 = vmatpush.bf16.msrb.mxu3 %v6173_v27  ;;  %4362 = vmatpush.bf16.msra.mxu0 %v6277_v40 }
 0x3a4   :  { %v3487_v3 = vmul.f32 0.2, %v3455_v62  ;;  %v3286_v11 = vmul.f32 %v3254_v51, %v7140_v42 }
 0x3a5   :  { %v3161_v19 = vadd.f32 %v3160_v0, %v3159_v59  ;;  %v3495_v50 = vsel %vm3463_vm1, %v3447_v23, %v3479_v29  ;;  %4340 = vmatpush.bf16.msrb.mxu2 %v6101_v13  ;;  %v6770_v0 = vld [vmem:[#allocation7 + $0x44] sm:$0xf]  ;;  %v2972_v29 = vpop.f32.mrf.mxu3  ;;  %v6768_v13 = vld [vmem:[#allocation7 + $0x34] sm:$0xf] }
 0x3a6   :  { %v3503_v7 = vsel %vm3471_vm2, %v3455_v62, %v3487_v3  ;;  %v7515_v20 = vadd.f32 0.8, %v3286_v11  ;;  %v6260_v62 = vld [vmem:[#allocation7 + $0x2c0] sm:$0xf]  ;;  %v5945_v11 = vor.u32 %v6770_v0, %v5942_v2  ;;  %v6843_v2 = vld [vmem:[#allocation7 + $0x284] sm:$0xf0] }
 0x3a7   :  { %v3162_v14 = vrot.slane %v3161_v19, 2  ;;  %v7517_v15 = vpack.c.bf16 %v3503_v7, %v3495_v50  ;;  %4354 = vmatpush.bf16.msrb.mxu3 %v6165_v34  ;;  %4363 = vmatpush.bf16.msra.mxu0 %v6269_v54  ;;  %v2986_v3 = vpop.f32.mrf.mxu0  ;;  %v6252_v50 = vld [vmem:[#allocation7 + $0x2b0] sm:$0xf]  ;;  %v6849_v7 = vld [vmem:[#allocation7 + $0x2b4] sm:$0xf0]  ;;  %v5937_v34 = vor.u32 %v6768_v13, %v5934_v43 }
 0x3a8   :  { %6925 = vrsqrt.f32 %v7515_v20  ;;  %vm3335_vm4 = vweird.f32 %v7515_v20  ;;  %v2987_v26 = vadd.f32 %v2986_v3, %v2972_v29  ;;  %v6253_v31 = vor.u32 %v6849_v7, %v6252_v50  ;;  %v6764_v54 = vld [vmem:[#allocation7 + $0x14] sm:$0xf]  ;;  %v6228_v0 = vld [vmem:[#allocation7 + $0x280] sm:$0xf]  ;;  %v6873_v50 = vld [vmem:[#allocation7 + $0x374] sm:$0xf0] }
 0x3a9   :  { %v3163_v16 = vadd.f32 %v3162_v14, %v3161_v19  ;;  %4327 = vmatmul.bf16.vlgmr.msrb.gmra.mxu1 %v7517_v15  ;;  %v3399_v14 = vperm.slane %v7448_v8, 3  ;;  %v6792_v7 = vld [vmem:[#allocation7 + $0xf4] sm:$0xf]  ;;  %v6340_v43 = vld [vmem:[#allocation7 + $0x360] sm:$0xf] }
 0x3aa   :  { %v2998_v41 = vpop.f32.mrf.mxu1 }
 0x3ab   :  { %v3164_v38 = vrot.slane %v3163_v16, 1  ;;  %4403 = vmatpush.bf16.msra.mxu3 %v5969_v37  ;;  %v2999_v61 = vadd.f32 %v2998_v41, %v2985_v22  ;;  %v5926_v41 = vld [vmem:[#allocation7 + $0x28] sm:$0xf0] }
 0x3ad   :  { %v3165_v46 = vadd.f32 %v3164_v38, %v3163_v16 }
 0x3ae   :  { %v6926_v28 = vpop.eup %6925 }
 0x3af   :  { %v3191_v18 = vmul.f32 %v3165_v46, %v7140_v42  ;;  %v3330_v49 = vmul.f32 %v6926_v28, %v7515_v20  ;;  %4404 = vmatpush.bf16.msra.mxu3 %v5961_v44  ;;  %vm3336_vm3 = vweird.f32 %v6926_v28 }
 0x3b0   :  { %vm3337_vm5 = vmor %vm3335_vm4, %vm3336_vm3 }
 0x3b1   :  { %v7524_v21 = vsub.f32 %v7508_v5, %v3191_v18  ;;  %v7527_v60 = vsub.f32 %v7510_v35, %v3191_v18  ;;  %v3331_v56 = vmul.f32 %v6926_v28, %v3330_v49  ;;  %v6851_v5 = vld [vmem:[#allocation7 + $0x2c4] sm:$0xf0] }
 0x3b2   :  { %v6261_v35 = vor.u32 %v6851_v5, %v6260_v62  ;;  %v3000_v9 = vpop.f32.mrf.mxu1 }
 0x3b3   :  { %v3215_v45 = vmul.f32 %v7524_v21, %v7524_v21  ;;  %v3223_v59 = vmul.f32 %v7527_v60, %v7527_v60  ;;  %v3332_v12 = vmul.f32 0.5, %v3331_v56  ;;  %4405 = vmatpush.bf16.msra.mxu3 %v5953_v33  ;;  %v3001_v38 = vadd.f32 %v3000_v9, %v2987_v26  ;;  %v5918_v33 = vld [vmem:[#allocation7 + $0x18] sm:$0xf0]  ;;  %v6348_v9 = vld [vmem:[#allocation7 + $0x370] sm:$0xf] }
 0x3b4   :  { %4364 = vmatpush.bf16.msra.mxu0 %v6261_v35 }
 0x3b5   :  { %v3255_v51 = vadd.f32 %v3223_v59, %v3215_v45  ;;  %v3333_v17 = vsub.f32 1.5, %v3332_v12  ;;  %v6237_v12 = vor.u32 %v6845_v58, %v6236_v63  ;;  %v6324_v58 = vld [vmem:[#allocation7 + $0x340] sm:$0xf] }
 0x3b6   :  { %v3012_v23 = vpop.f32.mrf.mxu2 }
 0x3b7   :  { %v3256_v19 = vrot.slane %v3255_v51, 4  ;;  %v3334_v27 = vmul.f32 %v6926_v28, %v3333_v17  ;;  %4406 = vmatpush.bf16.msra.mxu3 %v5945_v11  ;;  %v7538_v1 = vadd.f32 %v3012_v23, %v2999_v61  ;;  %v5921_v23 = vor.u32 %v6764_v54, %v5918_v33  ;;  %v6762_v17 = vld [vmem:[#allocation7 + $0x4] sm:$0xf]  ;;  %v6867_v54 = vld [vmem:[#allocation7 + $0x344] sm:$0xf0] }
 0x3b8   :  { %4365 = vmatpush.bf16.msra.mxu0 %v6253_v31 }
 0x3b9   :  { %v3257_v47 = vadd.f32 %v3256_v19, %v3255_v51  ;;  %v3338_v16 = vsel %vm3337_vm5, %v6926_v28, %v3334_v27  ;;  %v6245_v28 = vor.u32 %v6847_v30, %v6244_v39  ;;  %v6229_v19 = vor.u32 %v6843_v2, %v6228_v0  ;;  %v5910_v27 = vld [vmem:[#allocation7 + $0x8] sm:$0xf0] }
 0x3ba   :  { %v3382_v20 = vmul.f32 %v3338_v16, %v7491_v32  ;;  %v3390_v36 = vmul.f32 %v3338_v16, %v7494_v55  ;;  %v5929_v32 = vor.u32 %v6766_v10, %v5926_v41  ;;  %v5913_v22 = vor.u32 %v6762_v17, %v5910_v27  ;;  %v6871_v16 = vld [vmem:[#allocation7 + $0x364] sm:$0xf0]  ;;  %v6332_v10 = vld [vmem:[#allocation7 + $0x350] sm:$0xf]  ;;  %v5998_v27 = vld [vmem:[#allocation7 + $0xb8] sm:$0xf0] }
 0x3bb   :  { %v3258_v37 = vrot.slane %v3257_v47, 2  ;;  %4407 = vmatpush.bf16.msra.mxu3 %v5937_v34  ;;  %v6341_v34 = vor.u32 %v6871_v16, %v6340_v43  ;;  %v6308_v16 = vld [vmem:[#allocation7 + $0x320] sm:$0xf] }
 0x3bc   :  { %v3415_v46 = vmul.f32 %v3399_v14, %v3382_v20  ;;  %v3423_v40 = vmul.f32 %v3399_v14, %v3390_v36  ;;  %4366 = vmatpush.bf16.msra.mxu0 %v6245_v28  ;;  %v6030_v14 = vld [vmem:[#allocation7 + $0xf8] sm:$0xf0]  ;;  %v6790_v20 = vld [vmem:[#allocation7 + $0xe4] sm:$0xf]  ;;  %v6022_v36 = vld [vmem:[#allocation7 + $0xe8] sm:$0xf0] }
 0x3bd   :  { %v3259_v52 = vadd.f32 %v3258_v37, %v3257_v47  ;;  %v6349_v47 = vor.u32 %v6873_v50, %v6348_v9  ;;  %v6033_v26 = vor.u32 %v6792_v7, %v6030_v14  ;;  %v6014_v28 = vld [vmem:[#allocation7 + $0xd8] sm:$0xf0]  ;;  %v3433_v14 = vperm.slane %v7459_v24, 4 }
 0x3be   :  { %v3014_v25 = vpop.f32.mrf.mxu2  ;;  %v3448_v18 = vadd.f32 %v3432_v6, %v3415_v46  ;;  %v3456_v55 = vadd.f32 %v3432_v6, %v3423_v40  ;;  %v3026_v6 = vpop.f32.mrf.mxu3  ;;  %v6869_v46 = vld [vmem:[#allocation7 + $0x354] sm:$0xf0]  ;;  %v6788_v40 = vld [vmem:[#allocation7 + $0xd4] sm:$0xf] }
 0x3bf   :  { %v7540_v44 = vadd.f32 %v3014_v25, %v3001_v38  ;;  %v3260_v49 = vrot.slane %v3259_v52, 1  ;;  %4408 = vmatpush.bf16.msra.mxu3 %v5929_v32  ;;  %v3040_v61 = vpop.f32.mrf.mxu0  ;;  %4375 = vmatpush.bf16.msra.mxu1 %v6349_v47  ;;  %v6025_v38 = vor.u32 %v6790_v20, %v6022_v36  ;;  %v6333_v41 = vor.u32 %v6869_v46, %v6332_v10  ;;  %v6782_v20 = vld [vmem:[#allocation7 + $0xa4] sm:$0xf]  ;;  %v5990_v36 = vld [vmem:[#allocation7 + $0xa8] sm:$0xf0] }
 0x3c0   :  { %vm3464_vm6 = vcmp.gt.f32.partialorder %v3448_v18, 0.0  ;;  %vm3472_vm7 = vcmp.gt.f32.partialorder %v3456_v55, 0.0  ;;  %v3480_v45 = vmul.f32 0.2, %v3448_v18  ;;  %v3488_v59 = vmul.f32 0.2, %v3456_v55  ;;  %4367 = vmatpush.bf16.msra.mxu0 %v6237_v12 }
 0x3c1   :  { %v3166_v53 = vadd.f32 %v7540_v44, %v7538_v1  ;;  %v3261_v4 = vadd.f32 %v3260_v49, %v3259_v52  ;;  %v3041_v2 = vadd.f32 %v3040_v61, %v3026_v6  ;;  %v6863_v6 = vld [vmem:[#allocation7 + $0x324] sm:$0xf0]  ;;  %v6300_v46 = vld [vmem:[#allocation7 + $0x310] sm:$0xf] }
 0x3c2   :  { %v3496_v51 = vsel %vm3464_vm6, %v3448_v18, %v3480_v45  ;;  %v3504_v35 = vsel %vm3472_vm7, %v3456_v55, %v3488_v59  ;;  %v6017_v55 = vor.u32 %v6788_v40, %v6014_v28  ;;  %v6006_v45 = vld [vmem:[#allocation7 + $0xc8] sm:$0xf0]  ;;  %v6861_v40 = vld [vmem:[#allocation7 + $0x314] sm:$0xf0]  ;;  %v6780_v28 = vld [vmem:[#allocation7 + $0x94] sm:$0xf] }
 0x3c3   :  { %v3167_v56 = vrot.slane %v3166_v53, 4  ;;  %v3287_v62 = vmul.f32 %v3261_v4, %v7140_v42  ;;  %v7547_v11 = vpack.c.bf16 %v3504_v35, %v3496_v51  ;;  %4409 = vmatpush.bf16.msra.mxu3 %v5921_v23  ;;  %4376 = vmatpush.bf16.msra.mxu1 %v6341_v34  ;;  %v6786_v4 = vld [vmem:[#allocation7 + $0xc4] sm:$0xf]  ;;  %v6316_v51 = vld [vmem:[#allocation7 + $0x330] sm:$0xf] }
 0x3c4   :  { %4368 = vmatpush.bf16.msra.mxu0 %v6229_v19  ;;  %v6865_v35 = vld [vmem:[#allocation7 + $0x334] sm:$0xf0]  ;;  %v6784_v19 = vld [vmem:[#allocation7 + $0xb4] sm:$0xf] }
 0x3c5   :  { %v3168_v5 = vadd.f32 %v3167_v56, %v3166_v53  ;;  %v7545_v29 = vadd.f32 0.8, %v3287_v62  ;;  %4341 = vmatmul.bf16.vlgmr.msrb.gmra.mxu2 %v7547_v11  ;;  %v6001_v7 = vor.u32 %v6784_v19, %v5998_v27  ;;  %v6889_v27 = vld [vmem:[#allocation7 + $0x3f4] sm:$0xf0] }
 0x3c6   :  { %v3028_v23 = vpop.f32.mrf.mxu3 }
 0x3c7   :  { %v3169_v3 = vrot.slane %v3168_v5, 2  ;;  %6927 = vrsqrt.f32 %v7545_v29  ;;  %4410 = vmatpush.bf16.msra.mxu3 %v5913_v22  ;;  %4377 = vmatpush.bf16.msra.mxu1 %v6333_v41  ;;  %v3042_v62 = vpop.f32.mrf.mxu0  ;;  %vm3345_vm9 = vweird.f32 %v7545_v29  ;;  %v3400_v22 = vperm.slane %v7448_v8, 4 }
 0x3c8   :  { %4417 = vmatpush.bf16.msrb.mxu0 %v6033_v26  ;;  %v3043_v50 = vadd.f32 %v3042_v62, %v3028_v23  ;;  %v6309_v8 = vor.u32 %v6863_v6, %v6308_v16  ;;  %v6301_v41 = vor.u32 %v6861_v40, %v6300_v46  ;;  %v6838_v62 = vld [vmem:[#allocation7 + $0x264] sm:$0xf]  ;;  %v6198_v40 = vld [vmem:[#allocation7 + $0x248] sm:$0xf0] }
 0x3c9   :  { %v3170_v13 = vadd.f32 %v3169_v3, %v3168_v5  ;;  %v6317_v3 = vor.u32 %v6865_v35, %v6316_v51  ;;  %v5974_v51 = vld [vmem:[#allocation7 + $0x88] sm:$0xf0]  ;;  %v6806_v16 = vld [vmem:[#allocation7 + $0x164] sm:$0xf] }
 0x3ca   :  { %v3054_v25 = vpop.f32.mrf.mxu1  ;;  %v6834_v46 = vld [vmem:[#allocation7 + $0x244] sm:$0xf] }
 0x3cb   :  { %v3171_v31 = vrot.slane %v3170_v13, 1  ;;  %v3055_v47 = vadd.f32 %v3054_v25, %v3041_v2 }
 0x3cc   :  { %4418 = vmatpush.bf16.msrb.mxu0 %v6025_v38 }
 0x3cd   :  { %v3172_v37 = vadd.f32 %v3171_v31, %v3170_v13  ;;  %v6928_v39 = vpop.eup %6927 }
 0x3ce   :  { %v3340_v52 = vmul.f32 %v6928_v39, %v7545_v29  ;;  %vm3346_vm8 = vweird.f32 %v6928_v39 }
 0x3cf   :  { %v3192_v30 = vmul.f32 %v3172_v37, %v7140_v42  ;;  %vm3347_vm10 = vmor %vm3345_vm9, %vm3346_vm8 }
 0x3d0   :  { %v3341_v49 = vmul.f32 %v6928_v39, %v3340_v52  ;;  %4419 = vmatpush.bf16.msrb.mxu0 %v6017_v55  ;;  %v6840_v52 = vld [vmem:[#allocation7 + $0x274] sm:$0xf]  ;;  %v5982_v55 = vld [vmem:[#allocation7 + $0x98] sm:$0xf0] }
 0x3d1   :  { %v7554_v32 = vsub.f32 %v7538_v1, %v3192_v30  ;;  %v7557_v18 = vsub.f32 %v7540_v44, %v3192_v30  ;;  %v6325_v1 = vor.u32 %v6867_v54, %v6324_v58  ;;  %v6009_v44 = vor.u32 %v6786_v4, %v6006_v45  ;;  %v6859_v45 = vld [vmem:[#allocation7 + $0x304] sm:$0xf0] }
 0x3d2   :  { %v3342_v56 = vmul.f32 0.5, %v3341_v49  ;;  %v3056_v17 = vpop.f32.mrf.mxu1  ;;  %v5985_v4 = vor.u32 %v6780_v28, %v5982_v55 }
 0x3d3   :  { %v3216_v53 = vmul.f32 %v7554_v32, %v7554_v32  ;;  %v3224_v63 = vmul.f32 %v7557_v18, %v7557_v18  ;;  %4378 = vmatpush.bf16.msra.mxu1 %v6325_v1  ;;  %v3057_v43 = vadd.f32 %v3056_v17, %v3043_v50  ;;  %v6292_v1 = vld [vmem:[#allocation7 + $0x300] sm:$0xf] }
 0x3d4   :  { %v3343_v12 = vsub.f32 1.5, %v3342_v56  ;;  %4420 = vmatpush.bf16.msrb.mxu0 %v6009_v44  ;;  %v6293_v17 = vor.u32 %v6859_v45, %v6292_v1 }
 0x3d5   :  { %v3262_v59 = vadd.f32 %v3224_v63, %v3216_v53  ;;  %v6222_v63 = vld [vmem:[#allocation7 + $0x278] sm:$0xf0] }
 0x3d6   :  { %v3068_v33 = vpop.f32.mrf.mxu2  ;;  %v3344_v0 = vmul.f32 %v6928_v39, %v3343_v12  ;;  %v6225_v23 = vor.u32 %v6840_v52, %v6222_v63  ;;  %v6078_v52 = vld [vmem:[#allocation7 + $0x158] sm:$0xf0] }
 0x3d7   :  { %v3263_v5 = vrot.slane %v3262_v59, 4  ;;  %v7569_v61 = vadd.f32 %v3068_v33, %v3055_v47  ;;  %4379 = vmatpush.bf16.msra.mxu1 %v6317_v3  ;;  %v6412_v3 = vld [vmem:[#allocation7 + $0x3f0] sm:$0xf] }
 0x3d8   :  { %v3348_v13 = vsel %vm3347_vm10, %v6928_v39, %v3344_v0  ;;  %4421 = vmatpush.bf16.msrb.mxu0 %v6001_v7  ;;  %v6836_v7 = vld [vmem:[#allocation7 + $0x254] sm:$0xf] }
 0x3d9   :  { %v3264_v9 = vadd.f32 %v3263_v5, %v3262_v59  ;;  %v3383_v29 = vmul.f32 %v3348_v13, %v7524_v21  ;;  %v3391_v26 = vmul.f32 %v3348_v13, %v7527_v60  ;;  %v5993_v21 = vor.u32 %v6782_v20, %v5990_v36  ;;  %v6778_v59 = vld [vmem:[#allocation7 + $0x84] sm:$0xf]  ;;  %v6214_v5 = vld [vmem:[#allocation7 + $0x268] sm:$0xf0] }
 0x3da   :  { %v5977_v19 = vor.u32 %v6778_v59, %v5974_v51  ;;  %v6217_v47 = vor.u32 %v6838_v62, %v6214_v5  ;;  %v6832_v59 = vld [vmem:[#allocation7 + $0x234] sm:$0xf] }
 0x3db   :  { %v3265_v31 = vrot.slane %v3264_v9, 2  ;;  %v3416_v37 = vmul.f32 %v3400_v22, %v3383_v29  ;;  %v3424_v38 = vmul.f32 %v3400_v22, %v3391_v26  ;;  %4380 = vmatpush.bf16.msra.mxu1 %v6309_v8  ;;  %v6808_v22 = vld [vmem:[#allocation7 + $0x174] sm:$0xf]  ;;  %v7582_v13 = vpop.f32.mrf.mxu3  ;;  %v6413_v29 = vor.u32 %v6889_v27, %v6412_v3  ;;  %v6086_v8 = vld [vmem:[#allocation7 + $0x168] sm:$0xf0] }
 0x3dc   :  { %4422 = vmatpush.bf16.msrb.mxu0 %v5993_v21  ;;  %v6089_v36 = vor.u32 %v6806_v16, %v6086_v8  ;;  %v6396_v21 = vld [vmem:[#allocation7 + $0x3d0] sm:$0xf] }
 0x3dd   :  { %v3266_v24 = vadd.f32 %v3265_v31, %v3264_v9  ;;  %v3449_v39 = vadd.f32 %v3433_v14, %v3416_v37  ;;  %v3457_v60 = vadd.f32 %v3433_v14, %v3424_v38  ;;  %v6094_v9 = vld [vmem:[#allocation7 + $0x178] sm:$0xf0]  ;;  %v6404_v31 = vld [vmem:[#allocation7 + $0x3e0] sm:$0xf]  ;;  %4389 = vmatpush.bf16.msra.mxu2 %v6413_v29  ;;  %v6380_v27 = vld [vmem:[#allocation7 + $0x3b0] sm:$0xf] }
 0x3de   :  { %v3070_v34 = vpop.f32.mrf.mxu2  ;;  %v7584_v14 = vpop.f32.mrf.mxu0  ;;  %v6097_v26 = vor.u32 %v6808_v22, %v6094_v9  ;;  %v6881_v22 = vld [vmem:[#allocation7 + $0x3b4] sm:$0xf0]  ;;  %v6800_v29 = vld [vmem:[#allocation7 + $0x134] sm:$0xf] }
 0x3df   :  { %v7571_v25 = vadd.f32 %v3070_v34, %v3057_v43  ;;  %v3267_v30 = vrot.slane %v3266_v24, 1  ;;  %vm3465_vm11 = vcmp.gt.f32.partialorder %v3449_v39, 0.0  ;;  %vm3473_vm12 = vcmp.gt.f32.partialorder %v3457_v60, 0.0  ;;  %4381 = vmatpush.bf16.msra.mxu1 %v6301_v41  ;;  %v6887_v43 = vld [vmem:[#allocation7 + $0x3e4] sm:$0xf0] }
 0x3e0   :  { %v3481_v58 = vmul.f32 0.2, %v3449_v39  ;;  %v3489_v54 = vmul.f32 0.2, %v3457_v60  ;;  %4423 = vmatpush.bf16.msrb.mxu0 %v5985_v4  ;;  %v6206_v34 = vld [vmem:[#allocation7 + $0x258] sm:$0xf0]  ;;  %v6405_v20 = vor.u32 %v6887_v43, %v6404_v31  ;;  %v3097_v9 = vadd.f32 %v7584_v14, %v7582_v13 }
 0x3e1   :  { %v3173_v10 = vadd.f32 %v7571_v25, %v7569_v61  ;;  %v3268_v49 = vadd.f32 %v3267_v30, %v3266_v24  ;;  %v6209_v24 = vor.u32 %v6836_v7, %v6206_v34  ;;  %v6883_v4 = vld [vmem:[#allocation7 + $0x3c4] sm:$0xf0]  ;;  %v6381_v43 = vor.u32 %v6881_v22, %v6380_v27  ;;  %v7613_v14 = vld [vmem:[%s7685_s6 + $0x16] sm:$0xff]  ;;  %v6356_v22 = vld [vmem:[#allocation7 + $0x380] sm:$0xf] }
 0x3e2   :  { %v3497_v44 = vsel %vm3465_vm11, %v3449_v39, %v3481_v58  ;;  %v3505_v12 = vsel %vm3473_vm12, %v3457_v60, %v3489_v54  ;;  %v6885_v39 = vld [vmem:[#allocation7 + $0x3d4] sm:$0xf0]  ;;  %v6804_v60 = vld [vmem:[#allocation7 + $0x154] sm:$0xf]  ;;  %4390 = vmatpush.bf16.msra.mxu2 %v6405_v20  ;;  %v6201_v58 = vor.u32 %v6834_v46, %v6198_v40  ;;  %v6388_v54 = vld [vmem:[#allocation7 + $0x3c0] sm:$0xf] }
 0x3e3   :  { %v3174_v53 = vrot.slane %v3173_v10, 4  ;;  %v3288_v56 = vmul.f32 %v3268_v49, %v7140_v42  ;;  %v7578_v2 = vpack.c.bf16 %v3505_v12, %v3497_v44  ;;  %4382 = vmatpush.bf16.msra.mxu1 %v6293_v17  ;;  %v6397_v28 = vor.u32 %v6885_v39, %v6396_v21  ;;  %v6190_v44 = vld [vmem:[#allocation7 + $0x238] sm:$0xf0]  ;;  %v6182_v17 = vld [vmem:[#allocation7 + $0x228] sm:$0xf0] }
 0x3e4   :  { %4424 = vmatpush.bf16.msrb.mxu0 %v5977_v19  ;;  %v6081_v55 = vor.u32 %v6804_v60, %v6078_v52  ;;  %v6389_v62 = vor.u32 %v6883_v4, %v6388_v54  ;;  %v6193_v19 = vor.u32 %v6832_v59, %v6190_v44  ;;  %v6828_v20 = vld [vmem:[#allocation7 + $0x214] sm:$0xf]  ;;  %v6174_v21 = vld [vmem:[#allocation7 + $0x218] sm:$0xf0]  ;;  %v6372_v39 = vld [vmem:[#allocation7 + $0x3a0] sm:$0xf] }
 0x3e5   :  { %v3175_v33 = vadd.f32 %v3174_v53, %v3173_v10  ;;  %v7576_v35 = vadd.f32 0.8, %v3288_v56  ;;  %4355 = vmatmul.bf16.vlgmr.msrb.gmra.mxu3 %v7578_v2  ;;  %v6802_v56 = vld [vmem:[#allocation7 + $0x144] sm:$0xf]  ;;  %v6879_v60 = vld [vmem:[#allocation7 + $0x3a4] sm:$0xf0] }
 0x3e6   :  { %4459 = vmatpush.bf16.msrb.mxu3 %v6225_v23  ;;  %v3084_v23 = vpop.f32.mrf.mxu3  ;;  %4391 = vmatpush.bf16.msra.mxu2 %v6397_v28  ;;  %v6798_v28 = vld [vmem:[#allocation7 + $0x124] sm:$0xf] }
 0x3e7   :  { %v3176_v0 = vrot.slane %v3175_v33, 2  ;;  %6929 = vrsqrt.f32 %v7576_v35  ;;  %4431 = vmatpush.bf16.msrb.mxu1 %v6097_v26  ;;  %v6062_v26 = vld [vmem:[#allocation7 + $0x138] sm:$0xf0]  ;;  %vm3355_vm14 = vweird.f32 %v7576_v35  ;;  %v6826_v4 = vld [vmem:[#allocation7 + $0x204] sm:$0xf] }
 0x3e8   :  { %v6065_v16 = vor.u32 %v6800_v29, %v6062_v26  ;;  %v6854_v26 = vld [vmem:[#allocation7 + $0x2e4] sm:$0xf] }
 0x3e9   :  { %v3177_v50 = vadd.f32 %v3176_v0, %v3175_v33  ;;  %v6830_v0 = vld [vmem:[#allocation7 + $0x224] sm:$0xf] }
 0x3ea   :  { %v7586_v38 = vpop.f32.mrf.mxu1  ;;  %4460 = vmatpush.bf16.msrb.mxu3 %v6217_v47  ;;  %4392 = vmatpush.bf16.msra.mxu2 %v6389_v62  ;;  %v6286_v62 = vld [vmem:[#allocation7 + $0x2f8] sm:$0xf0] }
 0x3eb   :  { %v3178_v6 = vrot.slane %v3177_v50, 1  ;;  %4432 = vmatpush.bf16.msrb.mxu1 %v6089_v36  ;;  %v3111_v8 = vadd.f32 %v7586_v38, %v3097_v9  ;;  %v6054_v38 = vld [vmem:[#allocation7 + $0x128] sm:$0xf0]  ;;  %v6875_v9 = vld [vmem:[#allocation7 + $0x384] sm:$0xf0] }
 0x3ed   :  { %v3179_v37 = vadd.f32 %v3178_v6, %v3177_v50  ;;  %v6930_v30 = vpop.eup %6929  ;;  %v7607_v6 = vld [vmem:[%s7685_s6 + $0xe] sm:$0xff] }
 0x3ee   :  { %v3350_v41 = vmul.f32 %v6930_v30, %v7576_v35  ;;  %4461 = vmatpush.bf16.msrb.mxu3 %v6209_v24  ;;  %vm3356_vm13 = vweird.f32 %v6930_v30  ;;  %v3401_v13 = vperm.slane %v7607_v6, 5  ;;  %v3434_v35 = vperm.slane %v7613_v14, 5  ;;  %4393 = vmatpush.bf16.msra.mxu2 %v6381_v43 }
 0x3ef   :  { %v3193_v10 = vmul.f32 %v3179_v37, %v7140_v42  ;;  %4433 = vmatpush.bf16.msrb.mxu1 %v6081_v55  ;;  %vm3357_vm15 = vmor %vm3355_vm14, %vm3356_vm13  ;;  %v6185_v24 = vor.u32 %v6830_v0, %v6182_v17  ;;  %v6357_v43 = vor.u32 %v6875_v9, %v6356_v22 }
 0x3f0   :  { %v3351_v63 = vmul.f32 %v6930_v30, %v3350_v41 }
 0x3f1   :  { %v7591_v49 = vsub.f32 %v7569_v61, %v3193_v10  ;;  %v7594_v53 = vsub.f32 %v7571_v25, %v3193_v10  ;;  %v6070_v61 = vld [vmem:[#allocation7 + $0x148] sm:$0xf0]  ;;  %v3098_v25 = vpop.f32.mrf.mxu0 }
 0x3f2   :  { %v3352_v12 = vmul.f32 0.5, %v3351_v63  ;;  %v6073_v5 = vor.u32 %v6802_v56, %v6070_v61  ;;  %4462 = vmatpush.bf16.msrb.mxu3 %v6201_v58  ;;  %v3099_v7 = vadd.f32 %v3098_v25, %v3084_v23  ;;  %v3112_v47 = vpop.f32.mrf.mxu1  ;;  %v6364_v56 = vld [vmem:[#allocation7 + $0x390] sm:$0xf]  ;;  %v6166_v61 = vld [vmem:[#allocation7 + $0x208] sm:$0xf0] }
 0x3f3   :  { %v3217_v33 = vmul.f32 %v7591_v49, %v7591_v49  ;;  %v3225_v1 = vmul.f32 %v7594_v53, %v7594_v53  ;;  %v6856_v25 = vld [vmem:[#allocation7 + $0x2f4] sm:$0xf]  ;;  %v6169_v27 = vor.u32 %v6826_v4, %v6166_v61  ;;  %v6262_v4 = vld [vmem:[#allocation7 + $0x2c8] sm:$0xf0] }
 0x3f4   :  { %v3353_v3 = vsub.f32 1.5, %v3352_v12  ;;  %4434 = vmatpush.bf16.msrb.mxu1 %v6073_v5  ;;  %v3113_v37 = vadd.f32 %v3112_v47, %v3099_v7  ;;  %v6046_v12 = vld [vmem:[#allocation7 + $0x118] sm:$0xf0]  ;;  %v6289_v29 = vor.u32 %v6856_v25, %v6286_v62 }
 0x3f5   :  { %v3269_v51 = vadd.f32 %v3225_v1, %v3217_v33  ;;  %4411 = vmatmul.bf16.vlgmr.msra.gmra.mxu3 %v7476_v48  ;;  %v6373_v48 = vor.u32 %v6879_v60, %v6372_v39  ;;  %v6877_v33 = vld [vmem:[#allocation7 + $0x394] sm:$0xf0]  ;;  %v6796_v1 = vld [vmem:[#allocation7 + $0x114] sm:$0xf]  ;;  %v6822_v60 = vld [vmem:[#allocation7 + $0x1e4] sm:$0xf] }
 0x3f6   :  { %v3124_v45 = vpop.f32.mrf.mxu2  ;;  %v3354_v31 = vmul.f32 %v6930_v30, %v3353_v3  ;;  %4463 = vmatpush.bf16.msrb.mxu3 %v6193_v19  ;;  %v6365_v5 = vor.u32 %v6877_v33, %v6364_v56 }
 0x3f7   :  { %v3270_v50 = vrot.slane %v3269_v51, 4  ;;  %v7620_v52 = vadd.f32 %v3124_v45, %v3111_v8  ;;  %4394 = vmatpush.bf16.msra.mxu2 %v6373_v48 }
 0x3f8   :  { %v3358_v36 = vsel %vm3357_vm15, %v6930_v30, %v3354_v31  ;;  %4435 = vmatpush.bf16.msrb.mxu1 %v6065_v16  ;;  %v6057_v30 = vor.u32 %v6798_v28, %v6054_v38  ;;  %v6278_v31 = vld [vmem:[#allocation7 + $0x2e8] sm:$0xf0] }
 0x3f9   :  { %v3271_v34 = vadd.f32 %v3270_v50, %v3269_v51  ;;  %v3384_v10 = vmul.f32 %v3358_v36, %v7554_v32  ;;  %v3392_v46 = vmul.f32 %v3358_v36, %v7557_v18  ;;  %v6177_v18 = vor.u32 %v6828_v20, %v6174_v21  ;;  %v6794_v50 = vld [vmem:[#allocation7 + $0x104] sm:$0xf]  ;;  %v6038_v16 = vld [vmem:[#allocation7 + $0x108] sm:$0xf0]  ;;  %v6824_v20 = vld [vmem:[#allocation7 + $0x1f4] sm:$0xf] }
 0x3fa   :  { %4464 = vmatpush.bf16.msrb.mxu3 %v6185_v24  ;;  %v6049_v51 = vor.u32 %v6796_v1, %v6046_v12  ;;  %v6041_v8 = vor.u32 %v6794_v50, %v6038_v16  ;;  %v6158_v36 = vld [vmem:[#allocation7 + $0x1f8] sm:$0xf0]  ;;  %v6281_v39 = vor.u32 %v6854_v26, %v6278_v31  ;;  %v6848_v12 = vld [vmem:[#allocation7 + $0x2b4] sm:$0xf]  ;;  %v3402_v26 = vperm.slane %v7607_v6, 6 }
 0x3fb   :  { %v3272_v40 = vrot.slane %v3271_v34, 2  ;;  %v3417_v63 = vmul.f32 %v3401_v13, %v3384_v10  ;;  %v3425_v58 = vmul.f32 %v3401_v13, %v3392_v46  ;;  %4395 = vmatpush.bf16.msra.mxu2 %v6365_v5  ;;  %v6150_v10 = vld [vmem:[#allocation7 + $0x1e8] sm:$0xf0]  ;;  %v6238_v16 = vld [vmem:[#allocation7 + $0x298] sm:$0xf0] }
 0x3fc   :  { %4436 = vmatpush.bf16.msrb.mxu1 %v6057_v30  ;;  %v6153_v28 = vor.u32 %v6822_v60, %v6150_v10  ;;  %v6820_v30 = vld [vmem:[#allocation7 + $0x1d4] sm:$0xf] }
 0x3fd   :  { %v3273_v54 = vadd.f32 %v3272_v40, %v3271_v34  ;;  %v3450_v45 = vadd.f32 %v3434_v35, %v3417_v63  ;;  %v3458_v59 = vadd.f32 %v3434_v35, %v3425_v58  ;;  %v6852_v40 = vld [vmem:[#allocation7 + $0x2d4] sm:$0xf]  ;;  %v6142_v63 = vld [vmem:[#allocation7 + $0x1d8] sm:$0xf0] }
 0x3fe   :  { %v3126_v41 = vpop.f32.mrf.mxu2  ;;  %4465 = vmatpush.bf16.msrb.mxu3 %v6177_v18 }
 0x3ff   :  { %v7622_v55 = vadd.f32 %v3126_v41, %v3113_v37  ;;  %v3274_v44 = vrot.slane %v3273_v54, 1  ;;  %vm3466_vm0 = vcmp.gt.f32.partialorder %v3450_v45, 0.0  ;;  %vm3474_vm1 = vcmp.gt.f32.partialorder %v3458_v59, 0.0  ;;  %v6270_v41 = vld [vmem:[#allocation7 + $0x2d8] sm:$0xf0]  ;;  %4396 = vmatpush.bf16.msra.mxu2 %v6357_v43 }
 0x400   :  { %v3482_v0 = vmul.f32 0.2, %v3450_v45  ;;  %v3490_v17 = vmul.f32 0.2, %v3458_v59  ;;  %4437 = vmatpush.bf16.msrb.mxu1 %v6049_v51  ;;  %v6161_v37 = vor.u32 %v6824_v20, %v6158_v36  ;;  %v6273_v48 = vor.u32 %v6852_v40, %v6270_v41  ;;  %v6816_v51 = vld [vmem:[#allocation7 + $0x1b4] sm:$0xf] }
 0x401   :  { %v3180_v32 = vadd.f32 %v7622_v55, %v7620_v52  ;;  %v3275_v3 = vadd.f32 %v3274_v44, %v3273_v54  ;;  %v6850_v54 = vld [vmem:[#allocation7 + $0x2c4] sm:$0xf]  ;;  %v6844_v43 = vld [vmem:[#allocation7 + $0x294] sm:$0xf]  ;;  %v3435_v20 = vperm.slane %v7613_v14, 6 }
 0x402   :  { %v3498_v7 = vsel %vm3466_vm0, %v3450_v45, %v3482_v0  ;;  %v3506_v47 = vsel %vm3474_vm1, %v3458_v59, %v3490_v17  ;;  %4466 = vmatpush.bf16.msrb.mxu3 %v6169_v27  ;;  %v6265_v1 = vor.u32 %v6850_v54, %v6262_v4  ;;  %v6818_v45 = vld [vmem:[#allocation7 + $0x1c4] sm:$0xf]  ;;  %v6134_v59 = vld [vmem:[#allocation7 + $0x1c8] sm:$0xf0]  ;;  %v6126_v0 = vld [vmem:[#allocation7 + $0x1b8] sm:$0xf0] }
 0x403   :  { %v3181_v23 = vrot.slane %v3180_v32, 4  ;;  %v3289_v13 = vmul.f32 %v3275_v3, %v7140_v42  ;;  %v7627_v34 = vpack.c.bf16 %v3506_v47, %v3498_v7  ;;  %4445 = vmatpush.bf16.msrb.mxu2 %v6161_v37  ;;  %v6846_v3 = vld [vmem:[#allocation7 + $0x2a4] sm:$0xf]  ;;  %v6129_v22 = vor.u32 %v6816_v51, %v6126_v0  ;;  %v6230_v40 = vld [vmem:[#allocation7 + $0x288] sm:$0xf0] }
 0x404   :  { %4438 = vmatpush.bf16.msrb.mxu1 %v6041_v8  ;;  %v6814_v47 = vld [vmem:[#allocation7 + $0x1a4] sm:$0xf]  ;;  %v6241_v37 = vor.u32 %v6844_v43, %v6238_v16  ;;  %v3436_v16 = vperm.slane %v7613_v14, 7 }
 0x405   :  { %v3182_v19 = vadd.f32 %v3181_v23, %v3180_v32  ;;  %v7629_v24 = vadd.f32 0.8, %v3289_v13  ;;  %4369 = vmatmul.bf16.vlgmr.msra.gmra.mxu0 %v7627_v34  ;;  %4467 = vmatmul.bf16.vlgmr.msrb.gmra.mxu3 %v7578_v2  ;;  %v6145_v32 = vor.u32 %v6820_v30, %v6142_v63  ;;  %v6254_v23 = vld [vmem:[#allocation7 + $0x2b8] sm:$0xf0]  ;;  %v6810_v63 = vld [vmem:[#allocation7 + $0x184] sm:$0xf] }
 0x406   :  { %4473 = vmatpush.bf16.msra.mxu0 %v6289_v29  ;;  %v6257_v5 = vor.u32 %v6848_v12, %v6254_v23  ;;  %v6118_v29 = vld [vmem:[#allocation7 + $0x1a8] sm:$0xf0]  ;;  %v6350_v30 = vld [vmem:[#allocation7 + $0x378] sm:$0xf0] }
 0x407   :  { %v3183_v35 = vrot.slane %v3182_v19, 2  ;;  %6931 = vrsqrt.f32 %v7629_v24  ;;  %4446 = vmatpush.bf16.msrb.mxu2 %v6153_v28  ;;  %vm3365_vm3 = vweird.f32 %v7629_v24  ;;  %v6342_v12 = vld [vmem:[#allocation7 + $0x368] sm:$0xf0] }
 0x409   :  { %v3184_v21 = vadd.f32 %v3183_v35, %v3182_v19  ;;  %v6246_v19 = vld [vmem:[#allocation7 + $0x2a8] sm:$0xf0]  ;;  %v6121_v35 = vor.u32 %v6814_v47, %v6118_v29  ;;  %v3403_v47 = vperm.slane %v7607_v6, 7  ;;  %v6858_v6 = vld [vmem:[#allocation7 + $0x304] sm:$0xf] }
 0x40a   :  { %4474 = vmatpush.bf16.msra.mxu0 %v6281_v39  ;;  %v6249_v7 = vor.u32 %v6846_v3, %v6246_v19  ;;  %v6864_v3 = vld [vmem:[#allocation7 + $0x334] sm:$0xf]  ;;  %v6318_v19 = vld [vmem:[#allocation7 + $0x338] sm:$0xf0] }
 0x40b   :  { %v3185_v46 = vrot.slane %v3184_v21, 1  ;;  %4447 = vmatpush.bf16.msrb.mxu2 %v6145_v32 }
 0x40d   :  { %v3186_v38 = vadd.f32 %v3185_v46, %v3184_v21  ;;  %v6932_v18 = vpop.eup %6931  ;;  %v6110_v21 = vld [vmem:[#allocation7 + $0x198] sm:$0xf0]  ;;  %v6842_v46 = vld [vmem:[#allocation7 + $0x284] sm:$0xf] }
 0x40e   :  { %v3360_v2 = vmul.f32 %v6932_v18, %v7629_v24  ;;  %4475 = vmatpush.bf16.msra.mxu0 %v6273_v48  ;;  %vm3366_vm2 = vweird.f32 %v6932_v18  ;;  %v6812_v24 = vld [vmem:[#allocation7 + $0x194] sm:$0xf] }
 0x40f   :  { %v3194_v58 = vmul.f32 %v3186_v38, %v7140_v42  ;;  %vm3367_vm4 = vmor %vm3365_vm3, %vm3366_vm2  ;;  %v6113_v41 = vor.u32 %v6812_v24, %v6110_v21  ;;  %v6294_v24 = vld [vmem:[#allocation7 + $0x308] sm:$0xf0]  ;;  %v6414_v21 = vld [vmem:[#allocation7 + $0x3f8] sm:$0xf0] }
 0x410   :  { %v3361_v25 = vmul.f32 %v6932_v18, %v3360_v2 }
 0x411   :  { %v7636_v56 = vsub.f32 %v7620_v52, %v3194_v58  ;;  %v7639_v33 = vsub.f32 %v7622_v55, %v3194_v58  ;;  %v6137_v52 = vor.u32 %v6818_v45, %v6134_v59  ;;  %v6102_v58 = vld [vmem:[#allocation7 + $0x188] sm:$0xf0] }
 0x412   :  { %v3362_v55 = vmul.f32 0.5, %v3361_v25  ;;  %4476 = vmatpush.bf16.msra.mxu0 %v6265_v1  ;;  %v6334_v25 = vld [vmem:[#allocation7 + $0x358] sm:$0xf0] }
 0x413   :  { %v3218_v44 = vmul.f32 %v7636_v56, %v7636_v56  ;;  %v3226_v61 = vmul.f32 %v7639_v33, %v7639_v33  ;;  %4448 = vmatpush.bf16.msrb.mxu2 %v6137_v52 }
 0x414   :  { %v3363_v27 = vsub.f32 1.5, %v3362_v55  ;;  %v6866_v55 = vld [vmem:[#allocation7 + $0x344] sm:$0xf] }
 0x415   :  { %v3276_v62 = vadd.f32 %v3226_v61, %v3218_v44  ;;  %4425 = vmatmul.bf16.vlgmr.msrb.gmra.mxu0 %v7500_v57  ;;  %v6870_v61 = vld [vmem:[#allocation7 + $0x364] sm:$0xf] }
 0x416   :  { %v3364_v50 = vmul.f32 %v6932_v18, %v3363_v27  ;;  %4477 = vmatpush.bf16.msra.mxu0 %v6257_v5  ;;  %v6345_v23 = vor.u32 %v6870_v61, %v6342_v12  ;;  %v6326_v5 = vld [vmem:[#allocation7 + $0x348] sm:$0xf0] }
 0x417   :  { %v3277_v17 = vrot.slane %v3276_v62, 4  ;;  %4449 = vmatpush.bf16.msrb.mxu2 %v6129_v22  ;;  %v6358_v61 = vld [vmem:[#allocation7 + $0x388] sm:$0xf0] }
 0x418   :  { %v3368_v13 = vsel %vm3367_vm4, %v6932_v18, %v3364_v50  ;;  %v6105_v18 = vor.u32 %v6810_v63, %v6102_v58  ;;  %v6310_v50 = vld [vmem:[#allocation7 + $0x328] sm:$0xf0]  ;;  %v6880_v58 = vld [vmem:[#allocation7 + $0x3b4] sm:$0xf] }
 0x419   :  { %v3278_v9 = vadd.f32 %v3277_v17, %v3276_v62  ;;  %v3385_v8 = vmul.f32 %v3368_v13, %v7591_v49  ;;  %v3393_v57 = vmul.f32 %v3368_v13, %v7594_v53  ;;  %v6872_v49 = vld [vmem:[#allocation7 + $0x374] sm:$0xf]  ;;  %v6233_v53 = vor.u32 %v6842_v46, %v6230_v40  ;;  %v6886_v40 = vld [vmem:[#allocation7 + $0x3e4] sm:$0xf] }
 0x41a   :  { %4478 = vmatpush.bf16.msra.mxu0 %v6249_v7  ;;  %v6353_v45 = vor.u32 %v6872_v49, %v6350_v30  ;;  %v6329_v17 = vor.u32 %v6866_v55, %v6326_v5  ;;  %v6860_v13 = vld [vmem:[#allocation7 + $0x314] sm:$0xf]  ;;  %v6390_v30 = vld [vmem:[#allocation7 + $0x3c8] sm:$0xf0] }
 0x41b   :  { %v3279_v31 = vrot.slane %v3278_v9, 2  ;;  %v3418_v39 = vmul.f32 %v3402_v26, %v3385_v8  ;;  %v3426_v60 = vmul.f32 %v3402_v26, %v3393_v57  ;;  %4450 = vmatpush.bf16.msrb.mxu2 %v6121_v35  ;;  %v6302_v35 = vld [vmem:[#allocation7 + $0x318] sm:$0xf0] }
 0x41d   :  { %v3280_v36 = vadd.f32 %v3279_v31, %v3278_v9  ;;  %v3451_v28 = vadd.f32 %v3435_v20, %v3418_v39  ;;  %v3459_v38 = vadd.f32 %v3435_v20, %v3426_v60  ;;  %v6321_v9 = vor.u32 %v6864_v3, %v6318_v19 }
 0x41e   :  { %4479 = vmatpush.bf16.msra.mxu0 %v6241_v37  ;;  %v6305_v20 = vor.u32 %v6860_v13, %v6302_v35 }
 0x41f   :  { %v3281_v10 = vrot.slane %v3280_v36, 1  ;;  %vm3467_vm5 = vcmp.gt.f32.partialorder %v3451_v28, 0.0  ;;  %vm3475_vm6 = vcmp.gt.f32.partialorder %v3459_v38, 0.0  ;;  %v3483_v54 = vmul.f32 0.2, %v3451_v28  ;;  %4451 = vmatpush.bf16.msrb.mxu2 %v6113_v41 }
 0x420   :  { %v3491_v4 = vmul.f32 0.2, %v3459_v38  ;;  %v6406_v41 = vld [vmem:[#allocation7 + $0x3e8] sm:$0xf0] }
 0x421   :  { %v3282_v48 = vadd.f32 %v3281_v10, %v3280_v36  ;;  %v3499_v2 = vsel %vm3467_vm5, %v3451_v28, %v3483_v54  ;;  %v6409_v28 = vor.u32 %v6886_v40, %v6406_v41  ;;  %v6382_v54 = vld [vmem:[#allocation7 + $0x3b8] sm:$0xf0] }
 0x422   :  { %v3507_v1 = vsel %vm3475_vm6, %v3459_v38, %v3491_v4  ;;  %4480 = vmatpush.bf16.msra.mxu0 %v6233_v53  ;;  %v6884_v38 = vld [vmem:[#allocation7 + $0x3d4] sm:$0xf]  ;;  %v6882_v53 = vld [vmem:[#allocation7 + $0x3c4] sm:$0xf]  ;;  %v6385_v4 = vor.u32 %v6880_v58, %v6382_v54 }
 0x423   :  { %v3290_v32 = vmul.f32 %v3282_v48, %v7140_v42  ;;  %v7653_v44 = vpack.c.bf16 %v3507_v1, %v3499_v2  ;;  %4452 = vmatpush.bf16.msrb.mxu2 %v6105_v18  ;;  %v6868_v42 = vld [vmem:[#allocation7 + $0x354] sm:$0xf]  ;;  %v6398_v48 = vld [vmem:[#allocation7 + $0x3d8] sm:$0xf0]  ;;  %v6393_v63 = vor.u32 %v6882_v53, %v6390_v30  ;;  %v6374_v18 = vld [vmem:[#allocation7 + $0x3a8] sm:$0xf0] }
 0x424   :  { %v6337_v52 = vor.u32 %v6868_v42, %v6334_v25  ;;  %v6401_v49 = vor.u32 %v6884_v38, %v6398_v48  ;;  %v6876_v1 = vld [vmem:[#allocation7 + $0x394] sm:$0xf]  ;;  %v4314_v42 = vpop.f32.mrf.mxu0 }
 0x425   :  { %v3298_v59 = vadd.f32 0.8, %v3290_v32  ;;  %4383 = vmatmul.bf16.vlgmr.msra.gmra.mxu1 %v7653_v44  ;;  %4481 = vmatmul.bf16.vlgmr.msra.gmra.mxu0 %v7627_v34  ;;  %v6862_v34 = vld [vmem:[#allocation7 + $0x324] sm:$0xf] }
 0x426   :  { %4487 = vmatpush.bf16.msra.mxu1 %v6353_v45  ;;  %v6313_v26 = vor.u32 %v6862_v34, %v6310_v50  ;;  %v6878_v32 = vld [vmem:[#allocation7 + $0x3a4] sm:$0xf]  ;;  %v6366_v45 = vld [vmem:[#allocation7 + $0x398] sm:$0xf0]  ;;  %v4328_v25 = vpop.f32.mrf.mxu1 }
 0x427   :  { %6933 = vrsqrt.f32 %v3298_v59  ;;  %vm3375_vm8 = vweird.f32 %v3298_v59  ;;  %v6377_v2 = vor.u32 %v6878_v32, %v6374_v18 }
 0x42a   :  { %4488 = vmatpush.bf16.msra.mxu1 %v6345_v23  ;;  %v4300_v23 = vpop.f32.mrf.mxu3 }
 0x42d   :  { %v6934_v62 = vpop.eup %6933 }
 0x42e   :  { %v3370_v51 = vmul.f32 %v6934_v62, %v3298_v59  ;;  %4489 = vmatpush.bf16.msra.mxu1 %v6337_v52  ;;  %vm3376_vm7 = vweird.f32 %v6934_v62  ;;  %v6369_v59 = vor.u32 %v6876_v1, %v6366_v45  ;;  %v4330_v55 = vpop.f32.mrf.mxu1 }
 0x42f   :  { %vm3377_vm9 = vmor %vm3375_vm8, %vm3376_vm7 }
 0x430   :  { %v3371_v0 = vmul.f32 %v6934_v62, %v3370_v51 }
 0x432   :  { %v3372_v27 = vmul.f32 0.5, %v3371_v0  ;;  %4490 = vmatpush.bf16.msra.mxu1 %v6329_v17  ;;  %v4302_v52 = vpop.f32.mrf.mxu3 }
 0x434   :  { %v3373_v22 = vsub.f32 1.5, %v3372_v27 }
 0x435   :  { %4439 = vmatmul.bf16.vlgmr.msrb.gmra.mxu1 %v7517_v15  ;;  %v6888_v15 = vld [vmem:[#allocation7 + $0x3f4] sm:$0xf] }
 0x436   :  { %v3374_v7 = vmul.f32 %v6934_v62, %v3373_v22  ;;  %4491 = vmatpush.bf16.msra.mxu1 %v6321_v9  ;;  %v6417_v10 = vor.u32 %v6888_v15, %v6414_v21 }
 0x438   :  { %v3378_v29 = vsel %vm3377_vm9, %v6934_v62, %v3374_v7  ;;  %v4316_v62 = vpop.f32.mrf.mxu0 }
 0x439   :  { %v3386_v31 = vmul.f32 %v3378_v29, %v7636_v56  ;;  %v3394_v43 = vmul.f32 %v3378_v29, %v7639_v33  ;;  %v6297_v33 = vor.u32 %v6858_v6, %v6294_v24 }
 0x43a   :  { %4492 = vmatpush.bf16.msra.mxu1 %v6313_v26 }
 0x43b   :  { %v3419_v8 = vmul.f32 %v3403_v47, %v3386_v31  ;;  %v3427_v57 = vmul.f32 %v3403_v47, %v3394_v43 }
 0x43d   :  { %v3452_v36 = vadd.f32 %v3436_v16, %v3419_v8  ;;  %v3460_v37 = vadd.f32 %v3436_v16, %v3427_v57 }
 0x43e   :  { %4493 = vmatpush.bf16.msra.mxu1 %v6305_v20 }
 0x43f   :  { %vm3468_vm10 = vcmp.gt.f32.partialorder %v3452_v36, 0.0  ;;  %vm3476_vm11 = vcmp.gt.f32.partialorder %v3460_v37, 0.0  ;;  %v3484_v39 = vmul.f32 0.2, %v3452_v36  ;;  %v3492_v56 = vmul.f32 0.2, %v3460_v37 }
 0x441   :  { %v3500_v60 = vsel %vm3468_vm10, %v3452_v36, %v3484_v39  ;;  %v3508_v14 = vsel %vm3476_vm11, %v3460_v37, %v3492_v56 }
 0x442   :  { %v3516_v46 = vpack.c.bf16 %v3508_v14, %v3500_v60  ;;  %4494 = vmatpush.bf16.msra.mxu1 %v6297_v33 }
 0x444   :  { %4397 = vmatmul.bf16.vlgmr.msra.gmra.mxu2 %v3516_v46 }
 0x445   :  { %4501 = vmatpush.bf16.msra.mxu2 %v6417_v10  ;;  %4495 = vmatmul.bf16.vlgmr.msra.gmra.mxu1 %v7653_v44  ;;  %v6874_v44 = vld [vmem:[#allocation7 + $0x384] sm:$0xf] }
 0x446   :  { %v6361_v12 = vor.u32 %v6874_v44, %v6358_v61 }
 0x448   :  { %v4342_v51 = vpop.f32.mrf.mxu2 }
 0x449   :  { %4502 = vmatpush.bf16.msra.mxu2 %v6409_v28 }
 0x44d   :  { %4503 = vmatpush.bf16.msra.mxu2 %v6401_v49 }
 0x450   :  { %v4344_v34 = vpop.f32.mrf.mxu2 }
 0x451   :  { %4504 = vmatpush.bf16.msra.mxu2 %v6393_v63 }
 0x454   :  { %4453 = vmatmul.bf16.vlgmr.msrb.gmra.mxu2 %v7547_v11  ;;  %v3517_v11 = vld [vmem:[%s7685_s6 + $0x1e] sm:$0x3] }
 0x455   :  { %4505 = vmatpush.bf16.msra.mxu2 %v6385_v4  ;;  %v3647_v0 = vperm.slane %v3517_v11, 0  ;;  %v3648_v56 = vperm.slane %v3517_v11, 1 }
 0x457   :  { %v4301_v3 = vadd.f32 %v4300_v23, %v3647_v0  ;;  %v4303_v47 = vadd.f32 %v4302_v52, %v3647_v0 }
 0x459   :  { %4506 = vmatpush.bf16.msra.mxu2 %v6377_v2  ;;  %v4315_v27 = vadd.f32 %v4314_v42, %v4301_v3  ;;  %v4317_v26 = vadd.f32 %v4316_v62, %v4303_v47 }
 0x45b   :  { %v4329_v9 = vadd.f32 %v4328_v25, %v4315_v27  ;;  %v4331_v16 = vadd.f32 %v4330_v55, %v4317_v26 }
 0x45d   :  { %4507 = vmatpush.bf16.msra.mxu2 %v6369_v59  ;;  %v4343_v50 = vadd.f32 %v4342_v51, %v4329_v9  ;;  %v4345_v57 = vadd.f32 %v4344_v34, %v4331_v16 }
 0x461   :  { %4508 = vmatpush.bf16.msra.mxu2 %v6361_v12 }
 0x464   :  { %4509 = vmatmul.bf16.vlgmr.msra.gmra.mxu2 %v3516_v46 }
 0x468   :  { %v4356_v5 = vpop.f32.mrf.mxu3 }
 0x469   :  { %v4357_v29 = vadd.f32 %v4356_v5, %v4343_v50 }
 0x470   :  { %v4358_v22 = vpop.f32.mrf.mxu3 }
 0x471   :  { %v4359_v36 = vadd.f32 %v4358_v22, %v4345_v57 }
 0x478   :  { %v4412_v35 = vpop.f32.mrf.mxu3 }
 0x479   :  { %v4413_v14 = vadd.f32 %v4412_v35, %v3648_v56 }
 0x480   :  { %v4414_v60 = vpop.f32.mrf.mxu3 }
 0x481   :  { %v4415_v53 = vadd.f32 %v4414_v60, %v3648_v56 }
 0x482   :  { %v4370_v17 = vpop.f32.mrf.mxu0 }
 0x483   :  { %v4371_v31 = vadd.f32 %v4370_v17, %v4357_v29 }
 0x488   :  { %v4468_v49 = vpop.f32.mrf.mxu3 }
 0x48a   :  { %v4372_v7 = vpop.f32.mrf.mxu0 }
 0x48b   :  { %v4373_v6 = vadd.f32 %v4372_v7, %v4359_v36 }
 0x490   :  { %v4470_v1 = vpop.f32.mrf.mxu3 }
 0x492   :  { %v4426_v37 = vpop.f32.mrf.mxu0 }
 0x493   :  { %v4427_v46 = vadd.f32 %v4426_v37, %v4413_v14 }
 0x49a   :  { %v4428_v10 = vpop.f32.mrf.mxu0 }
 0x49b   :  { %v4429_v30 = vadd.f32 %v4428_v10, %v4415_v53 }
 0x4a2   :  { %v4384_v19 = vpop.f32.mrf.mxu1  ;;  %v4482_v58 = vpop.f32.mrf.mxu0 }
 0x4a3   :  { %v4385_v13 = vadd.f32 %v4384_v19, %v4371_v31 }
 0x4aa   :  { %v4386_v43 = vpop.f32.mrf.mxu1  ;;  %v4484_v12 = vpop.f32.mrf.mxu0 }
 0x4ab   :  { %v4387_v24 = vadd.f32 %v4386_v43, %v4373_v6 }
 0x4b2   :  { %v4440_v15 = vpop.f32.mrf.mxu1 }
 0x4b3   :  { %v4441_v28 = vadd.f32 %v4440_v15, %v4427_v46 }
 0x4ba   :  { %v4442_v38 = vpop.f32.mrf.mxu1 }
 0x4bb   :  { %v4443_v4 = vadd.f32 %v4442_v38, %v4429_v30 }
 0x4c2   :  { %v4496_v2 = vpop.f32.mrf.mxu1 }
 0x4c7   :  { %v4398_v8 = vpop.f32.mrf.mxu2 }
 0x4c8   :  { %v4399_v20 = vadd.f32 %v4398_v8, %v4385_v13 }
 0x4ca   :  { %6935 = vtanh.f32 %v4399_v20  ;;  %v4498_v42 = vpop.f32.mrf.mxu1 }
 0x4cf   :  { %v4400_v21 = vpop.f32.mrf.mxu2 }
 0x4d0   :  { %v6936_v39 = vpop.eup %6935  ;;  %v4401_v33 = vadd.f32 %v4400_v21, %v4387_v24 }
 0x4d1   :  { %4519 = vst [vmem:[%s7686_s7] sm:$0xff] %v6936_v39 }
 0x4d2   :  { %6937 = vtanh.f32 %v4401_v33 }
 0x4d7   :  { %v4454_v40 = vpop.f32.mrf.mxu2 }
 0x4d8   :  { %v6938_v41 = vpop.eup %6937  ;;  %v4455_v48 = vadd.f32 %v4454_v40, %v4441_v28 }
 0x4d9   :  { %4521 = vst [vmem:[%s7686_s7 + $0x10] sm:$0xff] %v6938_v41 }
 0x4da   :  { %v4469_v63 = vadd.f32 %v4468_v49, %v4455_v48 }
 0x4dc   :  { %v4483_v18 = vadd.f32 %v4482_v58, %v4469_v63 }
 0x4de   :  { %v4497_v59 = vadd.f32 %v4496_v2, %v4483_v18 }
 0x4df   :  { %v4456_v54 = vpop.f32.mrf.mxu2 }
 0x4e0   :  { %v4457_v32 = vadd.f32 %v4456_v54, %v4443_v4 }
 0x4e2   :  { %v4471_v45 = vadd.f32 %v4470_v1, %v4457_v32 }
 0x4e4   :  { %v4485_v23 = vadd.f32 %v4484_v12, %v4471_v45 }
 0x4e6   :  { %v4499_v25 = vadd.f32 %v4498_v42, %v4485_v23 }
 0x4e7   :  { %v4510_v44 = vpop.f32.mrf.mxu2 }
 0x4e8   :  { %v4511_v61 = vadd.f32 %v4510_v44, %v4497_v59 }
 0x4ea   :  { %6939 = vtanh.f32 %v4511_v61 }
 0x4ef   :  { %v4512_v52 = vpop.f32.mrf.mxu2 }
 0x4f0   :  { %v6940_v62 = vpop.eup %6939  ;;  %v4513_v11 = vadd.f32 %v4512_v52, %v4499_v25 }
 0x4f1   :  { %4520 = vst [vmem:[%s7686_s7 + $0x8] sm:$0xff] %v6940_v62 }
 0x4f2   :  { %6941 = vtanh.f32 %v4513_v11 }
 0x4f8   :  { %v6942_v55 = vpop.eup %6941 }
 0x4f9   :  { %4522 = vst [vmem:[%s7686_s7 + $0x18] sm:$0xff] %v6942_v55 }
 0x4fa   :  { %4527 = vsyncpa [#allocation3], 1 }
 0x4fb   :  { %4528 = vsyncpa [#allocation5], 1 }
 0x4fc   :  { %4529 = vsyncpa [#allocation8], 1 }

</bundles_post_ra>
